<compile_context>
chip_gen: v7x
topology: tpu7x:2x2x1
jax: 0.10.0
libtpu: 0.0.40
codegen_flags: <defaults>
</compile_context>

<pallas_src>
import jax
import jax.numpy as jnp
from jax.experimental import pallas as pl
from jax.experimental.pallas import tpu as pltpu

K = 3           # kernel_size
P = K // 2      # 'same' padding


def _make_kernel(C, Cp, S, Wp):
    def kernel(x_ref, wc_ref, bc_ref, wsam_ref, bsam_ref, mask_ref, o_ref):
        x = x_ref[...]            # (Cp, S) f32, zero halo / zero padded channels
        mask = mask_ref[...]      # (1, S)  f32, 1.0 at interior pixels

        def conv(h, idx):
            # Per-tap accumulation: 9 statically rolled copies of h, each fed
            # straight from the XLU roll into a small MXU matmul.  MXU operands
            # in bf16, accumulation in f32; no im2col scratch / vst traffic.
            acc = None
            for t in range(K * K):
                dy, dx = t // K, t % K
                off = (dy - P) * Wp + (dx - P)
                shifted = h if off == 0 else pltpu.roll(h, (-off) % S, axis=1)
                c = jnp.dot(wc_ref[idx, t].astype(jnp.bfloat16),
                            shifted.astype(jnp.bfloat16),
                            preferred_element_type=jnp.float32)
                acc = c if acc is None else acc + c
            # Bias + re-zero the halo so the next conv's 'same' padding is exact
            # (also kills roll wrap-around garbage).  Elementwise stays f32.
            return (acc + bc_ref[idx]) * mask

        # --- ResidualBlock 1: x + conv(relu(conv(x))) ---
        h = jnp.maximum(conv(x, 0), 0.0)
        y1 = x + conv(h, 1)

        # --- ResidualBlock 2 (use_sam=True, fam_mode='all') ---
        h = jnp.maximum(conv(y1, 2), 0.0)
        h = conv(h, 3)
        att = jax.nn.sigmoid(
            jnp.dot(wsam_ref[...].astype(jnp.bfloat16), h.astype(jnp.bfloat16),
                    preferred_element_type=jnp.float32)
            + bsam_ref[...])
        y2 = y1 + h * att
        # Write back only the real channels (skip the zero-padded sublanes).
        o_ref[...] = y2[:C, :].astype(o_ref.dtype)

    return kernel


def scale_block_forward(x_nchw, params, images_per_step=None):
    """Runs ScaleBlock with the Pallas kernel. x_nchw: (N, C, H, W) float32."""
    N, C, H, W = x_nchw.shape
    Cp = ((C + 7) // 8) * 8              # channel pad -> sublane multiple
    Hp, Wp = H + 2 * P, W + 2 * P
    S0 = Hp * Wp
    S_img = ((S0 + 127) // 128) * 128    # per-image lane pad -> 128 multiple

    # Pack several images per grid step along the lane axis to amortize the
    # fixed per-step overhead (target >= ~1024 dense lanes per step).
    if images_per_step is None:
        images_per_step = max(1, min(N, -(-1024 // S_img)))
    Nb = images_per_step
    Ng = -(-N // Nb)                     # grid steps
    Npad = Ng * Nb
    S = Nb * S_img

    # Pad once in the wrapper: batch -> Npad, channels -> Cp, halo, lanes -> S_img,
    # then group Nb images per lane axis.
    # TODO(synk): at production sizes do this placement inside the kernel to avoid
    # the padded-array HBM round trip.
    xp = jnp.pad(x_nchw, ((0, Npad - N), (0, Cp - C), (P, P), (P, P)))
    xp = xp.reshape(Npad, Cp, S0)
    xp = jnp.pad(xp, ((0, 0), (0, 0), (0, S_img - S0)))
    xp = xp.reshape(Ng, Nb, Cp, S_img).transpose(0, 2, 1, 3).reshape(Ng, Cp, S)

    def conv_w(w):   # torch (Cout, Cin, K, K) -> (K*K, Cp, Cp), tap-major
        w = jnp.pad(w, ((0, Cp - C), (0, Cp - C), (0, 0), (0, 0)))
        return jnp.transpose(w, (2, 3, 0, 1)).reshape(K * K, Cp, Cp)

    def conv_b(b):   # (C,) -> (Cp, 1)
        return jnp.pad(b, (0, Cp - C)).reshape(Cp, 1)

    wc = jnp.stack([conv_w(params[k]) for k in ("w1a", "w1b", "w2a", "w2b")])
    bc = jnp.stack([conv_b(params[k]) for k in ("b1a", "b1b", "b2a", "b2b")])
    wsam = jnp.pad(params["wsam"].reshape(C, C), ((0, Cp - C), (0, Cp - C)))
    bsam = jnp.pad(params["bsam"], (0, Cp - C)).reshape(Cp, 1)

    yy, xx = jnp.meshgrid(jnp.arange(Hp), jnp.arange(Wp), indexing="ij")
    interior = ((yy >= P) & (yy < P + H) & (xx >= P) & (xx < P + W))
    mask_img = jnp.pad(interior.astype(jnp.float32).reshape(1, S0),
                       ((0, 0), (0, S_img - S0)))
    mask = jnp.tile(mask_img, (1, Nb))

    out = pl.pallas_call(
        _make_kernel(C, Cp, S, Wp),
        out_shape=jax.ShapeDtypeStruct((Ng, C, S), x_nchw.dtype),
        grid_spec=pltpu.PrefetchScalarGridSpec(
            num_scalar_prefetch=0,
            grid=(Ng,),
            in_specs=[
                pl.BlockSpec((None, Cp, S), lambda n: (n, 0, 0)),        # x group
                pl.BlockSpec((4, K * K, Cp, Cp), lambda n: (0, 0, 0, 0)),  # conv W
                pl.BlockSpec((4, Cp, 1), lambda n: (0, 0, 0)),            # conv b
                pl.BlockSpec((Cp, Cp), lambda n: (0, 0)),                 # SAM W
                pl.BlockSpec((Cp, 1), lambda n: (0, 0)),                  # SAM b
                pl.BlockSpec((1, S), lambda n: (0, 0)),                   # interior mask
            ],
            out_specs=pl.BlockSpec((None, C, S), lambda n: (n, 0, 0)),
        ),
        compiler_params=pltpu.CompilerParams(
            dimension_semantics=("parallel",),
            vmem_limit_bytes=32 * 1024 * 1024),
    )(xp, wc, bc, wsam, bsam, mask)

    out = out.reshape(Ng, C, Nb, S_img).transpose(0, 2, 1, 3).reshape(Npad, C, S_img)
    out = out[:N, :, :S0].reshape(N, C, Hp, Wp)
    return out[:, :, P:P + H, P:P + W]


def scale_block_reference(x_nchw, params):
    """Pure-JAX reference (same reconstructed semantics) for verification."""
    x = jnp.transpose(x_nchw, (0, 2, 3, 1))
    C = x.shape[-1]

    def conv(h, w_oihw, b):
        w_hwio = jnp.transpose(w_oihw, (2, 3, 1, 0))
        y = jax.lax.conv_general_dilated(
            h, w_hwio, window_strides=(1, 1), padding="SAME",
            dimension_numbers=("NHWC", "HWIO", "NHWC"))
        return y + b

    h = jax.nn.relu(conv(x, params["w1a"], params["b1a"]))
    h = conv(h, params["w1b"], params["b1b"])
    y1 = x + h

    h = jax.nn.relu(conv(y1, params["w2a"], params["b2a"]))
    h = conv(h, params["w2b"], params["b2b"])
    att = jax.nn.sigmoid(
        jnp.einsum("nhwc,cd->nhwd", h, jnp.transpose(params["wsam"].reshape(C, C)))
        + params["bsam"])
    h = h * att
    y2 = y1 + h
    return jnp.transpose(y2, (0, 3, 1, 2))


if __name__ == "__main__":
    N, C, H, W = 2, 4, 16, 16           # n_channels=4, kernel_size=3
    key = jax.random.PRNGKey(0)
    k = jax.random.split(key, 11)

    def cw(kk):
        return 0.1 * jax.random.normal(kk, (C, C, K, K), jnp.float32)

    def cb(kk):
        return 0.05 * jax.random.normal(kk, (C,), jnp.float32)

    params = {
        "w1a": cw(k[0]), "b1a": cb(k[1]),
        "w1b": cw(k[2]), "b1b": cb(k[3]),
        "w2a": cw(k[4]), "b2a": cb(k[5]),
        "w2b": cw(k[6]), "b2b": cb(k[7]),
        "wsam": 0.1 * jax.random.normal(k[8], (C, C, 1, 1), jnp.float32),
        "bsam": 0.05 * jax.random.normal(k[9], (C,), jnp.float32),
    }
    x = jax.random.normal(k[10], (N, C, H, W), jnp.float32)

    out = scale_block_forward(x, params)
    out = jax.block_until_ready(out)

    ref = scale_block_reference(x, params)
    err = float(jnp.max(jnp.abs(out - ref)))
    assert out.shape == (N, C, H, W)
    # Tolerance is the deliberate relaxation for bf16 MXU operands (f32 accumulate);
    # a real layout/indexing bug would produce O(1) errors.
    assert err < 2e-2, f"mismatch vs reference: {err}"
    print("KERNEL_OK")
</pallas_src>

<mosaic_0001>
module attributes {stable_mosaic.version = 11 : i64} {
  func.func @kernel(%arg0: i32, %arg1: memref<1x8x768xf32, #tpu.memory_space<vmem>>, %arg2: memref<4x9x8x8xf32, #tpu.memory_space<vmem>>, %arg3: memref<4x8x1xf32, #tpu.memory_space<vmem>>, %arg4: memref<8x8xf32, #tpu.memory_space<vmem>>, %arg5: memref<8x1xf32, #tpu.memory_space<vmem>>, %arg6: memref<1x768xf32, #tpu.memory_space<vmem>>, %arg7: memref<1x4x768xf32, #tpu.memory_space<vmem>>) attributes {dimension_semantics = [#tpu.dimension_semantics<parallel>], iteration_bounds = array<i64: 1>, scalar_prefetch = 0 : i64, scratch_operands = 0 : i64, tpu.core_type = #tpu.core_type<tc>, window_params = [{transform_indices = @transform_0, window_bounds = array<i64: 1, 8, 768>}, {pipeline_mode = #tpu.pipeline_mode<synchronous>, transform_indices = @transform_1, window_bounds = array<i64: 4, 9, 8, 8>}, {pipeline_mode = #tpu.pipeline_mode<synchronous>, transform_indices = @transform_2, window_bounds = array<i64: 4, 8, 1>}, {pipeline_mode = #tpu.pipeline_mode<synchronous>, transform_indices = @transform_3, window_bounds = array<i64: 8, 8>}, {pipeline_mode = #tpu.pipeline_mode<synchronous>, transform_indices = @transform_4, window_bounds = array<i64: 8, 1>}, {pipeline_mode = #tpu.pipeline_mode<synchronous>, transform_indices = @transform_5, window_bounds = array<i64: 1, 768>}, {transform_indices = @transform_6, window_bounds = array<i64: 1, 4, 768>}]} {
    %c0 = arith.constant 0 : index
    %c0_0 = arith.constant 0 : index
    %c0_1 = arith.constant 0 : index
    %0 = vector.load %arg1[%c0, %c0_0, %c0_1] : memref<1x8x768xf32, #tpu.memory_space<vmem>>, vector<1x8x768xf32>
    %1 = vector.shape_cast %0 : vector<1x8x768xf32> to vector<8x768xf32>
    %c0_2 = arith.constant 0 : index
    %c0_3 = arith.constant 0 : index
    %2 = vector.load %arg6[%c0_2, %c0_3] : memref<1x768xf32, #tpu.memory_space<vmem>>, vector<1x768xf32>
    %c19_i32 = arith.constant 19 : i32
    %3 = tpu.dynamic_rotate %1 by %c19_i32 dim 1 : vector<8x768xf32>, i32 -> vector<8x768xf32>
    %c0_4 = arith.constant 0 : index
    %c0_5 = arith.constant 0 : index
    %c0_6 = arith.constant 0 : index
    %c0_7 = arith.constant 0 : index
    %4 = vector.load %arg2[%c0_4, %c0_5, %c0_6, %c0_7] : memref<4x9x8x8xf32, #tpu.memory_space<vmem>>, vector<1x1x8x8xf32>
    %5 = vector.shape_cast %4 : vector<1x1x8x8xf32> to vector<8x8xf32>
    %6 = arith.truncf %5 : vector<8x8xf32> to vector<8x8xbf16>
    %7 = arith.truncf %3 : vector<8x768xf32> to vector<8x768xbf16>
    %cst = arith.constant dense<0.000000e+00> : vector<8x768xf32>
    %8 = tpu.matmul %6, %7, %cst {dimension_numbers = #tpu.dot_dimension_numbers<[1], [0], [0], [1], [0, 0, 1, 1], [], []>} : vector<8x8xbf16>, vector<8x768xbf16>, vector<8x768xf32> -> vector<8x768xf32>
    %c18_i32 = arith.constant 18 : i32
    %9 = tpu.dynamic_rotate %1 by %c18_i32 dim 1 : vector<8x768xf32>, i32 -> vector<8x768xf32>
    %c0_8 = arith.constant 0 : index
    %c1 = arith.constant 1 : index
    %c0_9 = arith.constant 0 : index
    %c0_10 = arith.constant 0 : index
    %10 = vector.load %arg2[%c0_8, %c1, %c0_9, %c0_10] : memref<4x9x8x8xf32, #tpu.memory_space<vmem>>, vector<1x1x8x8xf32>
    %11 = vector.shape_cast %10 : vector<1x1x8x8xf32> to vector<8x8xf32>
    %12 = arith.truncf %11 : vector<8x8xf32> to vector<8x8xbf16>
    %13 = arith.truncf %9 : vector<8x768xf32> to vector<8x768xbf16>
    %cst_11 = arith.constant dense<0.000000e+00> : vector<8x768xf32>
    %14 = tpu.matmul %12, %13, %cst_11 {dimension_numbers = #tpu.dot_dimension_numbers<[1], [0], [0], [1], [0, 0, 1, 1], [], []>} : vector<8x8xbf16>, vector<8x768xbf16>, vector<8x768xf32> -> vector<8x768xf32>
    %15 = arith.addf %8, %14 : vector<8x768xf32>
    %c17_i32 = arith.constant 17 : i32
    %16 = tpu.dynamic_rotate %1 by %c17_i32 dim 1 : vector<8x768xf32>, i32 -> vector<8x768xf32>
    %c0_12 = arith.constant 0 : index
    %c2 = arith.constant 2 : index
    %c0_13 = arith.constant 0 : index
    %c0_14 = arith.constant 0 : index
    %17 = vector.load %arg2[%c0_12, %c2, %c0_13, %c0_14] : memref<4x9x8x8xf32, #tpu.memory_space<vmem>>, vector<1x1x8x8xf32>
    %18 = vector.shape_cast %17 : vector<1x1x8x8xf32> to vector<8x8xf32>
    %19 = arith.truncf %18 : vector<8x8xf32> to vector<8x8xbf16>
    %20 = arith.truncf %16 : vector<8x768xf32> to vector<8x768xbf16>
    %cst_15 = arith.constant dense<0.000000e+00> : vector<8x768xf32>
    %21 = tpu.matmul %19, %20, %cst_15 {dimension_numbers = #tpu.dot_dimension_numbers<[1], [0], [0], [1], [0, 0, 1, 1], [], []>} : vector<8x8xbf16>, vector<8x768xbf16>, vector<8x768xf32> -> vector<8x768xf32>
    %22 = arith.addf %15, %21 : vector<8x768xf32>
    %c1_i32 = arith.constant 1 : i32
    %23 = tpu.dynamic_rotate %1 by %c1_i32 dim 1 : vector<8x768xf32>, i32 -> vector<8x768xf32>
    %c0_16 = arith.constant 0 : index
    %c3 = arith.constant 3 : index
    %c0_17 = arith.constant 0 : index
    %c0_18 = arith.constant 0 : index
    %24 = vector.load %arg2[%c0_16, %c3, %c0_17, %c0_18] : memref<4x9x8x8xf32, #tpu.memory_space<vmem>>, vector<1x1x8x8xf32>
    %25 = vector.shape_cast %24 : vector<1x1x8x8xf32> to vector<8x8xf32>
    %26 = arith.truncf %25 : vector<8x8xf32> to vector<8x8xbf16>
    %27 = arith.truncf %23 : vector<8x768xf32> to vector<8x768xbf16>
    %cst_19 = arith.constant dense<0.000000e+00> : vector<8x768xf32>
    %28 = tpu.matmul %26, %27, %cst_19 {dimension_numbers = #tpu.dot_dimension_numbers<[1], [0], [0], [1], [0, 0, 1, 1], [], []>} : vector<8x8xbf16>, vector<8x768xbf16>, vector<8x768xf32> -> vector<8x768xf32>
    %29 = arith.addf %22, %28 : vector<8x768xf32>
    %c0_20 = arith.constant 0 : index
    %c4 = arith.constant 4 : index
    %c0_21 = arith.constant 0 : index
    %c0_22 = arith.constant 0 : index
    %30 = vector.load %arg2[%c0_20, %c4, %c0_21, %c0_22] : memref<4x9x8x8xf32, #tpu.memory_space<vmem>>, vector<1x1x8x8xf32>
    %31 = vector.shape_cast %30 : vector<1x1x8x8xf32> to vector<8x8xf32>
    %32 = arith.truncf %31 : vector<8x8xf32> to vector<8x8xbf16>
    %33 = arith.truncf %1 : vector<8x768xf32> to vector<8x768xbf16>
    %cst_23 = arith.constant dense<0.000000e+00> : vector<8x768xf32>
    %34 = tpu.matmul %32, %33, %cst_23 {dimension_numbers = #tpu.dot_dimension_numbers<[1], [0], [0], [1], [0, 0, 1, 1], [], []>} : vector<8x8xbf16>, vector<8x768xbf16>, vector<8x768xf32> -> vector<8x768xf32>
    %35 = arith.addf %29, %34 : vector<8x768xf32>
    %c767_i32 = arith.constant 767 : i32
    %36 = tpu.dynamic_rotate %1 by %c767_i32 dim 1 : vector<8x768xf32>, i32 -> vector<8x768xf32>
    %c0_24 = arith.constant 0 : index
    %c5 = arith.constant 5 : index
    %c0_25 = arith.constant 0 : index
    %c0_26 = arith.constant 0 : index
    %37 = vector.load %arg2[%c0_24, %c5, %c0_25, %c0_26] : memref<4x9x8x8xf32, #tpu.memory_space<vmem>>, vector<1x1x8x8xf32>
    %38 = vector.shape_cast %37 : vector<1x1x8x8xf32> to vector<8x8xf32>
    %39 = arith.truncf %38 : vector<8x8xf32> to vector<8x8xbf16>
    %40 = arith.truncf %36 : vector<8x768xf32> to vector<8x768xbf16>
    %cst_27 = arith.constant dense<0.000000e+00> : vector<8x768xf32>
    %41 = tpu.matmul %39, %40, %cst_27 {dimension_numbers = #tpu.dot_dimension_numbers<[1], [0], [0], [1], [0, 0, 1, 1], [], []>} : vector<8x8xbf16>, vector<8x768xbf16>, vector<8x768xf32> -> vector<8x768xf32>
    %42 = arith.addf %35, %41 : vector<8x768xf32>
    %c751_i32 = arith.constant 751 : i32
    %43 = tpu.dynamic_rotate %1 by %c751_i32 dim 1 : vector<8x768xf32>, i32 -> vector<8x768xf32>
    %c0_28 = arith.constant 0 : index
    %c6 = arith.constant 6 : index
    %c0_29 = arith.constant 0 : index
    %c0_30 = arith.constant 0 : index
    %44 = vector.load %arg2[%c0_28, %c6, %c0_29, %c0_30] : memref<4x9x8x8xf32, #tpu.memory_space<vmem>>, vector<1x1x8x8xf32>
    %45 = vector.shape_cast %44 : vector<1x1x8x8xf32> to vector<8x8xf32>
    %46 = arith.truncf %45 : vector<8x8xf32> to vector<8x8xbf16>
    %47 = arith.truncf %43 : vector<8x768xf32> to vector<8x768xbf16>
    %cst_31 = arith.constant dense<0.000000e+00> : vector<8x768xf32>
    %48 = tpu.matmul %46, %47, %cst_31 {dimension_numbers = #tpu.dot_dimension_numbers<[1], [0], [0], [1], [0, 0, 1, 1], [], []>} : vector<8x8xbf16>, vector<8x768xbf16>, vector<8x768xf32> -> vector<8x768xf32>
    %49 = arith.addf %42, %48 : vector<8x768xf32>
    %c750_i32 = arith.constant 750 : i32
    %50 = tpu.dynamic_rotate %1 by %c750_i32 dim 1 : vector<8x768xf32>, i32 -> vector<8x768xf32>
    %c0_32 = arith.constant 0 : index
    %c7 = arith.constant 7 : index
    %c0_33 = arith.constant 0 : index
    %c0_34 = arith.constant 0 : index
    %51 = vector.load %arg2[%c0_32, %c7, %c0_33, %c0_34] : memref<4x9x8x8xf32, #tpu.memory_space<vmem>>, vector<1x1x8x8xf32>
    %52 = vector.shape_cast %51 : vector<1x1x8x8xf32> to vector<8x8xf32>
    %53 = arith.truncf %52 : vector<8x8xf32> to vector<8x8xbf16>
    %54 = arith.truncf %50 : vector<8x768xf32> to vector<8x768xbf16>
    %cst_35 = arith.constant dense<0.000000e+00> : vector<8x768xf32>
    %55 = tpu.matmul %53, %54, %cst_35 {dimension_numbers = #tpu.dot_dimension_numbers<[1], [0], [0], [1], [0, 0, 1, 1], [], []>} : vector<8x8xbf16>, vector<8x768xbf16>, vector<8x768xf32> -> vector<8x768xf32>
    %56 = arith.addf %49, %55 : vector<8x768xf32>
    %c749_i32 = arith.constant 749 : i32
    %57 = tpu.dynamic_rotate %1 by %c749_i32 dim 1 : vector<8x768xf32>, i32 -> vector<8x768xf32>
    %c0_36 = arith.constant 0 : index
    %c8 = arith.constant 8 : index
    %c0_37 = arith.constant 0 : index
    %c0_38 = arith.constant 0 : index
    %58 = vector.load %arg2[%c0_36, %c8, %c0_37, %c0_38] : memref<4x9x8x8xf32, #tpu.memory_space<vmem>>, vector<1x1x8x8xf32>
    %59 = vector.shape_cast %58 : vector<1x1x8x8xf32> to vector<8x8xf32>
    %60 = arith.truncf %59 : vector<8x8xf32> to vector<8x8xbf16>
    %61 = arith.truncf %57 : vector<8x768xf32> to vector<8x768xbf16>
    %cst_39 = arith.constant dense<0.000000e+00> : vector<8x768xf32>
    %62 = tpu.matmul %60, %61, %cst_39 {dimension_numbers = #tpu.dot_dimension_numbers<[1], [0], [0], [1], [0, 0, 1, 1], [], []>} : vector<8x8xbf16>, vector<8x768xbf16>, vector<8x768xf32> -> vector<8x768xf32>
    %63 = arith.addf %56, %62 : vector<8x768xf32>
    %c0_40 = arith.constant 0 : index
    %c0_41 = arith.constant 0 : index
    %c0_42 = arith.constant 0 : index
    %64 = vector.load %arg3[%c0_40, %c0_41, %c0_42] : memref<4x8x1xf32, #tpu.memory_space<vmem>>, vector<1x8x1xf32>
    %65 = vector.shape_cast %64 : vector<1x8x1xf32> to vector<8x1xf32>
    %66 = vector.broadcast %65 : vector<8x1xf32> to vector<8x768xf32>
    %67 = arith.addf %63, %66 : vector<8x768xf32>
    %68 = vector.broadcast %2 : vector<1x768xf32> to vector<8x768xf32>
    %69 = arith.mulf %67, %68 : vector<8x768xf32>
    %cst_43 = arith.constant 0.000000e+00 : f32
    %70 = vector.broadcast %cst_43 : f32 to vector<8x768xf32>
    %71 = arith.maximumf %69, %70 : vector<8x768xf32>
    %c19_i32_44 = arith.constant 19 : i32
    %72 = tpu.dynamic_rotate %71 by %c19_i32_44 dim 1 : vector<8x768xf32>, i32 -> vector<8x768xf32>
    %c1_45 = arith.constant 1 : index
    %c0_46 = arith.constant 0 : index
    %c0_47 = arith.constant 0 : index
    %c0_48 = arith.constant 0 : index
    %73 = vector.load %arg2[%c1_45, %c0_46, %c0_47, %c0_48] : memref<4x9x8x8xf32, #tpu.memory_space<vmem>>, vector<1x1x8x8xf32>
    %74 = vector.shape_cast %73 : vector<1x1x8x8xf32> to vector<8x8xf32>
    %75 = arith.truncf %74 : vector<8x8xf32> to vector<8x8xbf16>
    %76 = arith.truncf %72 : vector<8x768xf32> to vector<8x768xbf16>
    %cst_49 = arith.constant dense<0.000000e+00> : vector<8x768xf32>
    %77 = tpu.matmul %75, %76, %cst_49 {dimension_numbers = #tpu.dot_dimension_numbers<[1], [0], [0], [1], [0, 0, 1, 1], [], []>} : vector<8x8xbf16>, vector<8x768xbf16>, vector<8x768xf32> -> vector<8x768xf32>
    %c18_i32_50 = arith.constant 18 : i32
    %78 = tpu.dynamic_rotate %71 by %c18_i32_50 dim 1 : vector<8x768xf32>, i32 -> vector<8x768xf32>
    %c1_51 = arith.constant 1 : index
    %c1_52 = arith.constant 1 : index
    %c0_53 = arith.constant 0 : index
    %c0_54 = arith.constant 0 : index
    %79 = vector.load %arg2[%c1_51, %c1_52, %c0_53, %c0_54] : memref<4x9x8x8xf32, #tpu.memory_space<vmem>>, vector<1x1x8x8xf32>
    %80 = vector.shape_cast %79 : vector<1x1x8x8xf32> to vector<8x8xf32>
    %81 = arith.truncf %80 : vector<8x8xf32> to vector<8x8xbf16>
    %82 = arith.truncf %78 : vector<8x768xf32> to vector<8x768xbf16>
    %cst_55 = arith.constant dense<0.000000e+00> : vector<8x768xf32>
    %83 = tpu.matmul %81, %82, %cst_55 {dimension_numbers = #tpu.dot_dimension_numbers<[1], [0], [0], [1], [0, 0, 1, 1], [], []>} : vector<8x8xbf16>, vector<8x768xbf16>, vector<8x768xf32> -> vector<8x768xf32>
    %84 = arith.addf %77, %83 : vector<8x768xf32>
    %c17_i32_56 = arith.constant 17 : i32
    %85 = tpu.dynamic_rotate %71 by %c17_i32_56 dim 1 : vector<8x768xf32>, i32 -> vector<8x768xf32>
    %c1_57 = arith.constant 1 : index
    %c2_58 = arith.constant 2 : index
    %c0_59 = arith.constant 0 : index
    %c0_60 = arith.constant 0 : index
    %86 = vector.load %arg2[%c1_57, %c2_58, %c0_59, %c0_60] : memref<4x9x8x8xf32, #tpu.memory_space<vmem>>, vector<1x1x8x8xf32>
    %87 = vector.shape_cast %86 : vector<1x1x8x8xf32> to vector<8x8xf32>
    %88 = arith.truncf %87 : vector<8x8xf32> to vector<8x8xbf16>
    %89 = arith.truncf %85 : vector<8x768xf32> to vector<8x768xbf16>
    %cst_61 = arith.constant dense<0.000000e+00> : vector<8x768xf32>
    %90 = tpu.matmul %88, %89, %cst_61 {dimension_numbers = #tpu.dot_dimension_numbers<[1], [0], [0], [1], [0, 0, 1, 1], [], []>} : vector<8x8xbf16>, vector<8x768xbf16>, vector<8x768xf32> -> vector<8x768xf32>
    %91 = arith.addf %84, %90 : vector<8x768xf32>
    %c1_i32_62 = arith.constant 1 : i32
    %92 = tpu.dynamic_rotate %71 by %c1_i32_62 dim 1 : vector<8x768xf32>, i32 -> vector<8x768xf32>
    %c1_63 = arith.constant 1 : index
    %c3_64 = arith.constant 3 : index
    %c0_65 = arith.constant 0 : index
    %c0_66 = arith.constant 0 : index
    %93 = vector.load %arg2[%c1_63, %c3_64, %c0_65, %c0_66] : memref<4x9x8x8xf32, #tpu.memory_space<vmem>>, vector<1x1x8x8xf32>
    %94 = vector.shape_cast %93 : vector<1x1x8x8xf32> to vector<8x8xf32>
    %95 = arith.truncf %94 : vector<8x8xf32> to vector<8x8xbf16>
    %96 = arith.truncf %92 : vector<8x768xf32> to vector<8x768xbf16>
    %cst_67 = arith.constant dense<0.000000e+00> : vector<8x768xf32>
    %97 = tpu.matmul %95, %96, %cst_67 {dimension_numbers = #tpu.dot_dimension_numbers<[1], [0], [0], [1], [0, 0, 1, 1], [], []>} : vector<8x8xbf16>, vector<8x768xbf16>, vector<8x768xf32> -> vector<8x768xf32>
    %98 = arith.addf %91, %97 : vector<8x768xf32>
    %c1_68 = arith.constant 1 : index
    %c4_69 = arith.constant 4 : index
    %c0_70 = arith.constant 0 : index
    %c0_71 = arith.constant 0 : index
    %99 = vector.load %arg2[%c1_68, %c4_69, %c0_70, %c0_71] : memref<4x9x8x8xf32, #tpu.memory_space<vmem>>, vector<1x1x8x8xf32>
    %100 = vector.shape_cast %99 : vector<1x1x8x8xf32> to vector<8x8xf32>
    %101 = arith.truncf %100 : vector<8x8xf32> to vector<8x8xbf16>
    %102 = arith.truncf %71 : vector<8x768xf32> to vector<8x768xbf16>
    %cst_72 = arith.constant dense<0.000000e+00> : vector<8x768xf32>
    %103 = tpu.matmul %101, %102, %cst_72 {dimension_numbers = #tpu.dot_dimension_numbers<[1], [0], [0], [1], [0, 0, 1, 1], [], []>} : vector<8x8xbf16>, vector<8x768xbf16>, vector<8x768xf32> -> vector<8x768xf32>
    %104 = arith.addf %98, %103 : vector<8x768xf32>
    %c767_i32_73 = arith.constant 767 : i32
    %105 = tpu.dynamic_rotate %71 by %c767_i32_73 dim 1 : vector<8x768xf32>, i32 -> vector<8x768xf32>
    %c1_74 = arith.constant 1 : index
    %c5_75 = arith.constant 5 : index
    %c0_76 = arith.constant 0 : index
    %c0_77 = arith.constant 0 : index
    %106 = vector.load %arg2[%c1_74, %c5_75, %c0_76, %c0_77] : memref<4x9x8x8xf32, #tpu.memory_space<vmem>>, vector<1x1x8x8xf32>
    %107 = vector.shape_cast %106 : vector<1x1x8x8xf32> to vector<8x8xf32>
    %108 = arith.truncf %107 : vector<8x8xf32> to vector<8x8xbf16>
    %109 = arith.truncf %105 : vector<8x768xf32> to vector<8x768xbf16>
    %cst_78 = arith.constant dense<0.000000e+00> : vector<8x768xf32>
    %110 = tpu.matmul %108, %109, %cst_78 {dimension_numbers = #tpu.dot_dimension_numbers<[1], [0], [0], [1], [0, 0, 1, 1], [], []>} : vector<8x8xbf16>, vector<8x768xbf16>, vector<8x768xf32> -> vector<8x768xf32>
    %111 = arith.addf %104, %110 : vector<8x768xf32>
    %c751_i32_79 = arith.constant 751 : i32
    %112 = tpu.dynamic_rotate %71 by %c751_i32_79 dim 1 : vector<8x768xf32>, i32 -> vector<8x768xf32>
    %c1_80 = arith.constant 1 : index
    %c6_81 = arith.constant 6 : index
    %c0_82 = arith.constant 0 : index
    %c0_83 = arith.constant 0 : index
    %113 = vector.load %arg2[%c1_80, %c6_81, %c0_82, %c0_83] : memref<4x9x8x8xf32, #tpu.memory_space<vmem>>, vector<1x1x8x8xf32>
    %114 = vector.shape_cast %113 : vector<1x1x8x8xf32> to vector<8x8xf32>
    %115 = arith.truncf %114 : vector<8x8xf32> to vector<8x8xbf16>
    %116 = arith.truncf %112 : vector<8x768xf32> to vector<8x768xbf16>
    %cst_84 = arith.constant dense<0.000000e+00> : vector<8x768xf32>
    %117 = tpu.matmul %115, %116, %cst_84 {dimension_numbers = #tpu.dot_dimension_numbers<[1], [0], [0], [1], [0, 0, 1, 1], [], []>} : vector<8x8xbf16>, vector<8x768xbf16>, vector<8x768xf32> -> vector<8x768xf32>
    %118 = arith.addf %111, %117 : vector<8x768xf32>
    %c750_i32_85 = arith.constant 750 : i32
    %119 = tpu.dynamic_rotate %71 by %c750_i32_85 dim 1 : vector<8x768xf32>, i32 -> vector<8x768xf32>
    %c1_86 = arith.constant 1 : index
    %c7_87 = arith.constant 7 : index
    %c0_88 = arith.constant 0 : index
    %c0_89 = arith.constant 0 : index
    %120 = vector.load %arg2[%c1_86, %c7_87, %c0_88, %c0_89] : memref<4x9x8x8xf32, #tpu.memory_space<vmem>>, vector<1x1x8x8xf32>
    %121 = vector.shape_cast %120 : vector<1x1x8x8xf32> to vector<8x8xf32>
    %122 = arith.truncf %121 : vector<8x8xf32> to vector<8x8xbf16>
    %123 = arith.truncf %119 : vector<8x768xf32> to vector<8x768xbf16>
    %cst_90 = arith.constant dense<0.000000e+00> : vector<8x768xf32>
    %124 = tpu.matmul %122, %123, %cst_90 {dimension_numbers = #tpu.dot_dimension_numbers<[1], [0], [0], [1], [0, 0, 1, 1], [], []>} : vector<8x8xbf16>, vector<8x768xbf16>, vector<8x768xf32> -> vector<8x768xf32>
    %125 = arith.addf %118, %124 : vector<8x768xf32>
    %c749_i32_91 = arith.constant 749 : i32
    %126 = tpu.dynamic_rotate %71 by %c749_i32_91 dim 1 : vector<8x768xf32>, i32 -> vector<8x768xf32>
    %c1_92 = arith.constant 1 : index
    %c8_93 = arith.constant 8 : index
    %c0_94 = arith.constant 0 : index
    %c0_95 = arith.constant 0 : index
    %127 = vector.load %arg2[%c1_92, %c8_93, %c0_94, %c0_95] : memref<4x9x8x8xf32, #tpu.memory_space<vmem>>, vector<1x1x8x8xf32>
    %128 = vector.shape_cast %127 : vector<1x1x8x8xf32> to vector<8x8xf32>
    %129 = arith.truncf %128 : vector<8x8xf32> to vector<8x8xbf16>
    %130 = arith.truncf %126 : vector<8x768xf32> to vector<8x768xbf16>
    %cst_96 = arith.constant dense<0.000000e+00> : vector<8x768xf32>
    %131 = tpu.matmul %129, %130, %cst_96 {dimension_numbers = #tpu.dot_dimension_numbers<[1], [0], [0], [1], [0, 0, 1, 1], [], []>} : vector<8x8xbf16>, vector<8x768xbf16>, vector<8x768xf32> -> vector<8x768xf32>
    %132 = arith.addf %125, %131 : vector<8x768xf32>
    %c1_97 = arith.constant 1 : index
    %c0_98 = arith.constant 0 : index
    %c0_99 = arith.constant 0 : index
    %133 = vector.load %arg3[%c1_97, %c0_98, %c0_99] : memref<4x8x1xf32, #tpu.memory_space<vmem>>, vector<1x8x1xf32>
    %134 = vector.shape_cast %133 : vector<1x8x1xf32> to vector<8x1xf32>
    %135 = vector.broadcast %134 : vector<8x1xf32> to vector<8x768xf32>
    %136 = arith.addf %132, %135 : vector<8x768xf32>
    %137 = vector.broadcast %2 : vector<1x768xf32> to vector<8x768xf32>
    %138 = arith.mulf %136, %137 : vector<8x768xf32>
    %139 = arith.addf %1, %138 : vector<8x768xf32>
    %c19_i32_100 = arith.constant 19 : i32
    %140 = tpu.dynamic_rotate %139 by %c19_i32_100 dim 1 : vector<8x768xf32>, i32 -> vector<8x768xf32>
    %c2_101 = arith.constant 2 : index
    %c0_102 = arith.constant 0 : index
    %c0_103 = arith.constant 0 : index
    %c0_104 = arith.constant 0 : index
    %141 = vector.load %arg2[%c2_101, %c0_102, %c0_103, %c0_104] : memref<4x9x8x8xf32, #tpu.memory_space<vmem>>, vector<1x1x8x8xf32>
    %142 = vector.shape_cast %141 : vector<1x1x8x8xf32> to vector<8x8xf32>
    %143 = arith.truncf %142 : vector<8x8xf32> to vector<8x8xbf16>
    %144 = arith.truncf %140 : vector<8x768xf32> to vector<8x768xbf16>
    %cst_105 = arith.constant dense<0.000000e+00> : vector<8x768xf32>
    %145 = tpu.matmul %143, %144, %cst_105 {dimension_numbers = #tpu.dot_dimension_numbers<[1], [0], [0], [1], [0, 0, 1, 1], [], []>} : vector<8x8xbf16>, vector<8x768xbf16>, vector<8x768xf32> -> vector<8x768xf32>
    %c18_i32_106 = arith.constant 18 : i32
    %146 = tpu.dynamic_rotate %139 by %c18_i32_106 dim 1 : vector<8x768xf32>, i32 -> vector<8x768xf32>
    %c2_107 = arith.constant 2 : index
    %c1_108 = arith.constant 1 : index
    %c0_109 = arith.constant 0 : index
    %c0_110 = arith.constant 0 : index
    %147 = vector.load %arg2[%c2_107, %c1_108, %c0_109, %c0_110] : memref<4x9x8x8xf32, #tpu.memory_space<vmem>>, vector<1x1x8x8xf32>
    %148 = vector.shape_cast %147 : vector<1x1x8x8xf32> to vector<8x8xf32>
    %149 = arith.truncf %148 : vector<8x8xf32> to vector<8x8xbf16>
    %150 = arith.truncf %146 : vector<8x768xf32> to vector<8x768xbf16>
    %cst_111 = arith.constant dense<0.000000e+00> : vector<8x768xf32>
    %151 = tpu.matmul %149, %150, %cst_111 {dimension_numbers = #tpu.dot_dimension_numbers<[1], [0], [0], [1], [0, 0, 1, 1], [], []>} : vector<8x8xbf16>, vector<8x768xbf16>, vector<8x768xf32> -> vector<8x768xf32>
    %152 = arith.addf %145, %151 : vector<8x768xf32>
    %c17_i32_112 = arith.constant 17 : i32
    %153 = tpu.dynamic_rotate %139 by %c17_i32_112 dim 1 : vector<8x768xf32>, i32 -> vector<8x768xf32>
    %c2_113 = arith.constant 2 : index
    %c2_114 = arith.constant 2 : index
    %c0_115 = arith.constant 0 : index
    %c0_116 = arith.constant 0 : index
    %154 = vector.load %arg2[%c2_113, %c2_114, %c0_115, %c0_116] : memref<4x9x8x8xf32, #tpu.memory_space<vmem>>, vector<1x1x8x8xf32>
    %155 = vector.shape_cast %154 : vector<1x1x8x8xf32> to vector<8x8xf32>
    %156 = arith.truncf %155 : vector<8x8xf32> to vector<8x8xbf16>
    %157 = arith.truncf %153 : vector<8x768xf32> to vector<8x768xbf16>
    %cst_117 = arith.constant dense<0.000000e+00> : vector<8x768xf32>
    %158 = tpu.matmul %156, %157, %cst_117 {dimension_numbers = #tpu.dot_dimension_numbers<[1], [0], [0], [1], [0, 0, 1, 1], [], []>} : vector<8x8xbf16>, vector<8x768xbf16>, vector<8x768xf32> -> vector<8x768xf32>
    %159 = arith.addf %152, %158 : vector<8x768xf32>
    %c1_i32_118 = arith.constant 1 : i32
    %160 = tpu.dynamic_rotate %139 by %c1_i32_118 dim 1 : vector<8x768xf32>, i32 -> vector<8x768xf32>
    %c2_119 = arith.constant 2 : index
    %c3_120 = arith.constant 3 : index
    %c0_121 = arith.constant 0 : index
    %c0_122 = arith.constant 0 : index
    %161 = vector.load %arg2[%c2_119, %c3_120, %c0_121, %c0_122] : memref<4x9x8x8xf32, #tpu.memory_space<vmem>>, vector<1x1x8x8xf32>
    %162 = vector.shape_cast %161 : vector<1x1x8x8xf32> to vector<8x8xf32>
    %163 = arith.truncf %162 : vector<8x8xf32> to vector<8x8xbf16>
    %164 = arith.truncf %160 : vector<8x768xf32> to vector<8x768xbf16>
    %cst_123 = arith.constant dense<0.000000e+00> : vector<8x768xf32>
    %165 = tpu.matmul %163, %164, %cst_123 {dimension_numbers = #tpu.dot_dimension_numbers<[1], [0], [0], [1], [0, 0, 1, 1], [], []>} : vector<8x8xbf16>, vector<8x768xbf16>, vector<8x768xf32> -> vector<8x768xf32>
    %166 = arith.addf %159, %165 : vector<8x768xf32>
    %c2_124 = arith.constant 2 : index
    %c4_125 = arith.constant 4 : index
    %c0_126 = arith.constant 0 : index
    %c0_127 = arith.constant 0 : index
    %167 = vector.load %arg2[%c2_124, %c4_125, %c0_126, %c0_127] : memref<4x9x8x8xf32, #tpu.memory_space<vmem>>, vector<1x1x8x8xf32>
    %168 = vector.shape_cast %167 : vector<1x1x8x8xf32> to vector<8x8xf32>
    %169 = arith.truncf %168 : vector<8x8xf32> to vector<8x8xbf16>
    %170 = arith.truncf %139 : vector<8x768xf32> to vector<8x768xbf16>
    %cst_128 = arith.constant dense<0.000000e+00> : vector<8x768xf32>
    %171 = tpu.matmul %169, %170, %cst_128 {dimension_numbers = #tpu.dot_dimension_numbers<[1], [0], [0], [1], [0, 0, 1, 1], [], []>} : vector<8x8xbf16>, vector<8x768xbf16>, vector<8x768xf32> -> vector<8x768xf32>
    %172 = arith.addf %166, %171 : vector<8x768xf32>
    %c767_i32_129 = arith.constant 767 : i32
    %173 = tpu.dynamic_rotate %139 by %c767_i32_129 dim 1 : vector<8x768xf32>, i32 -> vector<8x768xf32>
    %c2_130 = arith.constant 2 : index
    %c5_131 = arith.constant 5 : index
    %c0_132 = arith.constant 0 : index
    %c0_133 = arith.constant 0 : index
    %174 = vector.load %arg2[%c2_130, %c5_131, %c0_132, %c0_133] : memref<4x9x8x8xf32, #tpu.memory_space<vmem>>, vector<1x1x8x8xf32>
    %175 = vector.shape_cast %174 : vector<1x1x8x8xf32> to vector<8x8xf32>
    %176 = arith.truncf %175 : vector<8x8xf32> to vector<8x8xbf16>
    %177 = arith.truncf %173 : vector<8x768xf32> to vector<8x768xbf16>
    %cst_134 = arith.constant dense<0.000000e+00> : vector<8x768xf32>
    %178 = tpu.matmul %176, %177, %cst_134 {dimension_numbers = #tpu.dot_dimension_numbers<[1], [0], [0], [1], [0, 0, 1, 1], [], []>} : vector<8x8xbf16>, vector<8x768xbf16>, vector<8x768xf32> -> vector<8x768xf32>
    %179 = arith.addf %172, %178 : vector<8x768xf32>
    %c751_i32_135 = arith.constant 751 : i32
    %180 = tpu.dynamic_rotate %139 by %c751_i32_135 dim 1 : vector<8x768xf32>, i32 -> vector<8x768xf32>
    %c2_136 = arith.constant 2 : index
    %c6_137 = arith.constant 6 : index
    %c0_138 = arith.constant 0 : index
    %c0_139 = arith.constant 0 : index
    %181 = vector.load %arg2[%c2_136, %c6_137, %c0_138, %c0_139] : memref<4x9x8x8xf32, #tpu.memory_space<vmem>>, vector<1x1x8x8xf32>
    %182 = vector.shape_cast %181 : vector<1x1x8x8xf32> to vector<8x8xf32>
    %183 = arith.truncf %182 : vector<8x8xf32> to vector<8x8xbf16>
    %184 = arith.truncf %180 : vector<8x768xf32> to vector<8x768xbf16>
    %cst_140 = arith.constant dense<0.000000e+00> : vector<8x768xf32>
    %185 = tpu.matmul %183, %184, %cst_140 {dimension_numbers = #tpu.dot_dimension_numbers<[1], [0], [0], [1], [0, 0, 1, 1], [], []>} : vector<8x8xbf16>, vector<8x768xbf16>, vector<8x768xf32> -> vector<8x768xf32>
    %186 = arith.addf %179, %185 : vector<8x768xf32>
    %c750_i32_141 = arith.constant 750 : i32
    %187 = tpu.dynamic_rotate %139 by %c750_i32_141 dim 1 : vector<8x768xf32>, i32 -> vector<8x768xf32>
    %c2_142 = arith.constant 2 : index
    %c7_143 = arith.constant 7 : index
    %c0_144 = arith.constant 0 : index
    %c0_145 = arith.constant 0 : index
    %188 = vector.load %arg2[%c2_142, %c7_143, %c0_144, %c0_145] : memref<4x9x8x8xf32, #tpu.memory_space<vmem>>, vector<1x1x8x8xf32>
    %189 = vector.shape_cast %188 : vector<1x1x8x8xf32> to vector<8x8xf32>
    %190 = arith.truncf %189 : vector<8x8xf32> to vector<8x8xbf16>
    %191 = arith.truncf %187 : vector<8x768xf32> to vector<8x768xbf16>
    %cst_146 = arith.constant dense<0.000000e+00> : vector<8x768xf32>
    %192 = tpu.matmul %190, %191, %cst_146 {dimension_numbers = #tpu.dot_dimension_numbers<[1], [0], [0], [1], [0, 0, 1, 1], [], []>} : vector<8x8xbf16>, vector<8x768xbf16>, vector<8x768xf32> -> vector<8x768xf32>
    %193 = arith.addf %186, %192 : vector<8x768xf32>
    %c749_i32_147 = arith.constant 749 : i32
    %194 = tpu.dynamic_rotate %139 by %c749_i32_147 dim 1 : vector<8x768xf32>, i32 -> vector<8x768xf32>
    %c2_148 = arith.constant 2 : index
    %c8_149 = arith.constant 8 : index
    %c0_150 = arith.constant 0 : index
    %c0_151 = arith.constant 0 : index
    %195 = vector.load %arg2[%c2_148, %c8_149, %c0_150, %c0_151] : memref<4x9x8x8xf32, #tpu.memory_space<vmem>>, vector<1x1x8x8xf32>
    %196 = vector.shape_cast %195 : vector<1x1x8x8xf32> to vector<8x8xf32>
    %197 = arith.truncf %196 : vector<8x8xf32> to vector<8x8xbf16>
    %198 = arith.truncf %194 : vector<8x768xf32> to vector<8x768xbf16>
    %cst_152 = arith.constant dense<0.000000e+00> : vector<8x768xf32>
    %199 = tpu.matmul %197, %198, %cst_152 {dimension_numbers = #tpu.dot_dimension_numbers<[1], [0], [0], [1], [0, 0, 1, 1], [], []>} : vector<8x8xbf16>, vector<8x768xbf16>, vector<8x768xf32> -> vector<8x768xf32>
    %200 = arith.addf %193, %199 : vector<8x768xf32>
    %c2_153 = arith.constant 2 : index
    %c0_154 = arith.constant 0 : index
    %c0_155 = arith.constant 0 : index
    %201 = vector.load %arg3[%c2_153, %c0_154, %c0_155] : memref<4x8x1xf32, #tpu.memory_space<vmem>>, vector<1x8x1xf32>
    %202 = vector.shape_cast %201 : vector<1x8x1xf32> to vector<8x1xf32>
    %203 = vector.broadcast %202 : vector<8x1xf32> to vector<8x768xf32>
    %204 = arith.addf %200, %203 : vector<8x768xf32>
    %205 = vector.broadcast %2 : vector<1x768xf32> to vector<8x768xf32>
    %206 = arith.mulf %204, %205 : vector<8x768xf32>
    %cst_156 = arith.constant 0.000000e+00 : f32
    %207 = vector.broadcast %cst_156 : f32 to vector<8x768xf32>
    %208 = arith.maximumf %206, %207 : vector<8x768xf32>
    %c19_i32_157 = arith.constant 19 : i32
    %209 = tpu.dynamic_rotate %208 by %c19_i32_157 dim 1 : vector<8x768xf32>, i32 -> vector<8x768xf32>
    %c3_158 = arith.constant 3 : index
    %c0_159 = arith.constant 0 : index
    %c0_160 = arith.constant 0 : index
    %c0_161 = arith.constant 0 : index
    %210 = vector.load %arg2[%c3_158, %c0_159, %c0_160, %c0_161] : memref<4x9x8x8xf32, #tpu.memory_space<vmem>>, vector<1x1x8x8xf32>
    %211 = vector.shape_cast %210 : vector<1x1x8x8xf32> to vector<8x8xf32>
    %212 = arith.truncf %211 : vector<8x8xf32> to vector<8x8xbf16>
    %213 = arith.truncf %209 : vector<8x768xf32> to vector<8x768xbf16>
    %cst_162 = arith.constant dense<0.000000e+00> : vector<8x768xf32>
    %214 = tpu.matmul %212, %213, %cst_162 {dimension_numbers = #tpu.dot_dimension_numbers<[1], [0], [0], [1], [0, 0, 1, 1], [], []>} : vector<8x8xbf16>, vector<8x768xbf16>, vector<8x768xf32> -> vector<8x768xf32>
    %c18_i32_163 = arith.constant 18 : i32
    %215 = tpu.dynamic_rotate %208 by %c18_i32_163 dim 1 : vector<8x768xf32>, i32 -> vector<8x768xf32>
    %c3_164 = arith.constant 3 : index
    %c1_165 = arith.constant 1 : index
    %c0_166 = arith.constant 0 : index
    %c0_167 = arith.constant 0 : index
    %216 = vector.load %arg2[%c3_164, %c1_165, %c0_166, %c0_167] : memref<4x9x8x8xf32, #tpu.memory_space<vmem>>, vector<1x1x8x8xf32>
    %217 = vector.shape_cast %216 : vector<1x1x8x8xf32> to vector<8x8xf32>
    %218 = arith.truncf %217 : vector<8x8xf32> to vector<8x8xbf16>
    %219 = arith.truncf %215 : vector<8x768xf32> to vector<8x768xbf16>
    %cst_168 = arith.constant dense<0.000000e+00> : vector<8x768xf32>
    %220 = tpu.matmul %218, %219, %cst_168 {dimension_numbers = #tpu.dot_dimension_numbers<[1], [0], [0], [1], [0, 0, 1, 1], [], []>} : vector<8x8xbf16>, vector<8x768xbf16>, vector<8x768xf32> -> vector<8x768xf32>
    %221 = arith.addf %214, %220 : vector<8x768xf32>
    %c17_i32_169 = arith.constant 17 : i32
    %222 = tpu.dynamic_rotate %208 by %c17_i32_169 dim 1 : vector<8x768xf32>, i32 -> vector<8x768xf32>
    %c3_170 = arith.constant 3 : index
    %c2_171 = arith.constant 2 : index
    %c0_172 = arith.constant 0 : index
    %c0_173 = arith.constant 0 : index
    %223 = vector.load %arg2[%c3_170, %c2_171, %c0_172, %c0_173] : memref<4x9x8x8xf32, #tpu.memory_space<vmem>>, vector<1x1x8x8xf32>
    %224 = vector.shape_cast %223 : vector<1x1x8x8xf32> to vector<8x8xf32>
    %225 = arith.truncf %224 : vector<8x8xf32> to vector<8x8xbf16>
    %226 = arith.truncf %222 : vector<8x768xf32> to vector<8x768xbf16>
    %cst_174 = arith.constant dense<0.000000e+00> : vector<8x768xf32>
    %227 = tpu.matmul %225, %226, %cst_174 {dimension_numbers = #tpu.dot_dimension_numbers<[1], [0], [0], [1], [0, 0, 1, 1], [], []>} : vector<8x8xbf16>, vector<8x768xbf16>, vector<8x768xf32> -> vector<8x768xf32>
    %228 = arith.addf %221, %227 : vector<8x768xf32>
    %c1_i32_175 = arith.constant 1 : i32
    %229 = tpu.dynamic_rotate %208 by %c1_i32_175 dim 1 : vector<8x768xf32>, i32 -> vector<8x768xf32>
    %c3_176 = arith.constant 3 : index
    %c3_177 = arith.constant 3 : index
    %c0_178 = arith.constant 0 : index
    %c0_179 = arith.constant 0 : index
    %230 = vector.load %arg2[%c3_176, %c3_177, %c0_178, %c0_179] : memref<4x9x8x8xf32, #tpu.memory_space<vmem>>, vector<1x1x8x8xf32>
    %231 = vector.shape_cast %230 : vector<1x1x8x8xf32> to vector<8x8xf32>
    %232 = arith.truncf %231 : vector<8x8xf32> to vector<8x8xbf16>
    %233 = arith.truncf %229 : vector<8x768xf32> to vector<8x768xbf16>
    %cst_180 = arith.constant dense<0.000000e+00> : vector<8x768xf32>
    %234 = tpu.matmul %232, %233, %cst_180 {dimension_numbers = #tpu.dot_dimension_numbers<[1], [0], [0], [1], [0, 0, 1, 1], [], []>} : vector<8x8xbf16>, vector<8x768xbf16>, vector<8x768xf32> -> vector<8x768xf32>
    %235 = arith.addf %228, %234 : vector<8x768xf32>
    %c3_181 = arith.constant 3 : index
    %c4_182 = arith.constant 4 : index
    %c0_183 = arith.constant 0 : index
    %c0_184 = arith.constant 0 : index
    %236 = vector.load %arg2[%c3_181, %c4_182, %c0_183, %c0_184] : memref<4x9x8x8xf32, #tpu.memory_space<vmem>>, vector<1x1x8x8xf32>
    %237 = vector.shape_cast %236 : vector<1x1x8x8xf32> to vector<8x8xf32>
    %238 = arith.truncf %237 : vector<8x8xf32> to vector<8x8xbf16>
    %239 = arith.truncf %208 : vector<8x768xf32> to vector<8x768xbf16>
    %cst_185 = arith.constant dense<0.000000e+00> : vector<8x768xf32>
    %240 = tpu.matmul %238, %239, %cst_185 {dimension_numbers = #tpu.dot_dimension_numbers<[1], [0], [0], [1], [0, 0, 1, 1], [], []>} : vector<8x8xbf16>, vector<8x768xbf16>, vector<8x768xf32> -> vector<8x768xf32>
    %241 = arith.addf %235, %240 : vector<8x768xf32>
    %c767_i32_186 = arith.constant 767 : i32
    %242 = tpu.dynamic_rotate %208 by %c767_i32_186 dim 1 : vector<8x768xf32>, i32 -> vector<8x768xf32>
    %c3_187 = arith.constant 3 : index
    %c5_188 = arith.constant 5 : index
    %c0_189 = arith.constant 0 : index
    %c0_190 = arith.constant 0 : index
    %243 = vector.load %arg2[%c3_187, %c5_188, %c0_189, %c0_190] : memref<4x9x8x8xf32, #tpu.memory_space<vmem>>, vector<1x1x8x8xf32>
    %244 = vector.shape_cast %243 : vector<1x1x8x8xf32> to vector<8x8xf32>
    %245 = arith.truncf %244 : vector<8x8xf32> to vector<8x8xbf16>
    %246 = arith.truncf %242 : vector<8x768xf32> to vector<8x768xbf16>
    %cst_191 = arith.constant dense<0.000000e+00> : vector<8x768xf32>
    %247 = tpu.matmul %245, %246, %cst_191 {dimension_numbers = #tpu.dot_dimension_numbers<[1], [0], [0], [1], [0, 0, 1, 1], [], []>} : vector<8x8xbf16>, vector<8x768xbf16>, vector<8x768xf32> -> vector<8x768xf32>
    %248 = arith.addf %241, %247 : vector<8x768xf32>
    %c751_i32_192 = arith.constant 751 : i32
    %249 = tpu.dynamic_rotate %208 by %c751_i32_192 dim 1 : vector<8x768xf32>, i32 -> vector<8x768xf32>
    %c3_193 = arith.constant 3 : index
    %c6_194 = arith.constant 6 : index
    %c0_195 = arith.constant 0 : index
    %c0_196 = arith.constant 0 : index
    %250 = vector.load %arg2[%c3_193, %c6_194, %c0_195, %c0_196] : memref<4x9x8x8xf32, #tpu.memory_space<vmem>>, vector<1x1x8x8xf32>
    %251 = vector.shape_cast %250 : vector<1x1x8x8xf32> to vector<8x8xf32>
    %252 = arith.truncf %251 : vector<8x8xf32> to vector<8x8xbf16>
    %253 = arith.truncf %249 : vector<8x768xf32> to vector<8x768xbf16>
    %cst_197 = arith.constant dense<0.000000e+00> : vector<8x768xf32>
    %254 = tpu.matmul %252, %253, %cst_197 {dimension_numbers = #tpu.dot_dimension_numbers<[1], [0], [0], [1], [0, 0, 1, 1], [], []>} : vector<8x8xbf16>, vector<8x768xbf16>, vector<8x768xf32> -> vector<8x768xf32>
    %255 = arith.addf %248, %254 : vector<8x768xf32>
    %c750_i32_198 = arith.constant 750 : i32
    %256 = tpu.dynamic_rotate %208 by %c750_i32_198 dim 1 : vector<8x768xf32>, i32 -> vector<8x768xf32>
    %c3_199 = arith.constant 3 : index
    %c7_200 = arith.constant 7 : index
    %c0_201 = arith.constant 0 : index
    %c0_202 = arith.constant 0 : index
    %257 = vector.load %arg2[%c3_199, %c7_200, %c0_201, %c0_202] : memref<4x9x8x8xf32, #tpu.memory_space<vmem>>, vector<1x1x8x8xf32>
    %258 = vector.shape_cast %257 : vector<1x1x8x8xf32> to vector<8x8xf32>
    %259 = arith.truncf %258 : vector<8x8xf32> to vector<8x8xbf16>
    %260 = arith.truncf %256 : vector<8x768xf32> to vector<8x768xbf16>
    %cst_203 = arith.constant dense<0.000000e+00> : vector<8x768xf32>
    %261 = tpu.matmul %259, %260, %cst_203 {dimension_numbers = #tpu.dot_dimension_numbers<[1], [0], [0], [1], [0, 0, 1, 1], [], []>} : vector<8x8xbf16>, vector<8x768xbf16>, vector<8x768xf32> -> vector<8x768xf32>
    %262 = arith.addf %255, %261 : vector<8x768xf32>
    %c749_i32_204 = arith.constant 749 : i32
    %263 = tpu.dynamic_rotate %208 by %c749_i32_204 dim 1 : vector<8x768xf32>, i32 -> vector<8x768xf32>
    %c3_205 = arith.constant 3 : index
    %c8_206 = arith.constant 8 : index
    %c0_207 = arith.constant 0 : index
    %c0_208 = arith.constant 0 : index
    %264 = vector.load %arg2[%c3_205, %c8_206, %c0_207, %c0_208] : memref<4x9x8x8xf32, #tpu.memory_space<vmem>>, vector<1x1x8x8xf32>
    %265 = vector.shape_cast %264 : vector<1x1x8x8xf32> to vector<8x8xf32>
    %266 = arith.truncf %265 : vector<8x8xf32> to vector<8x8xbf16>
    %267 = arith.truncf %263 : vector<8x768xf32> to vector<8x768xbf16>
    %cst_209 = arith.constant dense<0.000000e+00> : vector<8x768xf32>
    %268 = tpu.matmul %266, %267, %cst_209 {dimension_numbers = #tpu.dot_dimension_numbers<[1], [0], [0], [1], [0, 0, 1, 1], [], []>} : vector<8x8xbf16>, vector<8x768xbf16>, vector<8x768xf32> -> vector<8x768xf32>
    %269 = arith.addf %262, %268 : vector<8x768xf32>
    %c3_210 = arith.constant 3 : index
    %c0_211 = arith.constant 0 : index
    %c0_212 = arith.constant 0 : index
    %270 = vector.load %arg3[%c3_210, %c0_211, %c0_212] : memref<4x8x1xf32, #tpu.memory_space<vmem>>, vector<1x8x1xf32>
    %271 = vector.shape_cast %270 : vector<1x8x1xf32> to vector<8x1xf32>
    %272 = vector.broadcast %271 : vector<8x1xf32> to vector<8x768xf32>
    %273 = arith.addf %269, %272 : vector<8x768xf32>
    %274 = vector.broadcast %2 : vector<1x768xf32> to vector<8x768xf32>
    %275 = arith.mulf %273, %274 : vector<8x768xf32>
    %c0_213 = arith.constant 0 : index
    %c0_214 = arith.constant 0 : index
    %276 = vector.load %arg4[%c0_213, %c0_214] : memref<8x8xf32, #tpu.memory_space<vmem>>, vector<8x8xf32>
    %277 = arith.truncf %276 : vector<8x8xf32> to vector<8x8xbf16>
    %278 = arith.truncf %275 : vector<8x768xf32> to vector<8x768xbf16>
    %cst_215 = arith.constant dense<0.000000e+00> : vector<8x768xf32>
    %279 = tpu.matmul %277, %278, %cst_215 {dimension_numbers = #tpu.dot_dimension_numbers<[1], [0], [0], [1], [0, 0, 1, 1], [], []>} : vector<8x8xbf16>, vector<8x768xbf16>, vector<8x768xf32> -> vector<8x768xf32>
    %c0_216 = arith.constant 0 : index
    %c0_217 = arith.constant 0 : index
    %280 = vector.load %arg5[%c0_216, %c0_217] : memref<8x1xf32, #tpu.memory_space<vmem>>, vector<8x1xf32>
    %281 = vector.broadcast %280 : vector<8x1xf32> to vector<8x768xf32>
    %282 = arith.addf %279, %281 : vector<8x768xf32>
    %283 = arith.negf %282 : vector<8x768xf32>
    %284 = math.exp %283 : vector<8x768xf32>
    %cst_218 = arith.constant 1.000000e+00 : f32
    %285 = vector.broadcast %cst_218 : f32 to vector<8x768xf32>
    %286 = arith.addf %285, %284 : vector<8x768xf32>
    %287 = arith.divf %285, %286 : vector<8x768xf32>
    %288 = arith.mulf %275, %287 : vector<8x768xf32>
    %289 = arith.addf %139, %288 : vector<8x768xf32>
    %290 = vector.extract_strided_slice %289 {offsets = [0, 0], sizes = [4, 768], strides = [1, 1]} : vector<8x768xf32> to vector<4x768xf32>
    %c0_219 = arith.constant 0 : index
    %c0_220 = arith.constant 0 : index
    %c0_221 = arith.constant 0 : index
    %291 = vector.load %arg7[%c0_219, %c0_220, %c0_221] : memref<1x4x768xf32, #tpu.memory_space<vmem>>, vector<1x4x768xf32>
    %292 = vector.shape_cast %291 : vector<1x4x768xf32> to vector<4x768xf32>
    %293 = vector.shape_cast %290 : vector<4x768xf32> to vector<1x4x768xf32>
    tpu.vector_store %arg7[%c0_219, %c0_220, %c0_221], %293 {strides = array<i32>} : memref<1x4x768xf32, #tpu.memory_space<vmem>>, vector<1x4x768xf32>,
    return
  }
  func.func @transform_0(%arg0: i32) -> (i32, i32, i32) {
    %c0_i32 = arith.constant 0 : i32
    %c0_i32_0 = arith.constant 0 : i32
    %c0_i32_1 = arith.constant 0 : i32
    return %arg0, %c0_i32, %c0_i32_0 : i32, i32, i32
  }
  func.func @transform_1(%arg0: i32) -> (i32, i32, i32, i32) {
    %c0_i32 = arith.constant 0 : i32
    %c0_i32_0 = arith.constant 0 : i32
    %c0_i32_1 = arith.constant 0 : i32
    %c0_i32_2 = arith.constant 0 : i32
    %c0_i32_3 = arith.constant 0 : i32
    return %c0_i32, %c0_i32_0, %c0_i32_1, %c0_i32_2 : i32, i32, i32, i32
  }
  func.func @transform_2(%arg0: i32) -> (i32, i32, i32) {
    %c0_i32 = arith.constant 0 : i32
    %c0_i32_0 = arith.constant 0 : i32
    %c0_i32_1 = arith.constant 0 : i32
    %c0_i32_2 = arith.constant 0 : i32
    return %c0_i32, %c0_i32_0, %c0_i32_1 : i32, i32, i32
  }
  func.func @transform_3(%arg0: i32) -> (i32, i32) {
    %c0_i32 = arith.constant 0 : i32
    %c0_i32_0 = arith.constant 0 : i32
    %c0_i32_1 = arith.constant 0 : i32
    return %c0_i32, %c0_i32_0 : i32, i32
  }
  func.func @transform_4(%arg0: i32) -> (i32, i32) {
    %c0_i32 = arith.constant 0 : i32
    %c0_i32_0 = arith.constant 0 : i32
    %c0_i32_1 = arith.constant 0 : i32
    return %c0_i32, %c0_i32_0 : i32, i32
  }
  func.func @transform_5(%arg0: i32) -> (i32, i32) {
    %c0_i32 = arith.constant 0 : i32
    %c0_i32_0 = arith.constant 0 : i32
    %c0_i32_1 = arith.constant 0 : i32
    return %c0_i32, %c0_i32_0 : i32, i32
  }
  func.func @transform_6(%arg0: i32) -> (i32, i32, i32) {
    %c0_i32 = arith.constant 0 : i32
    %c0_i32_0 = arith.constant 0 : i32
    %c0_i32_1 = arith.constant 0 : i32
    return %arg0, %c0_i32, %c0_i32_0 : i32, i32, i32
  }
}

</mosaic_0001>

<bundles_post_ra>
// kernel: tpu_custom_call.1
= control target key start
LH: loop header
LB: loop body
LE: loop exit
PB: predicated region body
PF: predicated region fallthrough
CT: control target
= control target key end

     0   :  { %s8816_s0 = inlined_call_operand.vmem [shape: f32[1,8,768], index: 0, kind: input, shape index: {}]   ;;  %s8817_s1 = inlined_call_operand.vmem [shape: f32[4,9,8,8], index: 1, kind: input, shape index: {}]   ;;  %s8818_s2 = inlined_call_operand.vmem [shape: f32[4,8,1], index: 2, kind: input, shape index: {}]   ;;  %s8819_s3 = inlined_call_operand.vmem [shape: f32[8,8], index: 3, kind: input, shape index: {}]   ;;  %s8820_s4 = inlined_call_operand.vmem [shape: f32[8,1], index: 4, kind: input, shape index: {}]   ;;  %s8821_s5 = inlined_call_operand.vmem [shape: f32[1,768], index: 5, kind: input, shape index: {}]   ;;  %s8822_s6 = inlined_call_operand.hbm [shape: f32[1,4,768], index: 6, kind: output, shape index: {}]  }
   0x1   :  { %v7354_v0 = vld [vmem:[%s8816_s0 + $0x18] sm:$0xff]  ;;  %v7359_v1 = vld [vmem:[%s8816_s0 + $0x20] sm:$0xff]  ;;  %v7371_v4 = vld [vmem:[%s8816_s0 + $0x8] sm:$0xff] }
   0x2   :  { %v7364_v2 = vld [vmem:[%s8816_s0] sm:$0xff]  ;;  %v6935_v3 = vpack.i.bf16 %v7359_v1, %v7354_v0 }
   0x3   :  { %v6930_v5 = vpack.i.bf16 %v7371_v4, %v7364_v2 }
   0x4   :  { %11 = vsyncpa [#allocation3], 0  ;;  %s7306_s29 = smov 18   ;;  %v7380_v6 = vld [vmem:[%s8816_s0 + $0x10] sm:$0xff]  ;;  %v7385_v7 = vld [vmem:[%s8816_s0 + $0x28] sm:$0xff]  ;;  %v7307_v8 = vmov 0   ;;  %v6945_v9 = vpack.i.bf16 %v7364_v2, %v7354_v0  ;;  %v6975_v12 = vpack.i.bf16 %v7364_v2, %v7359_v1  ;;  %v44_v16 = vlaneseq }
   0x5   :  { %6936 = vrot.lane.b32.xlu1 %v6935_v3, %s7306_s29  ;;  %6931 = vrot.lane.b32.xlu0 %v6930_v5, %s7306_s29  ;;  %v6940_v10 = vpack.i.bf16 %v7380_v6, %v7371_v4  ;;  %s7308_s10 = smov 19   ;;  %s7309_s11 = smov 17   ;;  %v6965_v11 = vpack.i.bf16 %v7385_v7, %v7364_v2  ;;  %v6970_v13 = vpack.i.bf16 %v7354_v0, %v7380_v6  ;;  %v1606_v15 = vld [vmem:[%s8818_s2] sm:$0xff]  ;;  %vm93_vm1 = vcmask 1043456   ;;  %v6654_v31 = vld [vmem:[%s8817_s1 + $0x8] sm:$0xff] }
   0x6   :  { %144 = vmatprep.mubr.bf16.mxu0 %v7307_v8  ;;  %185 = vmatprep.mubr.bf16.mxu1 %v7307_v8  ;;  %s7310_s12 = smov 1   ;;  %s7311_s13 = smov 127   ;;  %v6985_v14 = vpack.i.bf16 %v7385_v7, %v7359_v1  ;;  %v7453_v17 = vand.u32 127, %v44_v16  ;;  %v82_v40 = vpack.c.bf16 %v6654_v31, %v6654_v31  ;;  %vm89_vm3 = vcmask 64512   ;;  %v53_v57 = vld [vmem:[%s8817_s1] sm:$0xff] }
   0x7   :  { %7010 = vset.pattern.permute.xlu0 %v7307_v8  ;;  %7171 = vset.pattern.permute.xlu1 %v7307_v8  ;;  %s7312_s14 = smov 111   ;;  %s7313_s15 = smov 110   ;;  %v54_v63 = vpack.c.bf16 %v53_v57, %v53_v57  ;;  %v6674_v57 = vld [vmem:[%s8817_s1 + $0x18] sm:$0xff] }
   0x8   :  { %s7314_s16 = smov 109   ;;  %vm73_vm0 = vcmp.lt.s32.totalorder %v7453_v17, 18  ;;  %vm46_vm2 = vcmp.lt.s32.totalorder %v7453_v17, 19  ;;  %vm391_vm4 = vcmp.lt.s32.totalorder %v7453_v17, 17  ;;  %vm569_vm5 = vcmp.lt.s32.totalorder %v7453_v17, 1 }
   0x9   :  { %65 = vrot.lane.b32.xlu1 %v7380_v6, %s7306_s29  ;;  %71 = vrot.lane.b32.xlu0 %v7385_v7, %s7306_s29  ;;  %vm906_vm6 = vcmp.lt.s32.totalorder %v7453_v17, 127  ;;  %vm1084_vm7 = vcmp.lt.s32.totalorder %v7453_v17, 111  ;;  %vm1262_vm8 = vcmp.lt.s32.totalorder %v7453_v17, 110  ;;  %vm1440_vm9 = vcmp.lt.s32.totalorder %v7453_v17, 109 }
   0xd   :  { %6946 = vrot.lane.b32.xlu1 %v6945_v9, %s7308_s10  ;;  %6941 = vrot.lane.b32.xlu0 %v6940_v10, %s7308_s10 }
  0x11   :  { %6951 = vrot.lane.b32.xlu1 %v6930_v5, %s7309_s11  ;;  %42 = vrot.lane.b32.xlu0 %v7385_v7, %s7308_s10 }
  0x15   :  { %40 = vrot.lane.b32.xlu1 %v7359_v1, %s7308_s10  ;;  %389 = vrot.lane.b32.xlu0 %v7385_v7, %s7309_s11 }
  0x19   :  { %383 = vrot.lane.b32.xlu1 %v7380_v6, %s7309_s11  ;;  %6956 = vrot.lane.b32.xlu0 %v6935_v3, %s7309_s11 }
  0x1d   :  { %563 = vrot.lane.b32.xlu1 %v7354_v0, %s7310_s12  ;;  %6961 = vrot.lane.b32.xlu0 %v6940_v10, %s7310_s12 }
  0x21   :  { %565 = vrot.lane.b32.xlu1 %v7359_v1, %s7310_s12  ;;  %6966 = vrot.lane.b32.xlu0 %v6965_v11, %s7310_s12 }
  0x25   :  { %6976 = vrot.lane.b32.xlu1 %v6975_v12, %s7311_s13  ;;  %6971 = vrot.lane.b32.xlu0 %v6970_v13, %s7311_s13 }
  0x29   :  { %6981 = vrot.lane.b32.xlu1 %v6930_v5, %s7312_s14  ;;  %896 = vrot.lane.b32.xlu0 %v7371_v4, %s7311_s13 }
  0x2d   :  { %904 = vrot.lane.b32.xlu1 %v7385_v7, %s7311_s13  ;;  %1076 = vrot.lane.b32.xlu0 %v7380_v6, %s7312_s14 }
  0x31   :  { %1078 = vrot.lane.b32.xlu1 %v7354_v0, %s7312_s14  ;;  %6986 = vrot.lane.b32.xlu0 %v6985_v14, %s7312_s14 }
  0x35   :  { %6996 = vrot.lane.b32.xlu1 %v6975_v12, %s7313_s15  ;;  %6991 = vrot.lane.b32.xlu0 %v6970_v13, %s7313_s15 }
  0x39   :  { %7001 = vrot.lane.b32.xlu1 %v6930_v5, %s7314_s16  ;;  %1252 = vrot.lane.b32.xlu0 %v7371_v4, %s7313_s15 }
  0x3d   :  { %1260 = vrot.lane.b32.xlu1 %v7385_v7, %s7313_s15  ;;  %1432 = vrot.lane.b32.xlu0 %v7380_v6, %s7314_s16 }
  0x41   :  { %1434 = vrot.lane.b32.xlu1 %v7354_v0, %s7314_s16  ;;  %7006 = vrot.lane.b32.xlu0 %v6985_v14, %s7314_s16 }
  0x45   :  { %1609 = vperm.xlu0 %7010, %v1606_v15  }
  0x77   :  { %v6937_v18 = vpop.permute.xlu1 %6936  ;;  %v6932_v20 = vpop.permute.xlu0 %6931 }
  0x78   :  { %v6938_v19 = vunpack.i.l.bf16 %v6937_v18  ;;  %v6939_v21 = vunpack.i.h.bf16 %v6937_v18  ;;  %v6934_v22 = vunpack.i.h.bf16 %v6932_v20  ;;  %v6933_v23 = vunpack.i.l.bf16 %v6932_v20 }
  0x7a   :  { %v78_v25 = vsel %vm73_vm0, %v6933_v23, %v6934_v22  ;;  %v75_v26 = vsel %vm73_vm0, %v6938_v19, %v6939_v21 }
  0x7b   :  { %v66_v24 = vpop.permute.xlu1 %65  ;;  %v72_v27 = vpop.permute.xlu0 %71  ;;  %v84_v28 = vpack.c.bf16 %v78_v25, %v78_v25  ;;  %v87_v37 = vpack.c.bf16 %v75_v26, %v75_v26 }
  0x7c   :  { %v76_v29 = vsel %vm73_vm0, %v66_v24, %v6938_v19  ;;  %v77_v30 = vsel %vm73_vm0, %v6934_v22, %v66_v24  ;;  %v74_v32 = vsel %vm73_vm0, %v6939_v21, %v72_v27  ;;  %v79_v34 = vsel %vm73_vm0, %v72_v27, %v6933_v23 }
  0x7d   :  { %v86_v33 = vpack.c.bf16 %v76_v29, %v76_v29  ;;  %v85_v35 = vpack.c.bf16 %v77_v30, %v77_v30  ;;  %6655 = vmatprep.subr.msk.bf16.mxu0 %vm93_vm1, %v84_v28  ;;  %v83_v36 = vpack.c.bf16 %v79_v34, %v79_v34  ;;  %v88_v41 = vpack.c.bf16 %v74_v32, %v74_v32 }
  0x7e   :  { %v107_v48 = vsel %vm93_vm1, %v87_v37, 0 }
  0x7f   :  { %6657 = vmatprep.subr.msk.bf16.mxu1 %vm93_vm1, %v86_v33  ;;  %v101_v38 = vsel %vm93_vm1, %v85_v35, 0  ;;  %v6947_v39 = vpop.permute.xlu1 %6946  ;;  %v6942_v42 = vpop.permute.xlu0 %6941  ;;  %v95_v43 = vsel %vm93_vm1, %v83_v36, 0 }
  0x80   :  { %154 = vmatpush1.bf16.msra.mxu1 %v101_v38  ;;  %v6949_v44 = vunpack.i.h.bf16 %v6947_v39  ;;  %v6948_v45 = vunpack.i.l.bf16 %v6947_v39  ;;  %v6944_v46 = vunpack.i.h.bf16 %v6942_v42  ;;  %v6943_v47 = vunpack.i.l.bf16 %v6942_v42  ;;  %113 = vmatpush1.bf16.msra.mxu0 %v95_v43  ;;  %v6667_v39 = vld [vmem:[%s8817_s1 + $0x10] sm:$0xff] }
  0x81   :  { %6659 = vmatprep.subr.msk.bf16.mxu0 %vm93_vm1, %v88_v41 }
  0x82   :  { %v51_v50 = vsel %vm46_vm2, %v6949_v44, %v6943_v47  ;;  %v49_v51 = vsel %vm46_vm2, %v6944_v46, %v6948_v45  ;;  %v50_v52 = vsel %vm46_vm2, %v6943_v47, %v6944_v46 }
  0x83   :  { %6658 = vmatmul.mubr.msk.bf16.vlgmr.msra.gmra.mrb[0].mxu1 %vm89_vm3, %v82_v40  ;;  %v6952_v49 = vpop.permute.xlu1 %6951  ;;  %v43_v53 = vpop.permute.xlu0 %42  ;;  %6656 = vmatmul.mubr.msk.bf16.vlgmr.msra.gmra.mrb[0].mxu0 %vm89_vm3, %v82_v40  ;;  %v56_v56 = vpack.c.bf16 %v51_v50, %v51_v50  ;;  %v58_v58 = vpack.c.bf16 %v49_v51, %v49_v51  ;;  %v57_v61 = vpack.c.bf16 %v50_v52, %v50_v52 }
  0x84   :  { %v6954_v54 = vunpack.i.h.bf16 %v6952_v49  ;;  %v6953_v55 = vunpack.i.l.bf16 %v6952_v49  ;;  %288 = vmatprep.mubr.bf16.mxu1 %v7307_v8  ;;  %v52_v59 = vsel %vm46_vm2, %v43_v53, %v6949_v44  ;;  %195 = vmatpush1.bf16.msra.mxu0 %v107_v48  ;;  %v400_v44 = vpack.c.bf16 %v6667_v39, %v6667_v39 }
  0x85   :  { %226 = vmatprep.mubr.bf16.mxu0 %v7307_v8  ;;  %v55_v60 = vpack.c.bf16 %v52_v59, %v52_v59  ;;  %6661 = vmatprep.subr.msk.bf16.mxu1 %vm93_vm1, %v56_v56  ;;  %v245_v14 = vsel %vm93_vm1, %v57_v61, 0  ;;  %v578_v61 = vpack.c.bf16 %v6674_v57, %v6674_v57 }
  0x86   :  { %6663 = vmatprep.subr.msk.bf16.mxu0 %vm93_vm1, %v58_v58  ;;  %v396_v11 = vsel %vm391_vm4, %v6953_v55, %v6954_v54 }
  0x87   :  { %v41_v62 = vpop.permute.xlu1 %40  ;;  %v239_v3 = vsel %vm93_vm1, %v55_v60, 0  ;;  %v390_v10 = vpop.permute.xlu0 %389  ;;  %v402_v20 = vpack.c.bf16 %v396_v11, %v396_v11 }
  0x88   :  { %v47_v5 = vsel %vm46_vm2, %v41_v62, %v43_v53  ;;  %v48_v9 = vsel %vm46_vm2, %v6948_v45, %v41_v62  ;;  %257 = vmatpush1.bf16.msra.mxu1 %v239_v3  ;;  %v397_v15 = vsel %vm391_vm4, %v390_v10, %v6953_v55  ;;  %v739_v3 = vpack.c.bf16 %v7371_v4, %v7371_v4 }
  0x89   :  { %v59_v12 = vpack.c.bf16 %v48_v9, %v48_v9  ;;  %v60_v13 = vpack.c.bf16 %v47_v5, %v47_v5  ;;  %v401_v25 = vpack.c.bf16 %v397_v15, %v397_v15  ;;  %v741_v5 = vpack.c.bf16 %v7354_v0, %v7354_v0 }
  0x8a   :  { %v738_v4 = vpack.c.bf16 %v7364_v2, %v7364_v2  ;;  %v740_v0 = vpack.c.bf16 %v7380_v6, %v7380_v6  ;;  %v743_v6 = vpack.c.bf16 %v7385_v7, %v7385_v7  ;;  %v742_v7 = vpack.c.bf16 %v7359_v1, %v7359_v1 }
  0x8b   :  { %6665 = vmatprep.subr.msk.bf16.mxu1 %vm93_vm1, %v60_v13  ;;  %v251_v18 = vsel %vm93_vm1, %v59_v12, 0  ;;  %v384_v19 = vpop.permute.xlu1 %383  ;;  %6660 = vmatmul.mubr.msk.bf16.vlgmr.msra.gmra.mrb[4].mxu0 %vm89_vm3, %v82_v40  ;;  %v6957_v21 = vpop.permute.xlu0 %6956  ;;  %v411_v32 = vsel %vm93_vm1, %v401_v25, 0 }
  0x8c   :  { %6662 = vmatmul.mubr.msk.bf16.vlgmr.msra.gmra.mrb[4].mxu1 %vm89_vm3, %v54_v63  ;;  %v395_v22 = vsel %vm391_vm4, %v6954_v54, %v384_v19  ;;  %298 = vmatpush1.bf16.msra.mxu0 %v245_v14  ;;  %v6959_v23 = vunpack.i.h.bf16 %v6957_v21  ;;  %v6958_v24 = vunpack.i.l.bf16 %v6957_v21  ;;  %v748_v15 = vsel %vm93_vm1, %v738_v4, 0 }
  0x8d   :  { %339 = vmatpush1.bf16.msra.mxu1 %v251_v18  ;;  %329 = vmatprep.mubr.bf16.mxu0 %v7307_v8  ;;  %v403_v26 = vpack.c.bf16 %v395_v22, %v395_v22  ;;  %v754_v18 = vsel %vm93_vm1, %v740_v0, 0 }
  0x8e   :  { %370 = vmatprep.mubr.bf16.mxu1 %v7307_v8  ;;  %v394_v27 = vsel %vm391_vm4, %v384_v19, %v6958_v24  ;;  %6668 = vmatprep.subr.msk.bf16.mxu0 %vm93_vm1, %v402_v20  ;;  %v392_v28 = vsel %vm391_vm4, %v6959_v23, %v390_v10  ;;  %v393_v36 = vsel %vm391_vm4, %v6958_v24, %v6959_v23  ;;  %v6681_v23 = vld [vmem:[%s8817_s1 + $0x20] sm:$0xff] }
  0x8f   :  { %v564_v29 = vpop.permute.xlu1 %563  ;;  %v404_v30 = vpack.c.bf16 %v394_v27, %v394_v27  ;;  %v6962_v31 = vpop.permute.xlu0 %6961  ;;  %v406_v33 = vpack.c.bf16 %v392_v28, %v392_v28  ;;  %v417_v34 = vsel %vm93_vm1, %v403_v26, 0  ;;  %v405_v43 = vpack.c.bf16 %v393_v36, %v393_v36 }
  0x90   :  { %v6963_v35 = vunpack.i.l.bf16 %v6962_v31  ;;  %v6964_v37 = vunpack.i.h.bf16 %v6962_v31  ;;  %v737_v26 = vpack.c.bf16 %v6681_v23, %v6681_v23 }
  0x91   :  { %6670 = vmatprep.subr.msk.bf16.mxu1 %vm93_vm1, %v404_v30  ;;  %v423_v51 = vsel %vm93_vm1, %v405_v43, 0  ;;  %v760_v30 = vsel %vm93_vm1, %v742_v7, 0 }
  0x92   :  { %v572_v47 = vsel %vm569_vm5, %v6964_v37, %v564_v29  ;;  %v573_v56 = vsel %vm569_vm5, %v6963_v35, %v6964_v37  ;;  %v6688_v37 = vld [vmem:[%s8817_s1 + $0x28] sm:$0xff] }
  0x93   :  { %6664 = vmatmul.mubr.msk.bf16.vlgmr.msra.gmra.mrb[8].mxu0 %vm89_vm3, %v54_v63  ;;  %v6967_v38 = vpop.permute.xlu0 %6966  ;;  %v566_v42 = vpop.permute.xlu1 %565  ;;  %v582_v53 = vpack.c.bf16 %v572_v47, %v572_v47  ;;  %v581_v59 = vpack.c.bf16 %v573_v56, %v573_v56  ;;  %v915_v43 = vpack.c.bf16 %v6688_v37, %v6688_v37 }
  0x94   :  { %6666 = vmatmul.mubr.msk.bf16.vlgmr.msra.gmra.mrb[8].mxu1 %vm89_vm3, %v54_v63  ;;  %429 = vmatpush1.bf16.msra.mxu0 %v411_v32  ;;  %v6969_v40 = vunpack.i.h.bf16 %v6967_v38  ;;  %v6968_v41 = vunpack.i.l.bf16 %v6967_v38  ;;  %v571_v54 = vsel %vm569_vm5, %v564_v29, %v566_v42 }
  0x95   :  { %470 = vmatpush1.bf16.msra.mxu1 %v417_v34  ;;  %6672 = vmatprep.subr.msk.bf16.mxu0 %vm93_vm1, %v406_v33  ;;  %v583_v58 = vpack.c.bf16 %v571_v54, %v571_v54  ;;  %v595_v62 = vsel %vm93_vm1, %v581_v59, 0 }
  0x96   :  { %460 = vmatprep.mubr.bf16.mxu0 %v7307_v8  ;;  %501 = vmatprep.mubr.bf16.mxu1 %v7307_v8  ;;  %v574_v45 = vsel %vm569_vm5, %v6968_v41, %v6963_v35  ;;  %v575_v46 = vsel %vm569_vm5, %v6969_v40, %v6968_v41  ;;  %v570_v50 = vsel %vm569_vm5, %v566_v42, %v6969_v40 }
  0x97   :  { %v580_v48 = vpack.c.bf16 %v574_v45, %v574_v45  ;;  %v579_v49 = vpack.c.bf16 %v575_v46, %v575_v46  ;;  %v584_v55 = vpack.c.bf16 %v570_v50, %v570_v50  ;;  %v6972_v60 = vpop.permute.xlu0 %6971  ;;  %v601_v63 = vsel %vm93_vm1, %v583_v58, 0  ;;  %v6977_v9 = vpop.permute.xlu1 %6976 }
  0x98   :  { %v6973_v10 = vunpack.i.l.bf16 %v6972_v60  ;;  %v6979_v12 = vunpack.i.h.bf16 %v6977_v9  ;;  %v6974_v21 = vunpack.i.h.bf16 %v6972_v60  ;;  %v6978_v22 = vunpack.i.l.bf16 %v6977_v9 }
  0x99   :  { %6675 = vmatprep.subr.msk.bf16.mxu1 %vm93_vm1, %v580_v48  ;;  %v589_v52 = vsel %vm93_vm1, %v579_v49, 0 }
  0x9a   :  { %v908_v28 = vsel %vm906_vm6, %v6974_v21, %v6978_v22  ;;  %v909_v34 = vsel %vm906_vm6, %v6973_v10, %v6974_v21 }
  0x9b   :  { %6669 = vmatmul.mubr.msk.bf16.vlgmr.msra.gmra.mrb[12].mxu0 %vm89_vm3, %v400_v44  ;;  %v897_v11 = vpop.permute.xlu0 %896  ;;  %v7574_v13 = vpop.permute.xlu1 %6981  ;;  %v919_v33 = vpack.c.bf16 %v908_v28, %v908_v28  ;;  %v918_v41 = vpack.c.bf16 %v909_v34, %v909_v34 }
  0x9c   :  { %6671 = vmatmul.mubr.msk.bf16.vlgmr.msra.gmra.mrb[12].mxu1 %vm89_vm3, %v400_v44  ;;  %511 = vmatpush1.bf16.msra.mxu0 %v423_v51  ;;  %v910_v14 = vsel %vm906_vm6, %v897_v11, %v6973_v10  ;;  %v911_v2 = vsel %vm906_vm6, %v6979_v12, %v897_v11  ;;  %v6984_v35 = vunpack.i.h.bf16 %v7574_v13  ;;  %v6983_v39 = vunpack.i.l.bf16 %v7574_v13 }
  0x9d   :  { %607 = vmatpush1.bf16.msra.mxu1 %v589_v52  ;;  %542 = vmatprep.mubr.bf16.mxu0 %v7307_v8  ;;  %v917_v19 = vpack.c.bf16 %v910_v14, %v910_v14  ;;  %v916_v25 = vpack.c.bf16 %v911_v2, %v911_v2  ;;  %v932_v46 = vsel %vm93_vm1, %v918_v41, 0 }
  0x9e   :  { %638 = vmatprep.mubr.bf16.mxu1 %v7307_v8  ;;  %6677 = vmatprep.subr.msk.bf16.mxu0 %vm93_vm1, %v582_v53  ;;  %v1089_v48 = vsel %vm1084_vm7, %v6983_v39, %v6984_v35 }
  0x9f   :  { %6679 = vmatprep.subr.msk.bf16.mxu1 %vm93_vm1, %v584_v55  ;;  %v1077_v20 = vpop.permute.xlu0 %1076  ;;  %v905_v24 = vpop.permute.xlu1 %904  ;;  %v926_v31 = vsel %vm93_vm1, %v916_v25, 0  ;;  %v1094_v57 = vpack.c.bf16 %v1089_v48, %v1089_v48  ;;  %v6709_v48 = vld [vmem:[%s8817_s1 + $0x40] sm:$0xff] }
  0xa0   :  { %v912_v27 = vsel %vm906_vm6, %v905_v24, %v6979_v12  ;;  %v907_v32 = vsel %vm906_vm6, %v6978_v22, %v905_v24  ;;  %v6695_v12 = vld [vmem:[%s8817_s1 + $0x30] sm:$0xff] }
  0xa1   :  { %v921_v1 = vpack.c.bf16 %v912_v27, %v912_v27  ;;  %v920_v40 = vpack.c.bf16 %v907_v32, %v907_v32  ;;  %v6702_v27 = vld [vmem:[%s8817_s1 + $0x38] sm:$0xff] }
  0xa2   :  { %v1271_v32 = vpack.c.bf16 %v6702_v27, %v6702_v27 }
  0xa3   :  { %6673 = vmatmul.mubr.msk.bf16.vlgmr.msra.gmra.mrb[16].mxu0 %vm89_vm3, %v400_v44  ;;  %v6987_v29 = vpop.permute.xlu0 %6986  ;;  %v1079_v38 = vpop.permute.xlu1 %1078  ;;  %v1088_v44 = vsel %vm1084_vm7, %v6984_v35, %v1077_v20  ;;  %v938_v47 = vsel %vm93_vm1, %v920_v40, 0 }
  0xa4   :  { %6676 = vmatmul.mubr.msk.bf16.vlgmr.msra.gmra.mrb[16].mxu1 %vm89_vm3, %v578_v61  ;;  %648 = vmatpush1.bf16.msra.mxu0 %v595_v62  ;;  %v6988_v36 = vunpack.i.l.bf16 %v6987_v29  ;;  %v1095_v49 = vpack.c.bf16 %v1088_v44, %v1088_v44  ;;  %v6989_v50 = vunpack.i.h.bf16 %v6987_v29  ;;  %v1087_v51 = vsel %vm1084_vm7, %v1077_v20, %v1079_v38 }
  0xa5   :  { %689 = vmatpush1.bf16.msra.mxu1 %v601_v63  ;;  %679 = vmatprep.mubr.bf16.mxu0 %v7307_v8  ;;  %v1096_v56 = vpack.c.bf16 %v1087_v51, %v1087_v51  ;;  %v1104_v62 = vsel %vm93_vm1, %v1094_v57, 0 }
  0xa6   :  { %720 = vmatprep.mubr.bf16.mxu1 %v7307_v8  ;;  %6682 = vmatprep.subr.msk.bf16.mxu0 %vm93_vm1, %v739_v3  ;;  %v1086_v45 = vsel %vm1084_vm7, %v1079_v38, %v6988_v36  ;;  %v1090_v58 = vsel %vm1084_vm7, %v6989_v50, %v6983_v39  ;;  %v1085_v10 = vsel %vm1084_vm7, %v6988_v36, %v6989_v50 }
  0xa7   :  { %6684 = vmatprep.subr.msk.bf16.mxu1 %vm93_vm1, %v741_v5  ;;  %v6992_v42 = vpop.permute.xlu0 %6991  ;;  %v1097_v52 = vpack.c.bf16 %v1086_v45, %v1086_v45  ;;  %v6997_v53 = vpop.permute.xlu1 %6996  ;;  %v1099_v63 = vpack.c.bf16 %v1090_v58, %v1090_v58  ;;  %v1110_v3 = vsel %vm93_vm1, %v1096_v56, 0  ;;  %v1449_v50 = vpack.c.bf16 %v6709_v48, %v6709_v48 }
  0xa8   :  { %v6993_v54 = vunpack.i.l.bf16 %v6992_v42  ;;  %v6999_v59 = vunpack.i.h.bf16 %v6997_v53  ;;  %v6994_v4 = vunpack.i.h.bf16 %v6992_v42  ;;  %v6998_v0 = vunpack.i.l.bf16 %v6997_v53 }
  0xaa   :  { %v1265_v25 = vsel %vm1262_vm8, %v6993_v54, %v6994_v4 }
  0xab   :  { %6678 = vmatmul.mubr.msk.bf16.vlgmr.msra.gmra.mrb[20].mxu0 %vm89_vm3, %v578_v61  ;;  %v1253_v55 = vpop.permute.xlu0 %1252  ;;  %v7636_v60 = vpop.permute.xlu1 %7001 }
  0xac   :  { %6680 = vmatmul.mubr.msk.bf16.vlgmr.msra.gmra.mrb[20].mxu1 %vm89_vm3, %v578_v61  ;;  %766 = vmatpush1.bf16.msra.mxu0 %v748_v15  ;;  %v1266_v61 = vsel %vm1262_vm8, %v1253_v55, %v6993_v54  ;;  %v1267_v5 = vsel %vm1262_vm8, %v6999_v59, %v1253_v55  ;;  %v1098_v15 = vpack.c.bf16 %v1085_v10, %v1085_v10  ;;  %v7004_v7 = vunpack.i.h.bf16 %v7636_v60 }
  0xad   :  { %807 = vmatpush1.bf16.msra.mxu1 %v754_v18  ;;  %797 = vmatprep.mubr.bf16.mxu0 %v7307_v8  ;;  %v1273_v9 = vpack.c.bf16 %v1266_v61, %v1266_v61  ;;  %v1272_v14 = vpack.c.bf16 %v1267_v5, %v1267_v5  ;;  %v1093_v18 = vpack.c.bf16 %v6695_v12, %v6695_v12  ;;  %v7003_v29 = vunpack.i.l.bf16 %v7636_v60 }
  0xae   :  { %838 = vmatprep.mubr.bf16.mxu1 %v7307_v8  ;;  %6686 = vmatprep.subr.msk.bf16.mxu0 %vm93_vm1, %v743_v6  ;;  %v1116_v20 = vsel %vm93_vm1, %v1098_v15, 0 }
  0xaf   :  { %6689 = vmatprep.subr.msk.bf16.mxu1 %vm93_vm1, %v917_v19  ;;  %v1433_v11 = vpop.permute.xlu0 %1432  ;;  %v1261_v13 = vpop.permute.xlu1 %1260  ;;  %v1264_v19 = vsel %vm1262_vm8, %v6994_v4, %v6998_v0  ;;  %v1282_v21 = vsel %vm93_vm1, %v1272_v14, 0  ;;  %v1445_v36 = vsel %vm1440_vm9, %v7003_v29, %v7004_v7 }
  0xb0   :  { %v1268_v2 = vsel %vm1262_vm8, %v1261_v13, %v6999_v59  ;;  %v1263_v22 = vsel %vm1262_vm8, %v6998_v0, %v1261_v13  ;;  %v1275_v24 = vpack.c.bf16 %v1264_v19, %v1264_v19  ;;  %v1450_v42 = vpack.c.bf16 %v1445_v36, %v1445_v36 }
  0xb1   :  { %v1277_v23 = vpack.c.bf16 %v1268_v2, %v1268_v2 }
  0xb2   :  { %v1460_v44 = vsel %vm93_vm1, %v1450_v42, 0 }
  0xb3   :  { %6683 = vmatmul.mubr.msk.bf16.vlgmr.msra.gmra.mrb[24].mxu0 %vm89_vm3, %v737_v26  ;;  %v7007_v6 = vpop.permute.xlu0 %7006  ;;  %v1435_v28 = vpop.permute.xlu1 %1434 }
  0xb4   :  { %6685 = vmatmul.mubr.msk.bf16.vlgmr.msra.gmra.mrb[24].mxu1 %vm89_vm3, %v737_v26  ;;  %848 = vmatpush1.bf16.msra.mxu0 %v760_v30  ;;  %v1276_v30 = vpack.c.bf16 %v1263_v22, %v1263_v22  ;;  %v7009_v38 = vunpack.i.h.bf16 %v7007_v6  ;;  %v1443_v39 = vsel %vm1440_vm9, %v1433_v11, %v1435_v28 }
  0xb5   :  { %944 = vmatpush1.bf16.msra.mxu1 %v926_v31  ;;  %879 = vmatprep.mubr.bf16.mxu0 %v7307_v8  ;;  %v1274_v31 = vpack.c.bf16 %v1265_v25, %v1265_v25  ;;  %v1452_v41 = vpack.c.bf16 %v1443_v39, %v1443_v39 }
  0xb6   :  { %975 = vmatprep.mubr.bf16.mxu1 %v7307_v8  ;;  %6691 = vmatprep.subr.msk.bf16.mxu0 %vm93_vm1, %v919_v33  ;;  %v1294_v35 = vsel %vm93_vm1, %v1276_v30, 0 }
  0xb7   :  { %6693 = vmatprep.subr.msk.bf16.mxu1 %vm93_vm1, %v921_v1  ;;  %v1444_v1 = vsel %vm1440_vm9, %v7004_v7, %v1433_v11  ;;  %v1288_v34 = vsel %vm93_vm1, %v1274_v31, 0 }
  0xb8   :  { %v1451_v37 = vpack.c.bf16 %v1444_v1, %v1444_v1 }
  0xbb   :  { %6687 = vmatmul.mubr.msk.bf16.vlgmr.msra.gmra.mrb[28].mxu0 %vm89_vm3, %v737_v26  ;;  %v7008_v26 = vunpack.i.l.bf16 %v7007_v6 }
  0xbc   :  { %6690 = vmatmul.mubr.msk.bf16.vlgmr.msra.gmra.mrb[28].mxu1 %vm89_vm3, %v915_v43  ;;  %985 = vmatpush1.bf16.msra.mxu0 %v932_v46  ;;  %v1466_v46 = vsel %vm93_vm1, %v1452_v41, 0 }
  0xbd   :  { %1026 = vmatpush1.bf16.msra.mxu1 %v938_v47  ;;  %1016 = vmatprep.mubr.bf16.mxu0 %v7307_v8  ;;  %v1442_v33 = vsel %vm1440_vm9, %v1435_v28, %v7008_v26  ;;  %v1441_v47 = vsel %vm1440_vm9, %v7008_v26, %v7009_v38 }
  0xbe   :  { %1057 = vmatprep.mubr.bf16.mxu1 %v7307_v8  ;;  %6696 = vmatprep.subr.msk.bf16.mxu0 %vm93_vm1, %v1095_v49  ;;  %v1453_v40 = vpack.c.bf16 %v1442_v33, %v1442_v33  ;;  %v1454_v49 = vpack.c.bf16 %v1441_v47, %v1441_v47 }
  0xbf   :  { %6698 = vmatprep.subr.msk.bf16.mxu1 %vm93_vm1, %v1097_v52 }
  0xc0   :  { %v1472_v51 = vsel %vm93_vm1, %v1454_v49, 0 }
  0xc3   :  { %6692 = vmatmul.mubr.msk.bf16.vlgmr.msra.gmra.mrb[32].mxu0 %vm89_vm3, %v915_v43 }
  0xc4   :  { %6694 = vmatmul.mubr.msk.bf16.vlgmr.msra.gmra.mrb[32].mxu1 %vm89_vm3, %v915_v43  ;;  %1122 = vmatpush1.bf16.msra.mxu0 %v1104_v62  ;;  %v1446_v43 = vsel %vm1440_vm9, %v7009_v38, %v7003_v29 }
  0xc5   :  { %1163 = vmatpush1.bf16.msra.mxu1 %v1110_v3  ;;  %6700 = vmatprep.subr.msk.bf16.mxu0 %vm93_vm1, %v1099_v63  ;;  %v1455_v45 = vpack.c.bf16 %v1446_v43, %v1446_v43 }
  0xc6   :  { %1153 = vmatprep.mubr.bf16.mxu0 %v7307_v8  ;;  %1194 = vmatprep.mubr.bf16.mxu1 %v7307_v8 }
  0xc7   :  { %6703 = vmatprep.subr.msk.bf16.mxu1 %vm93_vm1, %v1273_v9 }
  0xcb   :  { %6697 = vmatmul.mubr.msk.bf16.vlgmr.msra.gmra.mrb[36].mxu0 %vm89_vm3, %v1093_v18 }
  0xcc   :  { %6699 = vmatmul.mubr.msk.bf16.vlgmr.msra.gmra.mrb[36].mxu1 %vm89_vm3, %v1093_v18  ;;  %1204 = vmatpush1.bf16.msra.mxu0 %v1116_v20 }
  0xcd   :  { %1300 = vmatpush1.bf16.msra.mxu1 %v1282_v21  ;;  %1235 = vmatprep.mubr.bf16.mxu0 %v7307_v8 }
  0xce   :  { %1331 = vmatprep.mubr.bf16.mxu1 %v7307_v8  ;;  %6705 = vmatprep.subr.msk.bf16.mxu0 %vm93_vm1, %v1275_v24 }
  0xcf   :  { %6707 = vmatprep.subr.msk.bf16.mxu1 %vm93_vm1, %v1277_v23 }
  0xd3   :  { %6701 = vmatmul.mubr.msk.bf16.vlgmr.msra.gmra.mrb[40].mxu0 %vm89_vm3, %v1093_v18 }
  0xd4   :  { %6704 = vmatmul.mubr.msk.bf16.vlgmr.msra.gmra.mrb[40].mxu1 %vm89_vm3, %v1271_v32  ;;  %1341 = vmatpush1.bf16.msra.mxu0 %v1288_v34 }
  0xd5   :  { %1382 = vmatpush1.bf16.msra.mxu1 %v1294_v35  ;;  %1372 = vmatprep.mubr.bf16.mxu0 %v7307_v8 }
  0xd6   :  { %1413 = vmatprep.mubr.bf16.mxu1 %v7307_v8  ;;  %6710 = vmatprep.subr.msk.bf16.mxu0 %vm93_vm1, %v1451_v37 }
  0xd7   :  { %6712 = vmatprep.subr.msk.bf16.mxu1 %vm93_vm1, %v1453_v40 }
  0xdb   :  { %6706 = vmatmul.mubr.msk.bf16.vlgmr.msra.gmra.mrb[44].mxu0 %vm89_vm3, %v1271_v32 }
  0xdc   :  { %6708 = vmatmul.mubr.msk.bf16.vlgmr.msra.gmra.mrb[44].mxu1 %vm89_vm3, %v1271_v32  ;;  %1478 = vmatpush1.bf16.msra.mxu0 %v1460_v44 }
  0xdd   :  { %1519 = vmatpush1.bf16.msra.mxu1 %v1466_v46  ;;  %6714 = vmatprep.subr.msk.bf16.mxu0 %vm93_vm1, %v1455_v45 }
  0xde   :  { %1509 = vmatprep.mubr.bf16.mxu0 %v7307_v8  ;;  %1550 = vmatprep.mubr.bf16.mxu1 %v7307_v8 }
  0xe3   :  { %6711 = vmatmul.mubr.msk.bf16.vlgmr.msra.gmra.mrb[48].mxu0 %vm89_vm3, %v1449_v50 }
  0xe4   :  { %6713 = vmatmul.mubr.msk.bf16.vlgmr.msra.gmra.mrb[48].mxu1 %vm89_vm3, %v1449_v50  ;;  %1560 = vmatpush1.bf16.msra.mxu0 %v1472_v51 }
  0xe5   :  { %1591 = vmatprep.mubr.bf16.mxu0 %v7307_v8  ;;  %1768 = vmatprep.mubr.bf16.mxu1 %v7307_v8 }
  0xeb   :  { %6715 = vmatmul.mubr.msk.bf16.vlgmr.msra.gmra.mrb[52].mxu0 %vm89_vm3, %v1449_v50 }
  0xec   :  { %1809 = vmatprep.mubr.bf16.mxu0 %v7307_v8 }
 0x156   :  { %v187_v52 = vpop.f32.mrb[0].mxu1  ;;  %v146_v53 = vpop.f32.mrb[0].mxu0 }
 0x157   :  { %v189_v54 = vpop.f32.mrb[1].mxu1  ;;  %v148_v55 = vpop.f32.mrb[1].mxu0 }
 0x158   :  { %v191_v56 = vpop.f32.mrb[2].mxu1  ;;  %v150_v57 = vpop.f32.mrb[2].mxu0 }
 0x159   :  { %v192_v58 = vpop.f32.mrb[3].mxu1  ;;  %v151_v59 = vpop.f32.mrb[3].mxu0 }
 0x15e   :  { %v228_v60 = vpop.f32.mrb[4].mxu0 }
 0x15f   :  { %v290_v61 = vpop.f32.mrb[4].mxu1  ;;  %v230_v63 = vpop.f32.mrb[5].mxu0 }
 0x160   :  { %v291_v62 = vadd.f32 %v290_v61, %v146_v53  ;;  %v292_v3 = vpop.f32.mrb[5].mxu1  ;;  %v232_v9 = vpop.f32.mrb[6].mxu0 }
 0x161   :  { %v293_v5 = vadd.f32 %v292_v3, %v148_v55  ;;  %v294_v10 = vpop.f32.mrb[6].mxu1  ;;  %v233_v11 = vpop.f32.mrb[7].mxu0 }
 0x162   :  { %v295_v4 = vpop.f32.mrb[7].mxu1 }
 0x166   :  { %v331_v0 = vpop.f32.mrb[8].mxu0 }
 0x167   :  { %v372_v12 = vpop.f32.mrb[8].mxu1  ;;  %v332_v13 = vadd.f32 %v331_v0, %v187_v52  ;;  %v333_v15 = vpop.f32.mrb[9].mxu0 }
 0x168   :  { %v373_v14 = vadd.f32 %v372_v12, %v228_v60  ;;  %v374_v18 = vpop.f32.mrb[9].mxu1  ;;  %v334_v2 = vadd.f32 %v333_v15, %v189_v54  ;;  %v335_v6 = vpop.f32.mrb[10].mxu0 }
 0x169   :  { %v375_v19 = vadd.f32 %v374_v18, %v230_v63  ;;  %v376_v20 = vpop.f32.mrb[10].mxu1  ;;  %v336_v21 = vpop.f32.mrb[11].mxu0 }
 0x16a   :  { %v377_v22 = vpop.f32.mrb[11].mxu1 }
 0x16e   :  { %v462_v23 = vpop.f32.mrb[12].mxu0 }
 0x16f   :  { %v503_v24 = vpop.f32.mrb[12].mxu1  ;;  %v551_v25 = vadd.f32 %v462_v23, %v291_v62  ;;  %v464_v26 = vpop.f32.mrb[13].mxu0 }
 0x170   :  { %v553_v7 = vadd.f32 %v503_v24, %v332_v13  ;;  %v505_v27 = vpop.f32.mrb[13].mxu1  ;;  %v552_v28 = vadd.f32 %v464_v26, %v293_v5  ;;  %v466_v30 = vpop.f32.mrb[14].mxu0 }
 0x171   :  { %v554_v29 = vadd.f32 %v505_v27, %v334_v2  ;;  %v507_v31 = vpop.f32.mrb[14].mxu1  ;;  %v467_v32 = vpop.f32.mrb[15].mxu0 }
 0x172   :  { %v508_v1 = vpop.f32.mrb[15].mxu1 }
 0x176   :  { %v544_v33 = vpop.f32.mrb[16].mxu0 }
 0x177   :  { %v640_v34 = vpop.f32.mrb[16].mxu1  ;;  %v555_v35 = vadd.f32 %v544_v33, %v373_v14  ;;  %v546_v37 = vpop.f32.mrb[17].mxu0 }
 0x178   :  { %v729_v36 = vadd.f32 %v640_v34, %v551_v25  ;;  %v642_v38 = vpop.f32.mrb[17].mxu1  ;;  %v556_v39 = vadd.f32 %v546_v37, %v375_v19  ;;  %v548_v41 = vpop.f32.mrb[18].mxu0 }
 0x179   :  { %v730_v40 = vadd.f32 %v642_v38, %v552_v28  ;;  %v644_v42 = vpop.f32.mrb[18].mxu1  ;;  %v549_v43 = vpop.f32.mrb[19].mxu0 }
 0x17a   :  { %v645_v44 = vpop.f32.mrb[19].mxu1 }
 0x17e   :  { %v681_v45 = vpop.f32.mrb[20].mxu0 }
 0x17f   :  { %v722_v46 = vpop.f32.mrb[20].mxu1  ;;  %v731_v47 = vadd.f32 %v681_v45, %v553_v7  ;;  %v683_v49 = vpop.f32.mrb[21].mxu0 }
 0x180   :  { %v733_v48 = vadd.f32 %v722_v46, %v555_v35  ;;  %v724_v50 = vpop.f32.mrb[21].mxu1  ;;  %v732_v51 = vadd.f32 %v683_v49, %v554_v29  ;;  %v685_v53 = vpop.f32.mrb[22].mxu0 }
 0x181   :  { %v734_v52 = vadd.f32 %v724_v50, %v556_v39  ;;  %v726_v54 = vpop.f32.mrb[22].mxu1  ;;  %v686_v55 = vpop.f32.mrb[23].mxu0 }
 0x182   :  { %v727_v56 = vpop.f32.mrb[23].mxu1 }
 0x186   :  { %v799_v57 = vpop.f32.mrb[24].mxu0 }
 0x187   :  { %v840_v58 = vpop.f32.mrb[24].mxu1  ;;  %v888_v59 = vadd.f32 %v799_v57, %v729_v36  ;;  %v801_v61 = vpop.f32.mrb[25].mxu0 }
 0x188   :  { %v890_v60 = vadd.f32 %v840_v58, %v731_v47  ;;  %v842_v62 = vpop.f32.mrb[25].mxu1  ;;  %v889_v63 = vadd.f32 %v801_v61, %v730_v40  ;;  %v803_v5 = vpop.f32.mrb[26].mxu0 }
 0x189   :  { %v891_v3 = vadd.f32 %v842_v62, %v732_v51  ;;  %v844_v9 = vpop.f32.mrb[26].mxu1  ;;  %v804_v10 = vpop.f32.mrb[27].mxu0  ;;  %v1620_v62 = vshrl.u32 %v44_v16, 7 }
 0x18a   :  { %v845_v11 = vpop.f32.mrb[27].mxu1 }
 0x18e   :  { %v881_v4 = vpop.f32.mrb[28].mxu0 }
 0x18f   :  { %v977_v0 = vpop.f32.mrb[28].mxu1  ;;  %v892_v12 = vadd.f32 %v881_v4, %v733_v48  ;;  %v883_v14 = vpop.f32.mrb[29].mxu0  ;;  %v1621_v4 = vsub.s32 0, %v1620_v62 }
 0x190   :  { %v1066_v13 = vadd.f32 %v977_v0, %v888_v59  ;;  %v979_v15 = vpop.f32.mrb[29].mxu1  ;;  %v893_v18 = vadd.f32 %v883_v14, %v734_v52  ;;  %v885_v19 = vpop.f32.mrb[30].mxu0  ;;  %v1629_v0 = vsub.s32 2, %v1620_v62 }
 0x191   :  { %v1067_v2 = vadd.f32 %v979_v15, %v889_v63  ;;  %v981_v6 = vpop.f32.mrb[30].mxu1  ;;  %v886_v20 = vpop.f32.mrb[31].mxu0 }
 0x192   :  { %v982_v21 = vpop.f32.mrb[31].mxu1  ;;  %v1610_v14 = vpop.permute.xlu0 %1609 }
 0x196   :  { %v1018_v22 = vpop.f32.mrb[32].mxu0 }
 0x197   :  { %v1059_v23 = vpop.f32.mrb[32].mxu1  ;;  %v1068_v24 = vadd.f32 %v1018_v22, %v890_v60  ;;  %v1020_v7 = vpop.f32.mrb[33].mxu0 }
 0x198   :  { %v1070_v25 = vadd.f32 %v1059_v23, %v892_v12  ;;  %v1061_v26 = vpop.f32.mrb[33].mxu1  ;;  %v1069_v27 = vadd.f32 %v1020_v7, %v891_v3  ;;  %v1022_v29 = vpop.f32.mrb[34].mxu0  ;;  %v31_v12 = vld [vmem:[%s8821_s5] sm:$0x3f] }
 0x199   :  { %v1071_v28 = vadd.f32 %v1061_v26, %v893_v18  ;;  %v1063_v30 = vpop.f32.mrb[34].mxu1  ;;  %v1023_v31 = vpop.f32.mrb[35].mxu0  ;;  %v7718_v20 = vrot.slane %v31_v12, %v1621_v4  ;;  %v7720_v21 = vrot.slane %v31_v12, %v1629_v0  ;;  %v1633_v26 = vsub.s32 3, %v1620_v62 }
 0x19a   :  { %v1064_v32 = vpop.f32.mrb[35].mxu1 }
 0x19e   :  { %v1155_v1 = vpop.f32.mrb[36].mxu0 }
 0x19f   :  { %v1196_v33 = vpop.f32.mrb[36].mxu1  ;;  %v1244_v34 = vadd.f32 %v1155_v1, %v1066_v13  ;;  %v1157_v36 = vpop.f32.mrb[37].mxu0  ;;  %v1625_v13 = vsub.s32 1, %v1620_v62 }
 0x1a0   :  { %v1246_v35 = vadd.f32 %v1196_v33, %v1068_v24  ;;  %v1198_v37 = vpop.f32.mrb[37].mxu1  ;;  %v1245_v38 = vadd.f32 %v1157_v36, %v1067_v2  ;;  %v1159_v40 = vpop.f32.mrb[38].mxu0  ;;  %v1637_v33 = vsub.s32 4, %v1620_v62  ;;  %v7727_v36 = vrot.slane %v31_v12, %v1633_v26 }
 0x1a1   :  { %v1247_v39 = vadd.f32 %v1198_v37, %v1069_v27  ;;  %v1200_v41 = vpop.f32.mrb[38].mxu1  ;;  %v1160_v42 = vpop.f32.mrb[39].mxu0  ;;  %v7722_v24 = vrot.slane %v31_v12, %v1625_v13 }
 0x1a2   :  { %v1201_v43 = vpop.f32.mrb[39].mxu1 }
 0x1a3   :  { %v7735_v43 = vrot.slane %v31_v12, %v1637_v33 }
 0x1a6   :  { %v1237_v44 = vpop.f32.mrb[40].mxu0 }
 0x1a7   :  { %v1333_v45 = vpop.f32.mrb[40].mxu1  ;;  %v1248_v46 = vadd.f32 %v1237_v44, %v1070_v25  ;;  %v1239_v48 = vpop.f32.mrb[41].mxu0 }
 0x1a8   :  { %v1422_v47 = vadd.f32 %v1333_v45, %v1244_v34  ;;  %v1335_v49 = vpop.f32.mrb[41].mxu1  ;;  %v1249_v50 = vadd.f32 %v1239_v48, %v1071_v28  ;;  %v1241_v52 = vpop.f32.mrb[42].mxu0 }
 0x1a9   :  { %v1423_v51 = vadd.f32 %v1335_v49, %v1245_v38  ;;  %v1337_v53 = vpop.f32.mrb[42].mxu1  ;;  %v1242_v54 = vpop.f32.mrb[43].mxu0 }
 0x1aa   :  { %v1338_v55 = vpop.f32.mrb[43].mxu1 }
 0x1ae   :  { %v1374_v56 = vpop.f32.mrb[44].mxu0 }
 0x1af   :  { %v1415_v57 = vpop.f32.mrb[44].mxu1  ;;  %v1424_v58 = vadd.f32 %v1374_v56, %v1246_v35  ;;  %v1376_v60 = vpop.f32.mrb[45].mxu0  ;;  %v1641_v35 = vsub.s32 5, %v1620_v62 }
 0x1b0   :  { %v1426_v59 = vadd.f32 %v1415_v57, %v1248_v46  ;;  %v1417_v61 = vpop.f32.mrb[45].mxu1  ;;  %v1425_v63 = vadd.f32 %v1376_v60, %v1247_v39  ;;  %v1378_v5 = vpop.f32.mrb[46].mxu0 }
 0x1b1   :  { %v1427_v3 = vadd.f32 %v1417_v61, %v1249_v50  ;;  %v1419_v9 = vpop.f32.mrb[46].mxu1  ;;  %v1379_v10 = vpop.f32.mrb[47].mxu0  ;;  %v7737_v46 = vrot.slane %v31_v12, %v1641_v35  ;;  %v6779_v5 = vld [vmem:[%s8818_s2 + $0x8] sm:$0xff] }
 0x1b2   :  { %v1420_v11 = vpop.f32.mrb[47].mxu1 }
 0x1b6   :  { %v1511_v15 = vpop.f32.mrb[48].mxu0 }
 0x1b7   :  { %v1552_v18 = vpop.f32.mrb[48].mxu1  ;;  %v1600_v2 = vadd.f32 %v1511_v15, %v1422_v47  ;;  %v1513_v6 = vpop.f32.mrb[49].mxu0  ;;  %v6717_v15 = vld [vmem:[%s8817_s1 + $0x50] sm:$0xff] }
 0x1b8   :  { %v1602_v19 = vadd.f32 %v1552_v18, %v1424_v58  ;;  %v1554_v16 = vpop.f32.mrb[49].mxu1  ;;  %v1601_v22 = vadd.f32 %v1513_v6, %v1423_v51  ;;  %v1515_v25 = vpop.f32.mrb[50].mxu0 }
 0x1b9   :  { %v1603_v23 = vadd.f32 %v1554_v16, %v1425_v63  ;;  %v1556_v7 = vpop.f32.mrb[50].mxu1  ;;  %v1612_v27 = vadd.f32 %v1610_v14, %v1600_v2  ;;  %v1516_v29 = vpop.f32.mrb[51].mxu0 }
 0x1ba   :  { %v1614_v28 = vadd.f32 %v1610_v14, %v1602_v19  ;;  %v1557_v30 = vpop.f32.mrb[51].mxu1  ;;  %v1613_v31 = vadd.f32 %v1610_v14, %v1601_v22 }
 0x1bb   :  { %v1649_v32 = vmul.f32 %v7718_v20, %v1612_v27  ;;  %v1615_v37 = vadd.f32 %v1610_v14, %v1603_v23  ;;  %v1708_v23 = vpack.c.bf16 %v6717_v15, %v6717_v15 }
 0x1bc   :  { %v1651_v1 = vmul.f32 %v7720_v21, %v1614_v28  ;;  %v1650_v34 = vmul.f32 %v7722_v24, %v1613_v31 }
 0x1bd   :  { %v7729_v38 = vmax.f32 %v1649_v32, 0.0  ;;  %v1652_v50 = vmul.f32 %v7727_v36, %v1615_v37 }
 0x1be   :  { %v7731_v39 = vmax.f32 %v1651_v1, 0.0  ;;  %v7733_v40 = vmax.f32 %v1650_v34, 0.0  ;;  %v1593_v41 = vpop.f32.mrb[52].mxu0 }
 0x1bf   :  { %v1604_v42 = vadd.f32 %v1593_v41, %v1426_v59  ;;  %v1595_v44 = vpop.f32.mrb[53].mxu0  ;;  %v7747_v56 = vmax.f32 %v1652_v50, 0.0 }
 0x1c0   :  { %v1605_v45 = vadd.f32 %v1595_v44, %v1427_v3  ;;  %v1597_v47 = vpop.f32.mrb[54].mxu0  ;;  %v7011_v48 = vpack.i.bf16 %v7733_v40, %v7729_v38  ;;  %v7021_v49 = vpack.i.bf16 %v7731_v39, %v7733_v40 }
 0x1c1   :  { %v1616_v51 = vadd.f32 %v1610_v14, %v1604_v42  ;;  %v1598_v52 = vpop.f32.mrb[55].mxu0  ;;  %v7026_v63 = vpack.i.bf16 %v7729_v38, %v7747_v56  ;;  %v7051_v3 = vpack.i.bf16 %v7747_v56, %v7731_v39 }
 0x1c2   :  { %v1617_v53 = vadd.f32 %v1610_v14, %v1605_v45  ;;  %7012 = vrot.lane.b32.xlu1 %v7011_v48, %s7306_s29 }
 0x1c3   :  { %v1653_v54 = vmul.f32 %v7735_v43, %v1616_v51 }
 0x1c4   :  { %v1654_v55 = vmul.f32 %v7737_v46, %v1617_v53 }
 0x1c5   :  { %v7749_v57 = vmax.f32 %v1653_v54, 0.0 }
 0x1c6   :  { %v7751_v58 = vmax.f32 %v1654_v55, 0.0 }
 0x1c7   :  { %v7016_v59 = vpack.i.bf16 %v7749_v57, %v7747_v56  ;;  %v7056_v60 = vpack.i.bf16 %v7729_v38, %v7749_v57 }
 0x1c8   :  { %1698 = vrot.lane.b32.xlu1 %v7751_v58, %s7306_s29  ;;  %v7046_v61 = vpack.i.bf16 %v7751_v58, %v7729_v38  ;;  %v7066_v62 = vpack.i.bf16 %v7751_v58, %v7749_v57 }
 0x1c9   :  { %7017 = vrot.lane.b32.xlu0 %v7016_v59, %s7306_s29 }
 0x1cc   :  { %1692 = vrot.lane.b32.xlu1 %v7731_v39, %s7306_s29 }
 0x1cd   :  { %7022 = vrot.lane.b32.xlu0 %v7021_v49, %s7308_s10 }
 0x1d0   :  { %7027 = vrot.lane.b32.xlu1 %v7026_v63, %s7308_s10 }
 0x1d1   :  { %1671 = vrot.lane.b32.xlu0 %v7751_v58, %s7308_s10 }
 0x1d4   :  { %7032 = vrot.lane.b32.xlu1 %v7011_v48, %s7309_s11 }
 0x1d5   :  { %2013 = vrot.lane.b32.xlu0 %v7751_v58, %s7309_s11 }
 0x1d8   :  { %1669 = vrot.lane.b32.xlu1 %v7749_v57, %s7308_s10 }
 0x1d9   :  { %7037 = vrot.lane.b32.xlu0 %v7016_v59, %s7309_s11 }
 0x1dc   :  { %2007 = vrot.lane.b32.xlu1 %v7731_v39, %s7309_s11 }
 0x1dd   :  { %7042 = vrot.lane.b32.xlu0 %v7021_v49, %s7310_s12 }
 0x1e0   :  { %2186 = vrot.lane.b32.xlu1 %v7747_v56, %s7310_s12 }
 0x1e1   :  { %7047 = vrot.lane.b32.xlu0 %v7046_v61, %s7310_s12 }
 0x1e4   :  { %2188 = vrot.lane.b32.xlu1 %v7749_v57, %s7310_s12 }
 0x1e5   :  { %7052 = vrot.lane.b32.xlu0 %v7051_v3, %s7311_s13 }
 0x1e8   :  { %7057 = vrot.lane.b32.xlu1 %v7056_v60, %s7311_s13 }
 0x1e9   :  { %2518 = vrot.lane.b32.xlu0 %v7733_v40, %s7311_s13 }
 0x1ec   :  { %7062 = vrot.lane.b32.xlu1 %v7011_v48, %s7312_s14 }
 0x1ed   :  { %2697 = vrot.lane.b32.xlu0 %v7731_v39, %s7312_s14 }
 0x1f0   :  { %2526 = vrot.lane.b32.xlu1 %v7751_v58, %s7311_s13 }
 0x1f1   :  { %7067 = vrot.lane.b32.xlu0 %v7066_v62, %s7312_s14 }
 0x1f4   :  { %2699 = vrot.lane.b32.xlu1 %v7747_v56, %s7312_s14 }
 0x1f5   :  { %7072 = vrot.lane.b32.xlu0 %v7051_v3, %s7313_s15 }
 0x1f8   :  { %7077 = vrot.lane.b32.xlu1 %v7056_v60, %s7313_s15  ;;  %v6716_v60 = vld [vmem:[%s8817_s1 + $0x48] sm:$0xff] }
 0x1f9   :  { %2872 = vrot.lane.b32.xlu0 %v7733_v40, %s7313_s15 }
 0x1fc   :  { %7082 = vrot.lane.b32.xlu1 %v7011_v48, %s7314_s16 }
 0x1fd   :  { %3051 = vrot.lane.b32.xlu0 %v7731_v39, %s7314_s16 }
 0x200   :  { %2880 = vrot.lane.b32.xlu1 %v7751_v58, %s7313_s15 }
 0x201   :  { %7087 = vrot.lane.b32.xlu0 %v7066_v62, %s7314_s16 }
 0x204   :  { %3053 = vrot.lane.b32.xlu1 %v7747_v56, %s7314_s16 }
 0x205   :  { %3228 = vperm.xlu0 %7010, %v6779_v5  }
 0x234   :  { %v7013_v9 = vpop.permute.xlu1 %7012 }
 0x235   :  { %v7015_v10 = vunpack.i.h.bf16 %v7013_v9  ;;  %v7014_v11 = vunpack.i.l.bf16 %v7013_v9  ;;  %v1681_v9 = vpack.c.bf16 %v6716_v60, %v6716_v60 }
 0x237   :  { %v1704_v4 = vsel %vm73_vm0, %v7014_v11, %v7015_v10 }
 0x238   :  { %v1710_v0 = vpack.c.bf16 %v1704_v4, %v1704_v4 }
 0x23a   :  { %6718 = vmatprep.subr.msk.bf16.mxu1 %vm93_vm1, %v1710_v0  ;;  %v1699_v12 = vpop.permute.xlu1 %1698 }
 0x23b   :  { %v1705_v13 = vsel %vm73_vm0, %v1699_v12, %v7014_v11  ;;  %v7018_v14 = vpop.permute.xlu0 %7017 }
 0x23c   :  { %v1709_v18 = vpack.c.bf16 %v1705_v13, %v1705_v13  ;;  %v7020_v2 = vunpack.i.h.bf16 %v7018_v14  ;;  %v7019_v19 = vunpack.i.l.bf16 %v7018_v14 }
 0x23e   :  { %v1700_v6 = vsel %vm73_vm0, %v7020_v2, %v1699_v12  ;;  %v1693_v16 = vpop.permute.xlu1 %1692  ;;  %v1719_v22 = vsel %vm93_vm1, %v1709_v18, 0  ;;  %v1701_v25 = vsel %vm73_vm0, %v7019_v19, %v7020_v2 }
 0x23f   :  { %v1714_v7 = vpack.c.bf16 %v1700_v6, %v1700_v6  ;;  %v1702_v26 = vsel %vm73_vm0, %v1693_v16, %v7019_v19  ;;  %v1703_v27 = vsel %vm73_vm0, %v7015_v10, %v1693_v16  ;;  %v7023_v28 = vpop.permute.xlu0 %7022  ;;  %1737 = vmatpush1.bf16.msra.mxu1 %v1719_v22  ;;  %v1713_v29 = vpack.c.bf16 %v1701_v25, %v1701_v25 }
 0x240   :  { %v1711_v30 = vpack.c.bf16 %v1703_v27, %v1703_v27  ;;  %v1712_v31 = vpack.c.bf16 %v1702_v26, %v1702_v26  ;;  %v7025_v32 = vunpack.i.h.bf16 %v7023_v28  ;;  %v7024_v1 = vunpack.i.l.bf16 %v7023_v28 }
 0x241   :  { %6722 = vmatprep.subr.msk.bf16.mxu1 %vm93_vm1, %v1714_v7  ;;  %v1731_v33 = vsel %vm93_vm1, %v1713_v29, 0 }
 0x242   :  { %6719 = vmatmul.mubr.msk.bf16.vlgmr.msra.gmra.mrb[52].mxu1 %vm89_vm3, %v1708_v23  ;;  %6720 = vmatprep.subr.msk.bf16.mxu0 %vm93_vm1, %v1712_v31  ;;  %v7028_v34 = vpop.permute.xlu1 %7027  ;;  %v1725_v35 = vsel %vm93_vm1, %v1711_v30, 0  ;;  %v1676_v44 = vsel %vm46_vm2, %v7024_v1, %v7025_v32  ;;  %v6730_v31 = vld [vmem:[%s8817_s1 + $0x58] sm:$0xff] }
 0x243   :  { %v7030_v37 = vunpack.i.h.bf16 %v7028_v34  ;;  %v7029_v41 = vunpack.i.l.bf16 %v7028_v34  ;;  %v1672_v42 = vpop.permute.xlu0 %1671  ;;  %1778 = vmatpush1.bf16.msra.mxu0 %v1725_v35  ;;  %1819 = vmatpush1.bf16.msra.mxu1 %v1731_v33  ;;  %v1684_v53 = vpack.c.bf16 %v1676_v44, %v1676_v44 }
 0x244   :  { %1850 = vmatprep.mubr.bf16.mxu1 %v7307_v8 }
 0x245   :  { %v1677_v45 = vsel %vm46_vm2, %v7030_v37, %v7024_v1  ;;  %v1675_v47 = vsel %vm46_vm2, %v7025_v32, %v7029_v41  ;;  %v1678_v48 = vsel %vm46_vm2, %v1672_v42, %v7030_v37  ;;  %v1869_v5 = vsel %vm93_vm1, %v1684_v53, 0 }
 0x246   :  { %v1683_v49 = vpack.c.bf16 %v1677_v45, %v1677_v45  ;;  %v1685_v50 = vpack.c.bf16 %v1675_v47, %v1675_v47  ;;  %v1682_v51 = vpack.c.bf16 %v1678_v48, %v1678_v48  ;;  %6721 = vmatmul.mubr.msk.bf16.vlgmr.msra.gmra.mrb[56].mxu0 %vm89_vm3, %v1708_v23  ;;  %v7033_v52 = vpop.permute.xlu1 %7032 }
 0x247   :  { %v7035_v54 = vunpack.i.h.bf16 %v7033_v52  ;;  %v7034_v55 = vunpack.i.l.bf16 %v7033_v52  ;;  %v2014_v59 = vpop.permute.xlu0 %2013  ;;  %1912 = vmatprep.mubr.bf16.mxu0 %v7307_v8 }
 0x248   :  { %6724 = vmatprep.subr.msk.bf16.mxu0 %vm93_vm1, %v1683_v49  ;;  %6726 = vmatprep.subr.msk.bf16.mxu1 %vm93_vm1, %v1685_v50  ;;  %v1863_v61 = vsel %vm93_vm1, %v1682_v51, 0 }
 0x249   :  { %v2019_v62 = vsel %vm391_vm4, %v7034_v55, %v7035_v54  ;;  %1881 = vmatpush1.bf16.msra.mxu0 %v1863_v61  ;;  %v2020_v10 = vsel %vm391_vm4, %v2014_v59, %v7034_v55  ;;  %v6737_v61 = vld [vmem:[%s8817_s1 + $0x60] sm:$0xff] }
 0x24a   :  { %v2025_v63 = vpack.c.bf16 %v2019_v62, %v2019_v62  ;;  %6723 = vmatmul.mubr.msk.bf16.vlgmr.msra.gmra.mrb[56].mxu1 %vm89_vm3, %v1708_v23  ;;  %v1670_v3 = vpop.permute.xlu1 %1669  ;;  %v2024_v18 = vpack.c.bf16 %v2020_v10, %v2020_v10 }
 0x24b   :  { %v1673_v11 = vsel %vm46_vm2, %v1670_v3, %v1672_v42  ;;  %v1674_v4 = vsel %vm46_vm2, %v7029_v41, %v1670_v3  ;;  %1922 = vmatpush1.bf16.msra.mxu1 %v1869_v5  ;;  %v7038_v0 = vpop.permute.xlu0 %7037  ;;  %1953 = vmatprep.mubr.bf16.mxu1 %v7307_v8  ;;  %v2023_v41 = vpack.c.bf16 %v6730_v31, %v6730_v31 }
 0x24c   :  { %v1686_v12 = vpack.c.bf16 %v1674_v4, %v1674_v4  ;;  %v1687_v13 = vpack.c.bf16 %v1673_v11, %v1673_v11  ;;  %v7040_v14 = vunpack.i.h.bf16 %v7038_v0  ;;  %v7039_v15 = vunpack.i.l.bf16 %v7038_v0  ;;  %6731 = vmatprep.subr.msk.bf16.mxu1 %vm93_vm1, %v2025_v63 }
 0x24d   :  { %v2034_v28 = vsel %vm93_vm1, %v2024_v18, 0  ;;  %v2361_v5 = vpack.c.bf16 %v7733_v40, %v7733_v40  ;;  %v2363_v4 = vpack.c.bf16 %v7747_v56, %v7747_v56  ;;  %v2360_v0 = vpack.c.bf16 %v7729_v38, %v7729_v38 }
 0x24e   :  { %v2008_v2 = vpop.permute.xlu1 %2007  ;;  %6725 = vmatmul.mubr.msk.bf16.vlgmr.msra.gmra.mrb[60].mxu0 %vm89_vm3, %v1681_v9  ;;  %6728 = vmatprep.subr.msk.bf16.mxu0 %vm93_vm1, %v1687_v13  ;;  %v1875_v19 = vsel %vm93_vm1, %v1686_v12, 0  ;;  %v2015_v6 = vsel %vm391_vm4, %v7040_v14, %v2014_v59  ;;  %v2016_v32 = vsel %vm391_vm4, %v7039_v15, %v7040_v14  ;;  %v2362_v56 = vpack.c.bf16 %v7731_v39, %v7731_v39 }
 0x24f   :  { %v2017_v16 = vsel %vm391_vm4, %v2008_v2, %v7039_v15  ;;  %v2018_v22 = vsel %vm391_vm4, %v7035_v54, %v2008_v2  ;;  %v7043_v23 = vpop.permute.xlu0 %7042  ;;  %1963 = vmatpush1.bf16.msra.mxu0 %v1875_v19  ;;  %1994 = vmatprep.mubr.bf16.mxu0 %v7307_v8  ;;  %v2029_v7 = vpack.c.bf16 %v2015_v6, %v2015_v6  ;;  %v2370_v14 = vsel %vm93_vm1, %v2360_v0, 0  ;;  %v6744_v19 = vld [vmem:[%s8817_s1 + $0x68] sm:$0xff] }
 0x250   :  { %v2027_v25 = vpack.c.bf16 %v2017_v16, %v2017_v16  ;;  %v2026_v26 = vpack.c.bf16 %v2018_v22, %v2018_v22  ;;  %v7045_v29 = vunpack.i.h.bf16 %v7043_v23  ;;  %v7044_v1 = vunpack.i.l.bf16 %v7043_v23 }
 0x251   :  { %v2028_v42 = vpack.c.bf16 %v2016_v32, %v2016_v32  ;;  %v2365_v15 = vpack.c.bf16 %v7751_v58, %v7751_v58  ;;  %v2376_v39 = vsel %vm93_vm1, %v2362_v56, 0  ;;  %v2359_v22 = vpack.c.bf16 %v6744_v19, %v6744_v19 }
 0x252   :  { %v2187_v27 = vpop.permute.xlu1 %2186  ;;  %6727 = vmatmul.mubr.msk.bf16.vlgmr.msra.gmra.mrb[60].mxu1 %vm89_vm3, %v1681_v9  ;;  %6733 = vmatprep.subr.msk.bf16.mxu0 %vm93_vm1, %v2027_v25  ;;  %v2040_v37 = vsel %vm93_vm1, %v2026_v26, 0  ;;  %v2195_v53 = vsel %vm569_vm5, %v7044_v1, %v7045_v29  ;;  %v2364_v23 = vpack.c.bf16 %v7749_v57, %v7749_v57 }
 0x253   :  { %2052 = vmatpush1.bf16.msra.mxu1 %v2034_v28  ;;  %v7048_v30 = vpop.permute.xlu0 %7047  ;;  %2083 = vmatprep.mubr.bf16.mxu1 %v7307_v8  ;;  %v2194_v44 = vsel %vm569_vm5, %v7045_v29, %v2187_v27  ;;  %v2046_v50 = vsel %vm93_vm1, %v2028_v42, 0  ;;  %v2203_v59 = vpack.c.bf16 %v2195_v53, %v2195_v53 }
 0x254   :  { %v7050_v33 = vunpack.i.h.bf16 %v7048_v30  ;;  %v7049_v34 = vunpack.i.l.bf16 %v7048_v30  ;;  %6735 = vmatprep.subr.msk.bf16.mxu1 %vm93_vm1, %v2029_v7  ;;  %v2204_v49 = vpack.c.bf16 %v2194_v44, %v2194_v44  ;;  %v2382_v29 = vsel %vm93_vm1, %v2364_v23, 0 }
 0x255   :  { %v2217_v3 = vsel %vm93_vm1, %v2203_v59, 0 }
 0x256   :  { %v2196_v35 = vsel %vm569_vm5, %v7049_v34, %v7044_v1  ;;  %6729 = vmatmul.mubr.msk.bf16.vlgmr.msra.gmra.mrb[64].mxu0 %vm89_vm3, %v1681_v9  ;;  %v2197_v47 = vsel %vm569_vm5, %v7050_v33, %v7049_v34  ;;  %v2189_v48 = vpop.permute.xlu1 %2188  ;;  %v2200_v9 = vpack.c.bf16 %v6737_v61, %v6737_v61 }
 0x257   :  { %v2202_v45 = vpack.c.bf16 %v2196_v35, %v2196_v35  ;;  %2093 = vmatpush1.bf16.msra.mxu0 %v2040_v37  ;;  %2124 = vmatprep.mubr.bf16.mxu0 %v7307_v8  ;;  %v2201_v51 = vpack.c.bf16 %v2197_v47, %v2197_v47  ;;  %v2192_v52 = vsel %vm569_vm5, %v2189_v48, %v7050_v33  ;;  %v7053_v63 = vpop.permute.xlu0 %7052 }
 0x258   :  { %v2206_v54 = vpack.c.bf16 %v2192_v52, %v2192_v52  ;;  %v2193_v60 = vsel %vm569_vm5, %v2187_v27, %v2189_v48  ;;  %v7054_v12 = vunpack.i.l.bf16 %v7053_v63  ;;  %v7055_v6 = vunpack.i.h.bf16 %v7053_v63 }
 0x259   :  { %6738 = vmatprep.subr.msk.bf16.mxu0 %vm93_vm1, %v2202_v45  ;;  %v2211_v55 = vsel %vm93_vm1, %v2201_v51, 0  ;;  %v2205_v62 = vpack.c.bf16 %v2193_v60, %v2193_v60  ;;  %v6751_v45 = vld [vmem:[%s8817_s1 + $0x70] sm:$0xff] }
 0x25a   :  { %6732 = vmatmul.mubr.msk.bf16.vlgmr.msra.gmra.mrb[64].mxu1 %vm89_vm3, %v2023_v41  ;;  %v7058_v10 = vpop.permute.xlu1 %7057  ;;  %v2530_v31 = vsel %vm906_vm6, %v7054_v12, %v7055_v6  ;;  %v2536_v51 = vpack.c.bf16 %v6751_v45, %v6751_v45 }
 0x25b   :  { %2134 = vmatpush1.bf16.msra.mxu1 %v2046_v50  ;;  %2165 = vmatprep.mubr.bf16.mxu1 %v7307_v8  ;;  %v2223_v11 = vsel %vm93_vm1, %v2205_v62, 0  ;;  %v2519_v40 = vpop.permute.xlu0 %2518  ;;  %v7060_v38 = vunpack.i.h.bf16 %v7058_v10  ;;  %v7059_v18 = vunpack.i.l.bf16 %v7058_v10  ;;  %v2539_v35 = vpack.c.bf16 %v2530_v31, %v2530_v31 }
 0x25c   :  { %6740 = vmatprep.subr.msk.bf16.mxu1 %vm93_vm1, %v2204_v49  ;;  %v2531_v2 = vsel %vm906_vm6, %v2519_v40, %v7054_v12 }
 0x25d   :  { %v2538_v16 = vpack.c.bf16 %v2531_v2, %v2531_v2  ;;  %v2529_v25 = vsel %vm906_vm6, %v7055_v6, %v7059_v18  ;;  %v2532_v7 = vsel %vm906_vm6, %v7060_v38, %v2519_v40  ;;  %v2553_v50 = vsel %vm93_vm1, %v2539_v35, 0 }
 0x25e   :  { %6734 = vmatmul.mubr.msk.bf16.vlgmr.msra.gmra.mrb[68].mxu0 %vm89_vm3, %v2023_v41  ;;  %v7927_v13 = vpop.permute.xlu1 %7062  ;;  %v2540_v27 = vpack.c.bf16 %v2529_v25, %v2529_v25  ;;  %v2537_v28 = vpack.c.bf16 %v2532_v7, %v2532_v7 }
 0x25f   :  { %2229 = vmatpush1.bf16.msra.mxu0 %v2211_v55  ;;  %2260 = vmatprep.mubr.bf16.mxu0 %v7307_v8  ;;  %v2698_v58 = vpop.permute.xlu0 %2697  ;;  %v7065_v57 = vunpack.i.h.bf16 %v7927_v13  ;;  %v7064_v37 = vunpack.i.l.bf16 %v7927_v13  ;;  %v6758_v13 = vld [vmem:[%s8817_s1 + $0x78] sm:$0xff] }
 0x260   :  { %6742 = vmatprep.subr.msk.bf16.mxu0 %vm93_vm1, %v2206_v54  ;;  %v2547_v34 = vsel %vm93_vm1, %v2537_v28, 0  ;;  %v2713_v2 = vpack.c.bf16 %v6758_v13, %v6758_v13 }
 0x261   :  { %v2709_v54 = vsel %vm1084_vm7, %v7064_v37, %v7065_v57 }
 0x262   :  { %6736 = vmatmul.mubr.msk.bf16.vlgmr.msra.gmra.mrb[68].mxu1 %vm89_vm3, %v2023_v41  ;;  %v2527_v26 = vpop.permute.xlu1 %2526  ;;  %v2708_v41 = vsel %vm1084_vm7, %v7065_v57, %v2698_v58  ;;  %v2714_v61 = vpack.c.bf16 %v2709_v54, %v2709_v54 }
 0x263   :  { %2270 = vmatpush1.bf16.msra.mxu1 %v2217_v3  ;;  %2301 = vmatprep.mubr.bf16.mxu1 %v7307_v8  ;;  %v2533_v30 = vsel %vm906_vm6, %v2527_v26, %v7060_v38  ;;  %v7068_v32 = vpop.permute.xlu0 %7067  ;;  %v2528_v42 = vsel %vm906_vm6, %v7059_v18, %v2527_v26  ;;  %v2715_v47 = vpack.c.bf16 %v2708_v41, %v2708_v41 }
 0x264   :  { %6745 = vmatprep.subr.msk.bf16.mxu1 %vm93_vm1, %v2361_v5  ;;  %v2542_v1 = vpack.c.bf16 %v2533_v30, %v2533_v30  ;;  %v7069_v44 = vunpack.i.l.bf16 %v7068_v32  ;;  %v2541_v48 = vpack.c.bf16 %v2528_v42, %v2528_v42  ;;  %v7070_v52 = vunpack.i.h.bf16 %v7068_v32 }
 0x266   :  { %6739 = vmatmul.mubr.msk.bf16.vlgmr.msra.gmra.mrb[72].mxu0 %vm89_vm3, %v2200_v9  ;;  %v2700_v33 = vpop.permute.xlu1 %2699  ;;  %v2559_v60 = vsel %vm93_vm1, %v2541_v48, 0  ;;  %v2710_v62 = vsel %vm1084_vm7, %v7070_v52, %v7064_v37 }
 0x267   :  { %2311 = vmatpush1.bf16.msra.mxu0 %v2223_v11  ;;  %2342 = vmatprep.mubr.bf16.mxu0 %v7307_v8  ;;  %v7073_v49 = vpop.permute.xlu0 %7072  ;;  %v2706_v53 = vsel %vm1084_vm7, %v2700_v33, %v7069_v44  ;;  %v2707_v63 = vsel %vm1084_vm7, %v2698_v58, %v2700_v33  ;;  %v6765_v33 = vld [vmem:[%s8817_s1 + $0x80] sm:$0xff] }
 0x268   :  { %6747 = vmatprep.subr.msk.bf16.mxu0 %vm93_vm1, %v2363_v4  ;;  %v2717_v59 = vpack.c.bf16 %v2706_v53, %v2706_v53  ;;  %v7074_v5 = vunpack.i.l.bf16 %v7073_v49  ;;  %v2716_v10 = vpack.c.bf16 %v2707_v63, %v2707_v63  ;;  %v2724_v4 = vsel %vm93_vm1, %v2714_v61, 0 }
 0x269   :  { %v2890_v42 = vpack.c.bf16 %v6765_v33, %v6765_v33 }
 0x26a   :  { %6741 = vmatmul.mubr.msk.bf16.vlgmr.msra.gmra.mrb[72].mxu1 %vm89_vm3, %v2200_v9  ;;  %v7078_v55 = vpop.permute.xlu1 %7077  ;;  %v2730_v18 = vsel %vm93_vm1, %v2716_v10, 0 }
 0x26b   :  { %2388 = vmatpush1.bf16.msra.mxu1 %v2370_v14  ;;  %2419 = vmatprep.mubr.bf16.mxu1 %v7307_v8  ;;  %v2873_v3 = vpop.permute.xlu0 %2872  ;;  %v7080_v0 = vunpack.i.h.bf16 %v7078_v55  ;;  %v7079_v40 = vunpack.i.l.bf16 %v7078_v55  ;;  %v2705_v14 = vsel %vm1084_vm7, %v7069_v44, %v7070_v52 }
 0x26c   :  { %6749 = vmatprep.subr.msk.bf16.mxu1 %vm93_vm1, %v2365_v15  ;;  %v2885_v12 = vsel %vm1262_vm8, %v2873_v3, %v7074_v5  ;;  %v7075_v15 = vunpack.i.h.bf16 %v7073_v49  ;;  %v2718_v19 = vpack.c.bf16 %v2705_v14, %v2705_v14 }
 0x26d   :  { %v2892_v56 = vpack.c.bf16 %v2885_v12, %v2885_v12 }
 0x26e   :  { %6743 = vmatmul.mubr.msk.bf16.vlgmr.msra.gmra.mrb[76].mxu0 %vm89_vm3, %v2200_v9  ;;  %v2719_v9 = vpack.c.bf16 %v2710_v62, %v2710_v62  ;;  %v7989_v11 = vpop.permute.xlu1 %7082  ;;  %v2883_v6 = vsel %vm1262_vm8, %v7075_v15, %v7079_v40  ;;  %v2736_v23 = vsel %vm93_vm1, %v2718_v19, 0  ;;  %v2884_v26 = vsel %vm1262_vm8, %v7074_v5, %v7075_v15 }
 0x26f   :  { %2429 = vmatpush1.bf16.msra.mxu0 %v2376_v39  ;;  %2460 = vmatprep.mubr.bf16.mxu0 %v7307_v8  ;;  %v3052_v38 = vpop.permute.xlu0 %3051  ;;  %v2894_v39 = vpack.c.bf16 %v2883_v6, %v2883_v6  ;;  %v7085_v25 = vunpack.i.h.bf16 %v7989_v11  ;;  %v2893_v57 = vpack.c.bf16 %v2884_v26, %v2884_v26  ;;  %v7084_v30 = vunpack.i.l.bf16 %v7989_v11 }
 0x270   :  { %6752 = vmatprep.subr.msk.bf16.mxu0 %vm93_vm1, %v2538_v16  ;;  %v2886_v16 = vsel %vm1262_vm8, %v7080_v0, %v2873_v3 }
 0x271   :  { %v3062_v31 = vsel %vm1440_vm9, %v7085_v25, %v3052_v38  ;;  %v2907_v41 = vsel %vm93_vm1, %v2893_v57, 0 }
 0x272   :  { %6746 = vmatmul.mubr.msk.bf16.vlgmr.msra.gmra.mrb[76].mxu1 %vm89_vm3, %v2359_v22  ;;  %v2881_v58 = vpop.permute.xlu1 %2880  ;;  %v3069_v35 = vpack.c.bf16 %v3062_v31, %v3062_v31 }
 0x273   :  { %2470 = vmatpush1.bf16.msra.mxu1 %v2382_v29  ;;  %2501 = vmatprep.mubr.bf16.mxu1 %v7307_v8  ;;  %v2887_v7 = vsel %vm1262_vm8, %v2881_v58, %v7080_v0  ;;  %v2882_v32 = vsel %vm1262_vm8, %v7079_v40, %v2881_v58 }
 0x274   :  { %6754 = vmatprep.subr.msk.bf16.mxu1 %vm93_vm1, %v2540_v27  ;;  %v7088_v27 = vpop.permute.xlu0 %7087  ;;  %v2896_v28 = vpack.c.bf16 %v2887_v7, %v2887_v7  ;;  %v2895_v37 = vpack.c.bf16 %v2882_v32, %v2882_v32 }
 0x275   :  { %v7090_v44 = vunpack.i.h.bf16 %v7088_v27 }
 0x276   :  { %6748 = vmatmul.mubr.msk.bf16.vlgmr.msra.gmra.mrb[80].mxu0 %vm89_vm3, %v2359_v22  ;;  %v2913_v49 = vsel %vm93_vm1, %v2895_v37, 0 }
 0x277   :  { %2565 = vmatpush1.bf16.msra.mxu0 %v2547_v34  ;;  %2596 = vmatprep.mubr.bf16.mxu0 %v7307_v8  ;;  %v3054_v34 = vpop.permute.xlu1 %3053 }
 0x278   :  { %6756 = vmatprep.subr.msk.bf16.mxu0 %vm93_vm1, %v2542_v1  ;;  %v7089_v1 = vunpack.i.l.bf16 %v7088_v27  ;;  %v3061_v52 = vsel %vm1440_vm9, %v3052_v38, %v3054_v34 }
 0x279   :  { %v3070_v54 = vpack.c.bf16 %v3061_v52, %v3061_v52 }
 0x27a   :  { %6750 = vmatmul.mubr.msk.bf16.vlgmr.msra.gmra.mrb[80].mxu1 %vm89_vm3, %v2359_v22  ;;  %v2891_v22 = vpack.c.bf16 %v2886_v16, %v2886_v16  ;;  %v3060_v45 = vsel %vm1440_vm9, %v3054_v34, %v7089_v1 }
 0x27b   :  { %2606 = vmatpush1.bf16.msra.mxu1 %v2553_v50  ;;  %2637 = vmatprep.mubr.bf16.mxu1 %v7307_v8  ;;  %v3071_v48 = vpack.c.bf16 %v3060_v45, %v3060_v45  ;;  %v3084_v61 = vsel %vm93_vm1, %v3070_v54, 0 }
 0x27c   :  { %6759 = vmatprep.subr.msk.bf16.mxu1 %vm93_vm1, %v2715_v47  ;;  %v2901_v29 = vsel %vm93_vm1, %v2891_v22, 0  ;;  %v3063_v47 = vsel %vm1440_vm9, %v7084_v30, %v7085_v25 }
 0x27d   :  { %v3068_v50 = vpack.c.bf16 %v3063_v47, %v3063_v47 }
 0x27e   :  { %6753 = vmatmul.mubr.msk.bf16.vlgmr.msra.gmra.mrb[84].mxu0 %vm89_vm3, %v2536_v51 }
 0x27f   :  { %2647 = vmatpush1.bf16.msra.mxu0 %v2559_v60  ;;  %2678 = vmatprep.mubr.bf16.mxu0 %v7307_v8  ;;  %v3078_v55 = vsel %vm93_vm1, %v3068_v50, 0  ;;  %v3059_v60 = vsel %vm1440_vm9, %v7089_v1, %v7090_v44 }
 0x280   :  { %6761 = vmatprep.subr.msk.bf16.mxu0 %vm93_vm1, %v2717_v59  ;;  %v6772_v59 = vld [vmem:[%s8817_s1 + $0x88] sm:$0xff]  ;;  %v3072_v63 = vpack.c.bf16 %v3059_v60, %v3059_v60 }
 0x281   :  { %v3067_v62 = vpack.c.bf16 %v6772_v59, %v6772_v59 }
 0x282   :  { %6755 = vmatmul.mubr.msk.bf16.vlgmr.msra.gmra.mrb[84].mxu1 %vm89_vm3, %v2536_v51  ;;  %v3090_v3 = vsel %vm93_vm1, %v3072_v63, 0 }
 0x283   :  { %2742 = vmatpush1.bf16.msra.mxu1 %v2724_v4  ;;  %2773 = vmatprep.mubr.bf16.mxu1 %v7307_v8 }
 0x284   :  { %6763 = vmatprep.subr.msk.bf16.mxu1 %vm93_vm1, %v2719_v9 }
 0x286   :  { %6757 = vmatmul.mubr.msk.bf16.vlgmr.msra.gmra.mrb[88].mxu0 %vm89_vm3, %v2536_v51  ;;  %v3064_v51 = vsel %vm1440_vm9, %v7090_v44, %v7084_v30 }
 0x287   :  { %2783 = vmatpush1.bf16.msra.mxu0 %v2730_v18  ;;  %2814 = vmatprep.mubr.bf16.mxu0 %v7307_v8  ;;  %v3073_v53 = vpack.c.bf16 %v3064_v51, %v3064_v51 }
 0x288   :  { %6766 = vmatprep.subr.msk.bf16.mxu0 %vm93_vm1, %v2892_v56 }
 0x28a   :  { %6760 = vmatmul.mubr.msk.bf16.vlgmr.msra.gmra.mrb[88].mxu1 %vm89_vm3, %v2713_v2 }
 0x28b   :  { %2824 = vmatpush1.bf16.msra.mxu1 %v2736_v23  ;;  %2855 = vmatprep.mubr.bf16.mxu1 %v7307_v8 }
 0x28c   :  { %6768 = vmatprep.subr.msk.bf16.mxu1 %vm93_vm1, %v2894_v39 }
 0x28e   :  { %6762 = vmatmul.mubr.msk.bf16.vlgmr.msra.gmra.mrb[92].mxu0 %vm89_vm3, %v2713_v2 }
 0x28f   :  { %2919 = vmatpush1.bf16.msra.mxu0 %v2901_v29  ;;  %2950 = vmatprep.mubr.bf16.mxu0 %v7307_v8 }
 0x290   :  { %6770 = vmatprep.subr.msk.bf16.mxu0 %vm93_vm1, %v2896_v28 }
 0x292   :  { %6764 = vmatmul.mubr.msk.bf16.vlgmr.msra.gmra.mrb[92].mxu1 %vm89_vm3, %v2713_v2 }
 0x293   :  { %2960 = vmatpush1.bf16.msra.mxu1 %v2907_v41  ;;  %2991 = vmatprep.mubr.bf16.mxu1 %v7307_v8 }
 0x294   :  { %6773 = vmatprep.subr.msk.bf16.mxu1 %vm93_vm1, %v3069_v35 }
 0x296   :  { %6767 = vmatmul.mubr.msk.bf16.vlgmr.msra.gmra.mrb[96].mxu0 %vm89_vm3, %v2890_v42 }
 0x297   :  { %3001 = vmatpush1.bf16.msra.mxu0 %v2913_v49  ;;  %3032 = vmatprep.mubr.bf16.mxu0 %v7307_v8 }
 0x298   :  { %6775 = vmatprep.subr.msk.bf16.mxu0 %vm93_vm1, %v3071_v48 }
 0x29a   :  { %6769 = vmatmul.mubr.msk.bf16.vlgmr.msra.gmra.mrb[96].mxu1 %vm89_vm3, %v2890_v42 }
 0x29b   :  { %3096 = vmatpush1.bf16.msra.mxu1 %v3078_v55  ;;  %3127 = vmatprep.mubr.bf16.mxu1 %v7307_v8 }
 0x29c   :  { %6777 = vmatprep.subr.msk.bf16.mxu1 %vm93_vm1, %v3073_v53 }
 0x29e   :  { %6771 = vmatmul.mubr.msk.bf16.vlgmr.msra.gmra.mrb[100].mxu0 %vm89_vm3, %v2890_v42 }
 0x29f   :  { %3137 = vmatpush1.bf16.msra.mxu0 %v3084_v61  ;;  %3168 = vmatprep.mubr.bf16.mxu0 %v7307_v8 }
 0x2a2   :  { %6774 = vmatmul.mubr.msk.bf16.vlgmr.msra.gmra.mrb[100].mxu1 %vm89_vm3, %v3067_v62 }
 0x2a3   :  { %3178 = vmatpush1.bf16.msra.mxu1 %v3090_v3  ;;  %3209 = vmatprep.mubr.bf16.mxu1 %v7307_v8 }
 0x2a6   :  { %6776 = vmatmul.mubr.msk.bf16.vlgmr.msra.gmra.mrb[104].mxu0 %vm89_vm3, %v3067_v62 }
 0x2a7   :  { %3356 = vmatprep.mubr.bf16.mxu0 %v7307_v8 }
 0x2aa   :  { %6778 = vmatmul.mubr.msk.bf16.vlgmr.msra.gmra.mrb[104].mxu1 %vm89_vm3, %v3067_v62 }
 0x2ab   :  { %3397 = vmatprep.mubr.bf16.mxu1 %v7307_v8 }
 0x315   :  { %v1770_v5 = vpop.f32.mrb[52].mxu1 }
 0x316   :  { %v1772_v9 = vpop.f32.mrb[53].mxu1 }
 0x317   :  { %v1774_v10 = vpop.f32.mrb[54].mxu1 }
 0x318   :  { %v1775_v11 = vpop.f32.mrb[55].mxu1 }
 0x319   :  { %v1811_v4 = vpop.f32.mrb[56].mxu0 }
 0x31a   :  { %v1813_v0 = vpop.f32.mrb[57].mxu0 }
 0x31b   :  { %v1815_v40 = vpop.f32.mrb[58].mxu0 }
 0x31c   :  { %v1816_v12 = vpop.f32.mrb[59].mxu0 }
 0x31d   :  { %v1852_v13 = vpop.f32.mrb[56].mxu1 }
 0x31e   :  { %v1854_v14 = vpop.f32.mrb[57].mxu1 }
 0x31f   :  { %v1856_v15 = vpop.f32.mrb[58].mxu1 }
 0x320   :  { %v1857_v56 = vpop.f32.mrb[59].mxu1 }
 0x321   :  { %v1914_v38 = vpop.f32.mrb[60].mxu0 }
 0x322   :  { %v1915_v18 = vadd.f32 %v1914_v38, %v1770_v5  ;;  %v1916_v2 = vpop.f32.mrb[61].mxu0 }
 0x323   :  { %v1917_v19 = vadd.f32 %v1916_v2, %v1772_v9  ;;  %v1918_v6 = vpop.f32.mrb[62].mxu0 }
 0x324   :  { %v1919_v16 = vpop.f32.mrb[63].mxu0 }
 0x325   :  { %v1955_v58 = vpop.f32.mrb[60].mxu1 }
 0x326   :  { %v1956_v39 = vadd.f32 %v1955_v58, %v1811_v4  ;;  %v1957_v22 = vpop.f32.mrb[61].mxu1 }
 0x327   :  { %v1958_v23 = vadd.f32 %v1957_v22, %v1813_v0  ;;  %v1959_v25 = vpop.f32.mrb[62].mxu1 }
 0x328   :  { %v1960_v7 = vpop.f32.mrb[63].mxu1 }
 0x329   :  { %v1996_v26 = vpop.f32.mrb[64].mxu0 }
 0x32a   :  { %v1997_v27 = vadd.f32 %v1996_v26, %v1852_v13  ;;  %v1998_v28 = vpop.f32.mrb[65].mxu0 }
 0x32b   :  { %v1999_v29 = vadd.f32 %v1998_v28, %v1854_v14  ;;  %v2000_v57 = vpop.f32.mrb[66].mxu0 }
 0x32c   :  { %v2001_v30 = vpop.f32.mrb[67].mxu0 }
 0x32d   :  { %v2085_v31 = vpop.f32.mrb[64].mxu1 }
 0x32e   :  { %v2174_v32 = vadd.f32 %v2085_v31, %v1915_v18  ;;  %v2087_v1 = vpop.f32.mrb[65].mxu1 }
 0x32f   :  { %v2175_v33 = vadd.f32 %v2087_v1, %v1917_v19  ;;  %v2089_v34 = vpop.f32.mrb[66].mxu1 }
 0x330   :  { %v2090_v35 = vpop.f32.mrb[67].mxu1 }
 0x331   :  { %v2126_v37 = vpop.f32.mrb[68].mxu0 }
 0x332   :  { %v2176_v41 = vadd.f32 %v2126_v37, %v1956_v39  ;;  %v2128_v42 = vpop.f32.mrb[69].mxu0 }
 0x333   :  { %v2177_v44 = vadd.f32 %v2128_v42, %v1958_v23  ;;  %v2130_v45 = vpop.f32.mrb[70].mxu0 }
 0x334   :  { %v2131_v47 = vpop.f32.mrb[71].mxu0 }
 0x335   :  { %v2167_v48 = vpop.f32.mrb[68].mxu1 }
 0x336   :  { %v2178_v49 = vadd.f32 %v2167_v48, %v1997_v27  ;;  %v2169_v50 = vpop.f32.mrb[69].mxu1 }
 0x337   :  { %v2179_v51 = vadd.f32 %v2169_v50, %v1999_v29  ;;  %v2171_v52 = vpop.f32.mrb[70].mxu1 }
 0x338   :  { %v2172_v53 = vpop.f32.mrb[71].mxu1 }
 0x339   :  { %v2262_v54 = vpop.f32.mrb[72].mxu0 }
 0x33a   :  { %v2351_v55 = vadd.f32 %v2262_v54, %v2174_v32  ;;  %v2264_v59 = vpop.f32.mrb[73].mxu0 }
 0x33b   :  { %v2352_v60 = vadd.f32 %v2264_v59, %v2175_v33  ;;  %v2266_v61 = vpop.f32.mrb[74].mxu0 }
 0x33c   :  { %v2267_v62 = vpop.f32.mrb[75].mxu0 }
 0x33d   :  { %v2303_v63 = vpop.f32.mrb[72].mxu1 }
 0x33e   :  { %v2353_v3 = vadd.f32 %v2303_v63, %v2176_v41  ;;  %v2305_v5 = vpop.f32.mrb[73].mxu1 }
 0x33f   :  { %v2354_v9 = vadd.f32 %v2305_v5, %v2177_v44  ;;  %v2307_v10 = vpop.f32.mrb[74].mxu1 }
 0x340   :  { %v2308_v11 = vpop.f32.mrb[75].mxu1 }
 0x341   :  { %v2344_v4 = vpop.f32.mrb[76].mxu0 }
 0x342   :  { %v2355_v0 = vadd.f32 %v2344_v4, %v2178_v49  ;;  %v2346_v40 = vpop.f32.mrb[77].mxu0 }
 0x343   :  { %v2356_v12 = vadd.f32 %v2346_v40, %v2179_v51  ;;  %v2348_v13 = vpop.f32.mrb[78].mxu0 }
 0x344   :  { %v2349_v14 = vpop.f32.mrb[79].mxu0 }
 0x345   :  { %v2421_v15 = vpop.f32.mrb[76].mxu1 }
 0x346   :  { %v2510_v56 = vadd.f32 %v2421_v15, %v2351_v55  ;;  %v2423_v38 = vpop.f32.mrb[77].mxu1 }
 0x347   :  { %v2511_v18 = vadd.f32 %v2423_v38, %v2352_v60  ;;  %v2425_v2 = vpop.f32.mrb[78].mxu1 }
 0x348   :  { %v2426_v19 = vpop.f32.mrb[79].mxu1 }
 0x349   :  { %v2462_v6 = vpop.f32.mrb[80].mxu0 }
 0x34a   :  { %v2512_v16 = vadd.f32 %v2462_v6, %v2353_v3  ;;  %v2464_v58 = vpop.f32.mrb[81].mxu0 }
 0x34b   :  { %v2513_v39 = vadd.f32 %v2464_v58, %v2354_v9  ;;  %v2466_v22 = vpop.f32.mrb[82].mxu0 }
 0x34c   :  { %v2467_v23 = vpop.f32.mrb[83].mxu0 }
 0x34d   :  { %v2503_v25 = vpop.f32.mrb[80].mxu1 }
 0x34e   :  { %v2514_v7 = vadd.f32 %v2503_v25, %v2355_v0  ;;  %v2505_v26 = vpop.f32.mrb[81].mxu1 }
 0x34f   :  { %v2515_v27 = vadd.f32 %v2505_v26, %v2356_v12  ;;  %v2507_v28 = vpop.f32.mrb[82].mxu1 }
 0x350   :  { %v2508_v29 = vpop.f32.mrb[83].mxu1 }
 0x351   :  { %v2598_v57 = vpop.f32.mrb[84].mxu0 }
 0x352   :  { %v2687_v30 = vadd.f32 %v2598_v57, %v2510_v56  ;;  %v2600_v31 = vpop.f32.mrb[85].mxu0 }
 0x353   :  { %v2688_v32 = vadd.f32 %v2600_v31, %v2511_v18  ;;  %v2602_v1 = vpop.f32.mrb[86].mxu0 }
 0x354   :  { %v2603_v33 = vpop.f32.mrb[87].mxu0 }
 0x355   :  { %v2639_v34 = vpop.f32.mrb[84].mxu1 }
 0x356   :  { %v2689_v35 = vadd.f32 %v2639_v34, %v2512_v16  ;;  %v2641_v37 = vpop.f32.mrb[85].mxu1 }
 0x357   :  { %v2690_v41 = vadd.f32 %v2641_v37, %v2513_v39  ;;  %v2643_v42 = vpop.f32.mrb[86].mxu1 }
 0x358   :  { %v2644_v44 = vpop.f32.mrb[87].mxu1 }
 0x359   :  { %v2680_v45 = vpop.f32.mrb[88].mxu0 }
 0x35a   :  { %v2691_v47 = vadd.f32 %v2680_v45, %v2514_v7  ;;  %v2682_v48 = vpop.f32.mrb[89].mxu0 }
 0x35b   :  { %v2692_v49 = vadd.f32 %v2682_v48, %v2515_v27  ;;  %v2684_v50 = vpop.f32.mrb[90].mxu0  ;;  %v7276_v48 = vld [vmem:[%s8816_s0] sm:$0xff] }
 0x35c   :  { %v2685_v51 = vpop.f32.mrb[91].mxu0 }
 0x35d   :  { %v2775_v52 = vpop.f32.mrb[88].mxu1  ;;  %v7277_v51 = vld [vmem:[%s8816_s0 + $0x8] sm:$0xff] }
 0x35e   :  { %v2864_v53 = vadd.f32 %v2775_v52, %v2687_v30  ;;  %v2777_v54 = vpop.f32.mrb[89].mxu1  ;;  %v3229_v30 = vpop.permute.xlu0 %3228 }
 0x35f   :  { %v2865_v55 = vadd.f32 %v2777_v54, %v2688_v32  ;;  %v2779_v59 = vpop.f32.mrb[90].mxu1 }
 0x360   :  { %v2780_v60 = vpop.f32.mrb[91].mxu1 }
 0x361   :  { %v2816_v61 = vpop.f32.mrb[92].mxu0 }
 0x362   :  { %v2866_v62 = vadd.f32 %v2816_v61, %v2689_v35  ;;  %v2818_v63 = vpop.f32.mrb[93].mxu0 }
 0x363   :  { %v2867_v3 = vadd.f32 %v2818_v63, %v2690_v41  ;;  %v2820_v5 = vpop.f32.mrb[94].mxu0 }
 0x364   :  { %v2821_v9 = vpop.f32.mrb[95].mxu0 }
 0x365   :  { %v2857_v10 = vpop.f32.mrb[92].mxu1 }
 0x366   :  { %v2868_v11 = vadd.f32 %v2857_v10, %v2691_v47  ;;  %v2859_v4 = vpop.f32.mrb[93].mxu1 }
 0x367   :  { %v2869_v0 = vadd.f32 %v2859_v4, %v2692_v49  ;;  %v2861_v40 = vpop.f32.mrb[94].mxu1 }
 0x368   :  { %v2862_v12 = vpop.f32.mrb[95].mxu1  ;;  %v7278_v40 = vld [vmem:[%s8816_s0 + $0x18] sm:$0xff] }
 0x369   :  { %v2952_v13 = vpop.f32.mrb[96].mxu0 }
 0x36a   :  { %v3041_v14 = vadd.f32 %v2952_v13, %v2864_v53  ;;  %v2954_v15 = vpop.f32.mrb[97].mxu0  ;;  %v7279_v13 = vld [vmem:[%s8816_s0 + $0x20] sm:$0xff] }
 0x36b   :  { %v3042_v56 = vadd.f32 %v2954_v15, %v2865_v55  ;;  %v2956_v38 = vpop.f32.mrb[98].mxu0  ;;  %v7280_v15 = vld [vmem:[%s8816_s0 + $0x28] sm:$0xff] }
 0x36c   :  { %v2957_v18 = vpop.f32.mrb[99].mxu0  ;;  %v7281_v38 = vld [vmem:[%s8816_s0 + $0x10] sm:$0xff] }
 0x36d   :  { %v2993_v2 = vpop.f32.mrb[96].mxu1 }
 0x36e   :  { %v3043_v19 = vadd.f32 %v2993_v2, %v2866_v62  ;;  %v2995_v6 = vpop.f32.mrb[97].mxu1 }
 0x36f   :  { %v3044_v16 = vadd.f32 %v2995_v6, %v2867_v3  ;;  %v2997_v58 = vpop.f32.mrb[98].mxu1 }
 0x370   :  { %v2998_v39 = vpop.f32.mrb[99].mxu1 }
 0x371   :  { %v3034_v22 = vpop.f32.mrb[100].mxu0 }
 0x372   :  { %v3045_v23 = vadd.f32 %v3034_v22, %v2868_v11  ;;  %v3036_v25 = vpop.f32.mrb[101].mxu0 }
 0x373   :  { %v3046_v7 = vadd.f32 %v3036_v25, %v2869_v0  ;;  %v3038_v26 = vpop.f32.mrb[102].mxu0 }
 0x374   :  { %v3039_v27 = vpop.f32.mrb[103].mxu0 }
 0x375   :  { %v3129_v28 = vpop.f32.mrb[100].mxu1 }
 0x376   :  { %v3218_v29 = vadd.f32 %v3129_v28, %v3041_v14  ;;  %v3131_v57 = vpop.f32.mrb[101].mxu1 }
 0x377   :  { %v3219_v31 = vadd.f32 %v3131_v57, %v3042_v56  ;;  %v3133_v32 = vpop.f32.mrb[102].mxu1 }
 0x378   :  { %v3231_v1 = vadd.f32 %v3229_v30, %v3218_v29  ;;  %v3134_v33 = vpop.f32.mrb[103].mxu1 }
 0x379   :  { %v3232_v34 = vadd.f32 %v3229_v30, %v3219_v31  ;;  %v3170_v35 = vpop.f32.mrb[104].mxu0  ;;  %v6781_v31 = vld [vmem:[%s8817_s1 + $0x98] sm:$0xff] }
 0x37a   :  { %v3237_v37 = vmul.f32 %v3231_v1, %v7718_v20  ;;  %v3220_v41 = vadd.f32 %v3170_v35, %v3043_v19  ;;  %v3172_v42 = vpop.f32.mrb[105].mxu0 }
 0x37b   :  { %v3238_v44 = vmul.f32 %v3232_v34, %v7722_v24  ;;  %v3221_v45 = vadd.f32 %v3172_v42, %v3044_v16  ;;  %v3174_v47 = vpop.f32.mrb[106].mxu0 }
 0x37c   :  { %v8071_v49 = vadd.f32 %v7276_v48, %v3237_v37  ;;  %v3175_v50 = vpop.f32.mrb[107].mxu0  ;;  %v3233_v55 = vadd.f32 %v3229_v30, %v3220_v41  ;;  %v3296_v41 = vpack.c.bf16 %v6781_v31, %v6781_v31 }
 0x37d   :  { %v8076_v52 = vadd.f32 %v7277_v51, %v3238_v44  ;;  %v3234_v53 = vadd.f32 %v3229_v30, %v3221_v45  ;;  %v3211_v54 = vpop.f32.mrb[104].mxu1 }
 0x37e   :  { %v3222_v59 = vadd.f32 %v3211_v54, %v3045_v23  ;;  %v3213_v60 = vpop.f32.mrb[105].mxu1  ;;  %v3239_v11 = vmul.f32 %v3233_v55, %v7720_v21  ;;  %v6843_v23 = vld [vmem:[%s8818_s2 + $0x10] sm:$0xff] }
 0x37f   :  { %v3223_v61 = vadd.f32 %v3213_v60, %v3046_v7  ;;  %v3215_v62 = vpop.f32.mrb[106].mxu1  ;;  %v7091_v63 = vpack.i.bf16 %v8076_v52, %v8071_v49  ;;  %v3240_v3 = vmul.f32 %v3234_v53, %v7727_v36 }
 0x380   :  { %v3235_v5 = vadd.f32 %v3229_v30, %v3222_v59  ;;  %v3216_v9 = vpop.f32.mrb[107].mxu1  ;;  %v8103_v18 = vadd.f32 %v7281_v38, %v3239_v11 }
 0x381   :  { %v3236_v10 = vadd.f32 %v3229_v30, %v3223_v61  ;;  %7092 = vrot.lane.b32.xlu1 %v7091_v63, %s7306_s29  ;;  %v8088_v12 = vadd.f32 %v7278_v40, %v3240_v3 }
 0x382   :  { %v3241_v4 = vmul.f32 %v3235_v5, %v7735_v43  ;;  %v7101_v19 = vpack.i.bf16 %v8103_v18, %v8076_v52 }
 0x383   :  { %v3242_v0 = vmul.f32 %v3236_v10, %v7737_v46  ;;  %v7106_v6 = vpack.i.bf16 %v8071_v49, %v8088_v12  ;;  %v7131_v58 = vpack.i.bf16 %v8088_v12, %v8103_v18 }
 0x384   :  { %v8093_v14 = vadd.f32 %v7279_v13, %v3241_v4 }
 0x385   :  { %v8098_v56 = vadd.f32 %v7280_v15, %v3242_v0 }
 0x386   :  { %v7096_v2 = vpack.i.bf16 %v8093_v14, %v8088_v12  ;;  %v7136_v39 = vpack.i.bf16 %v8071_v49, %v8093_v14 }
 0x387   :  { %3286 = vrot.lane.b32.xlu0 %v8098_v56, %s7306_s29  ;;  %v7126_v16 = vpack.i.bf16 %v8098_v56, %v8071_v49  ;;  %v7146_v22 = vpack.i.bf16 %v8098_v56, %v8093_v14 }
 0x388   :  { %7097 = vrot.lane.b32.xlu1 %v7096_v2, %s7306_s29 }
 0x38b   :  { %3280 = vrot.lane.b32.xlu0 %v8103_v18, %s7306_s29 }
 0x38c   :  { %7102 = vrot.lane.b32.xlu1 %v7101_v19, %s7308_s10 }
 0x38f   :  { %7107 = vrot.lane.b32.xlu0 %v7106_v6, %s7308_s10  ;;  %v6780_v6 = vld [vmem:[%s8817_s1 + $0x90] sm:$0xff] }
 0x390   :  { %3259 = vrot.lane.b32.xlu1 %v8098_v56, %s7308_s10 }
 0x393   :  { %7112 = vrot.lane.b32.xlu0 %v7091_v63, %s7309_s11 }
 0x394   :  { %3601 = vrot.lane.b32.xlu1 %v8098_v56, %s7309_s11 }
 0x397   :  { %3257 = vrot.lane.b32.xlu0 %v8093_v14, %s7308_s10 }
 0x398   :  { %7117 = vrot.lane.b32.xlu1 %v7096_v2, %s7309_s11 }
 0x39b   :  { %3595 = vrot.lane.b32.xlu0 %v8103_v18, %s7309_s11 }
 0x39c   :  { %7122 = vrot.lane.b32.xlu1 %v7101_v19, %s7310_s12 }
 0x39f   :  { %3774 = vrot.lane.b32.xlu0 %v8088_v12, %s7310_s12 }
 0x3a0   :  { %7127 = vrot.lane.b32.xlu1 %v7126_v16, %s7310_s12 }
 0x3a3   :  { %3776 = vrot.lane.b32.xlu0 %v8093_v14, %s7310_s12 }
 0x3a4   :  { %7132 = vrot.lane.b32.xlu1 %v7131_v58, %s7311_s13 }
 0x3a7   :  { %7137 = vrot.lane.b32.xlu0 %v7136_v39, %s7311_s13 }
 0x3a8   :  { %4106 = vrot.lane.b32.xlu1 %v8076_v52, %s7311_s13 }
 0x3ab   :  { %7142 = vrot.lane.b32.xlu0 %v7091_v63, %s7312_s14 }
 0x3ac   :  { %4285 = vrot.lane.b32.xlu1 %v8103_v18, %s7312_s14 }
 0x3af   :  { %4114 = vrot.lane.b32.xlu0 %v8098_v56, %s7311_s13 }
 0x3b0   :  { %7147 = vrot.lane.b32.xlu1 %v7146_v22, %s7312_s14 }
 0x3b3   :  { %4287 = vrot.lane.b32.xlu0 %v8088_v12, %s7312_s14 }
 0x3b4   :  { %7152 = vrot.lane.b32.xlu1 %v7131_v58, %s7313_s15 }
 0x3b7   :  { %7157 = vrot.lane.b32.xlu0 %v7136_v39, %s7313_s15 }
 0x3b8   :  { %4460 = vrot.lane.b32.xlu1 %v8076_v52, %s7313_s15 }
 0x3bb   :  { %7162 = vrot.lane.b32.xlu0 %v7091_v63, %s7314_s16 }
 0x3bc   :  { %4639 = vrot.lane.b32.xlu1 %v8103_v18, %s7314_s16 }
 0x3bf   :  { %4468 = vrot.lane.b32.xlu0 %v8098_v56, %s7313_s15 }
 0x3c0   :  { %7167 = vrot.lane.b32.xlu1 %v7146_v22, %s7314_s16 }
 0x3c3   :  { %4641 = vrot.lane.b32.xlu0 %v8088_v12, %s7314_s16 }
 0x3c4   :  { %4816 = vperm.xlu1 %7171, %v6843_v23  }
 0x3f3   :  { %v7093_v25 = vpop.permute.xlu1 %7092 }
 0x3f4   :  { %v7095_v7 = vunpack.i.h.bf16 %v7093_v25  ;;  %v7094_v26 = vunpack.i.l.bf16 %v7093_v25  ;;  %v3269_v25 = vpack.c.bf16 %v6780_v6, %v6780_v6 }
 0x3f6   :  { %v3292_v27 = vsel %vm73_vm0, %v7094_v26, %v7095_v7 }
 0x3f7   :  { %v3298_v28 = vpack.c.bf16 %v3292_v27, %v3292_v27 }
 0x3f9   :  { %v3287_v29 = vpop.permute.xlu0 %3286  ;;  %6782 = vmatprep.subr.msk.bf16.mxu0 %vm93_vm1, %v3298_v28 }
 0x3fa   :  { %v3293_v57 = vsel %vm73_vm0, %v3287_v29, %v7094_v26  ;;  %v7098_v30 = vpop.permute.xlu1 %7097 }
 0x3fb   :  { %v3297_v32 = vpack.c.bf16 %v3293_v57, %v3293_v57  ;;  %v7100_v1 = vunpack.i.h.bf16 %v7098_v30  ;;  %v7099_v33 = vunpack.i.l.bf16 %v7098_v30 }
 0x3fd   :  { %v3288_v34 = vsel %vm73_vm0, %v7100_v1, %v3287_v29  ;;  %v3281_v35 = vpop.permute.xlu0 %3280  ;;  %v3307_v37 = vsel %vm93_vm1, %v3297_v32, 0  ;;  %v3289_v42 = vsel %vm73_vm0, %v7099_v33, %v7100_v1 }
 0x3fe   :  { %v3302_v44 = vpack.c.bf16 %v3288_v34, %v3288_v34  ;;  %v3290_v45 = vsel %vm73_vm0, %v3281_v35, %v7099_v33  ;;  %v3291_v47 = vsel %vm73_vm0, %v7095_v7, %v3281_v35  ;;  %v7103_v48 = vpop.permute.xlu1 %7102  ;;  %3325 = vmatpush1.bf16.msra.mxu0 %v3307_v37  ;;  %v3301_v50 = vpack.c.bf16 %v3289_v42, %v3289_v42 }
 0x3ff   :  { %v3299_v51 = vpack.c.bf16 %v3291_v47, %v3291_v47  ;;  %v3300_v53 = vpack.c.bf16 %v3290_v45, %v3290_v45  ;;  %v7105_v54 = vunpack.i.h.bf16 %v7103_v48  ;;  %v7104_v55 = vunpack.i.l.bf16 %v7103_v48 }
 0x400   :  { %6786 = vmatprep.subr.msk.bf16.mxu0 %vm93_vm1, %v3302_v44  ;;  %v3319_v59 = vsel %vm93_vm1, %v3301_v50, 0 }
 0x401   :  { %v7108_v60 = vpop.permute.xlu0 %7107  ;;  %6783 = vmatmul.mubr.msk.bf16.vlgmr.msra.gmra.mrb[108].mxu0 %vm89_vm3, %v3296_v41  ;;  %6784 = vmatprep.subr.msk.bf16.mxu1 %vm93_vm1, %v3300_v53  ;;  %v3313_v61 = vsel %vm93_vm1, %v3299_v51, 0  ;;  %v3264_v5 = vsel %vm46_vm2, %v7104_v55, %v7105_v54  ;;  %v6794_v53 = vld [vmem:[%s8817_s1 + $0xa0] sm:$0xff] }
 0x402   :  { %v7110_v62 = vunpack.i.h.bf16 %v7108_v60  ;;  %v7109_v63 = vunpack.i.l.bf16 %v7108_v60  ;;  %v3260_v3 = vpop.permute.xlu1 %3259  ;;  %3366 = vmatpush1.bf16.msra.mxu1 %v3313_v61  ;;  %3407 = vmatpush1.bf16.msra.mxu0 %v3319_v59  ;;  %v3272_v15 = vpack.c.bf16 %v3264_v5, %v3264_v5 }
 0x403   :  { %3438 = vmatprep.mubr.bf16.mxu0 %v7307_v8 }
 0x404   :  { %v3263_v9 = vsel %vm46_vm2, %v7105_v54, %v7109_v63  ;;  %v3265_v10 = vsel %vm46_vm2, %v7110_v62, %v7104_v55  ;;  %v3266_v11 = vsel %vm46_vm2, %v3260_v3, %v7110_v62  ;;  %v3457_v23 = vsel %vm93_vm1, %v3272_v15, 0 }
 0x405   :  { %v3271_v4 = vpack.c.bf16 %v3265_v10, %v3265_v10  ;;  %v3273_v0 = vpack.c.bf16 %v3263_v9, %v3263_v9  ;;  %v3270_v40 = vpack.c.bf16 %v3266_v11, %v3266_v11  ;;  %v7113_v13 = vpop.permute.xlu0 %7112  ;;  %6785 = vmatmul.mubr.msk.bf16.vlgmr.msra.gmra.mrb[108].mxu1 %vm89_vm3, %v3296_v41 }
 0x406   :  { %v7115_v38 = vunpack.i.h.bf16 %v7113_v13  ;;  %v7114_v2 = vunpack.i.l.bf16 %v7113_v13  ;;  %v3602_v19 = vpop.permute.xlu1 %3601  ;;  %3500 = vmatprep.mubr.bf16.mxu1 %v7307_v8 }
 0x407   :  { %6788 = vmatprep.subr.msk.bf16.mxu1 %vm93_vm1, %v3271_v4  ;;  %6790 = vmatprep.subr.msk.bf16.mxu0 %vm93_vm1, %v3273_v0  ;;  %v3451_v16 = vsel %vm93_vm1, %v3270_v40, 0 }
 0x408   :  { %v3607_v58 = vsel %vm391_vm4, %v7114_v2, %v7115_v38  ;;  %3469 = vmatpush1.bf16.msra.mxu1 %v3451_v16  ;;  %v3608_v7 = vsel %vm391_vm4, %v3602_v19, %v7114_v2  ;;  %v6801_v16 = vld [vmem:[%s8817_s1 + $0xa8] sm:$0xff] }
 0x409   :  { %v3613_v39 = vpack.c.bf16 %v3607_v58, %v3607_v58  ;;  %v3258_v22 = vpop.permute.xlu0 %3257  ;;  %6787 = vmatmul.mubr.msk.bf16.vlgmr.msra.gmra.mrb[112].mxu0 %vm89_vm3, %v3296_v41  ;;  %v3612_v32 = vpack.c.bf16 %v3608_v7, %v3608_v7 }
 0x40a   :  { %v3261_v26 = vsel %vm46_vm2, %v3258_v22, %v3260_v3  ;;  %v3262_v27 = vsel %vm46_vm2, %v7109_v63, %v3258_v22  ;;  %3510 = vmatpush1.bf16.msra.mxu0 %v3457_v23  ;;  %v7118_v28 = vpop.permute.xlu1 %7117  ;;  %3541 = vmatprep.mubr.bf16.mxu0 %v7307_v8  ;;  %v3611_v63 = vpack.c.bf16 %v6794_v53, %v6794_v53 }
 0x40b   :  { %v3274_v29 = vpack.c.bf16 %v3262_v27, %v3262_v27  ;;  %v3275_v57 = vpack.c.bf16 %v3261_v26, %v3261_v26  ;;  %v7120_v30 = vunpack.i.h.bf16 %v7118_v28  ;;  %v7119_v31 = vunpack.i.l.bf16 %v7118_v28  ;;  %6795 = vmatprep.subr.msk.bf16.mxu0 %vm93_vm1, %v3613_v39 }
 0x40c   :  { %v3622_v48 = vsel %vm93_vm1, %v3612_v32, 0  ;;  %v3949_v23 = vpack.c.bf16 %v8076_v52, %v8076_v52  ;;  %v3951_v27 = vpack.c.bf16 %v8088_v12, %v8088_v12  ;;  %v3948_v28 = vpack.c.bf16 %v8071_v49, %v8071_v49 }
 0x40d   :  { %v3596_v1 = vpop.permute.xlu0 %3595  ;;  %6789 = vmatmul.mubr.msk.bf16.vlgmr.msra.gmra.mrb[112].mxu1 %vm89_vm3, %v3269_v25  ;;  %6792 = vmatprep.subr.msk.bf16.mxu1 %vm93_vm1, %v3275_v57  ;;  %v3463_v33 = vsel %vm93_vm1, %v3274_v29, 0  ;;  %v3603_v34 = vsel %vm391_vm4, %v7120_v30, %v3602_v19  ;;  %v3604_v54 = vsel %vm391_vm4, %v7119_v31, %v7120_v30  ;;  %v3953_v32 = vpack.c.bf16 %v8098_v56, %v8098_v56 }
 0x40e   :  { %v3605_v35 = vsel %vm391_vm4, %v3596_v1, %v7119_v31  ;;  %v3606_v37 = vsel %vm391_vm4, %v7115_v38, %v3596_v1  ;;  %v7123_v41 = vpop.permute.xlu1 %7122  ;;  %3551 = vmatpush1.bf16.msra.mxu1 %v3463_v33  ;;  %3582 = vmatprep.mubr.bf16.mxu1 %v7307_v8  ;;  %v3617_v44 = vpack.c.bf16 %v3603_v34, %v3603_v34  ;;  %v3958_v31 = vsel %vm93_vm1, %v3948_v28, 0 }
 0x40f   :  { %v3615_v42 = vpack.c.bf16 %v3605_v35, %v3605_v35  ;;  %v3614_v45 = vpack.c.bf16 %v3606_v37, %v3606_v37  ;;  %v7125_v50 = vunpack.i.h.bf16 %v7123_v41  ;;  %v7124_v55 = vunpack.i.l.bf16 %v7123_v41  ;;  %v6808_v37 = vld [vmem:[%s8817_s1 + $0xb0] sm:$0xff] }
 0x410   :  { %v3616_v3 = vpack.c.bf16 %v3604_v54, %v3604_v54  ;;  %v3950_v1 = vpack.c.bf16 %v8103_v18, %v8103_v18 }
 0x411   :  { %v3775_v47 = vpop.permute.xlu0 %3774  ;;  %6791 = vmatmul.mubr.msk.bf16.vlgmr.msra.gmra.mrb[116].mxu0 %vm89_vm3, %v3269_v25  ;;  %6797 = vmatprep.subr.msk.bf16.mxu1 %vm93_vm1, %v3615_v42  ;;  %v3628_v62 = vsel %vm93_vm1, %v3614_v45, 0  ;;  %v3783_v15 = vsel %vm569_vm5, %v7124_v55, %v7125_v50 }
 0x412   :  { %3640 = vmatpush1.bf16.msra.mxu0 %v3622_v48  ;;  %v7128_v51 = vpop.permute.xlu1 %7127  ;;  %3671 = vmatprep.mubr.bf16.mxu0 %v7307_v8  ;;  %v3782_v5 = vsel %vm569_vm5, %v7125_v50, %v3775_v47  ;;  %v3634_v0 = vsel %vm93_vm1, %v3616_v3, 0  ;;  %v3791_v19 = vpack.c.bf16 %v3783_v15, %v3783_v15  ;;  %v3964_v45 = vsel %vm93_vm1, %v3950_v1, 0 }
 0x413   :  { %v7130_v59 = vunpack.i.h.bf16 %v7128_v51  ;;  %v7129_v60 = vunpack.i.l.bf16 %v7128_v51  ;;  %6799 = vmatprep.subr.msk.bf16.mxu0 %vm93_vm1, %v3617_v44  ;;  %v3792_v4 = vpack.c.bf16 %v3782_v5, %v3782_v5  ;;  %v3952_v48 = vpack.c.bf16 %v8093_v14, %v8093_v14 }
 0x414   :  { %v3805_v22 = vsel %vm93_vm1, %v3791_v19, 0 }
 0x415   :  { %v3784_v61 = vsel %vm569_vm5, %v7129_v60, %v7124_v55  ;;  %6793 = vmatmul.mubr.msk.bf16.vlgmr.msra.gmra.mrb[116].mxu1 %vm89_vm3, %v3269_v25  ;;  %v3785_v10 = vsel %vm569_vm5, %v7130_v59, %v7129_v60  ;;  %v3777_v11 = vpop.permute.xlu0 %3776  ;;  %v3788_v25 = vpack.c.bf16 %v6801_v16, %v6801_v16 }
 0x416   :  { %v3790_v9 = vpack.c.bf16 %v3784_v61, %v3784_v61  ;;  %3681 = vmatpush1.bf16.msra.mxu1 %v3628_v62  ;;  %3712 = vmatprep.mubr.bf16.mxu1 %v7307_v8  ;;  %v3789_v40 = vpack.c.bf16 %v3785_v10, %v3785_v10  ;;  %v3780_v13 = vsel %vm569_vm5, %v3777_v11, %v7130_v59  ;;  %v7133_v39 = vpop.permute.xlu1 %7132  ;;  %v3970_v59 = vsel %vm93_vm1, %v3952_v48, 0 }
 0x417   :  { %v3794_v38 = vpack.c.bf16 %v3780_v13, %v3780_v13  ;;  %v3781_v6 = vsel %vm569_vm5, %v3775_v47, %v3777_v11  ;;  %v7134_v57 = vunpack.i.l.bf16 %v7133_v39  ;;  %v7135_v41 = vunpack.i.h.bf16 %v7133_v39  ;;  %v6815_v13 = vld [vmem:[%s8817_s1 + $0xb8] sm:$0xff] }
 0x418   :  { %6802 = vmatprep.subr.msk.bf16.mxu1 %vm93_vm1, %v3790_v9  ;;  %v3799_v2 = vsel %vm93_vm1, %v3789_v40, 0  ;;  %v3793_v58 = vpack.c.bf16 %v3781_v6, %v3781_v6  ;;  %v3947_v47 = vpack.c.bf16 %v6808_v37, %v6808_v37  ;;  %v4124_v6 = vpack.c.bf16 %v6815_v13, %v6815_v13 }
 0x419   :  { %6796 = vmatmul.mubr.msk.bf16.vlgmr.msra.gmra.mrb[120].mxu0 %vm89_vm3, %v3611_v63  ;;  %v7138_v7 = vpop.permute.xlu0 %7137  ;;  %v4118_v62 = vsel %vm906_vm6, %v7134_v57, %v7135_v41 }
 0x41a   :  { %3722 = vmatpush1.bf16.msra.mxu0 %v3634_v0  ;;  %3753 = vmatprep.mubr.bf16.mxu0 %v7307_v8  ;;  %v3811_v26 = vsel %vm93_vm1, %v3793_v58, 0  ;;  %v4107_v29 = vpop.permute.xlu1 %4106  ;;  %v7140_v33 = vunpack.i.h.bf16 %v7138_v7  ;;  %v7139_v34 = vunpack.i.l.bf16 %v7138_v7  ;;  %v4127_v10 = vpack.c.bf16 %v4118_v62, %v4118_v62 }
 0x41b   :  { %6804 = vmatprep.subr.msk.bf16.mxu0 %vm93_vm1, %v3792_v4  ;;  %v4119_v35 = vsel %vm906_vm6, %v4107_v29, %v7134_v57 }
 0x41c   :  { %v4126_v42 = vpack.c.bf16 %v4119_v35, %v4119_v35  ;;  %v4117_v50 = vsel %vm906_vm6, %v7135_v41, %v7139_v34  ;;  %v4120_v51 = vsel %vm906_vm6, %v7140_v33, %v4107_v29  ;;  %v4141_v19 = vsel %vm93_vm1, %v4127_v10, 0  ;;  %v6822_v35 = vld [vmem:[%s8817_s1 + $0xc0] sm:$0xff] }
 0x41d   :  { %6798 = vmatmul.mubr.msk.bf16.vlgmr.msra.gmra.mrb[120].mxu1 %vm89_vm3, %v3611_v63  ;;  %v8281_v30 = vpop.permute.xlu0 %7142  ;;  %v4128_v54 = vpack.c.bf16 %v4117_v50, %v4117_v50  ;;  %v4125_v55 = vpack.c.bf16 %v4120_v51, %v4120_v51 }
 0x41e   :  { %3817 = vmatpush1.bf16.msra.mxu1 %v3799_v2  ;;  %3848 = vmatprep.mubr.bf16.mxu1 %v7307_v8  ;;  %v4286_v44 = vpop.permute.xlu1 %4285  ;;  %v7145_v60 = vunpack.i.h.bf16 %v8281_v30  ;;  %v7144_v11 = vunpack.i.l.bf16 %v8281_v30 }
 0x41f   :  { %6806 = vmatprep.subr.msk.bf16.mxu1 %vm93_vm1, %v3794_v38  ;;  %v4135_v9 = vsel %vm93_vm1, %v4125_v55, 0 }
 0x420   :  { %v4296_v4 = vsel %vm1084_vm7, %v7145_v60, %v4286_v44  ;;  %v4297_v39 = vsel %vm1084_vm7, %v7144_v11, %v7145_v60 }
 0x421   :  { %6800 = vmatmul.mubr.msk.bf16.vlgmr.msra.gmra.mrb[124].mxu0 %vm89_vm3, %v3611_v63  ;;  %v4115_v53 = vpop.permute.xlu0 %4114  ;;  %v4303_v15 = vpack.c.bf16 %v4296_v4, %v4296_v4  ;;  %v4302_v7 = vpack.c.bf16 %v4297_v39, %v4297_v39 }
 0x422   :  { %3858 = vmatpush1.bf16.msra.mxu0 %v3805_v22  ;;  %3889 = vmatprep.mubr.bf16.mxu0 %v7307_v8  ;;  %v4121_v61 = vsel %vm906_vm6, %v4115_v53, %v7140_v33  ;;  %v7148_v63 = vpop.permute.xlu1 %7147  ;;  %v4116_v0 = vsel %vm906_vm6, %v7139_v34, %v4115_v53 }
 0x423   :  { %6809 = vmatprep.subr.msk.bf16.mxu0 %vm93_vm1, %v3949_v23  ;;  %v4130_v3 = vpack.c.bf16 %v4121_v61, %v4121_v61  ;;  %v7149_v40 = vunpack.i.l.bf16 %v7148_v63  ;;  %v4129_v38 = vpack.c.bf16 %v4116_v0, %v4116_v0  ;;  %v7150_v16 = vunpack.i.h.bf16 %v7148_v63 }
 0x425   :  { %6803 = vmatmul.mubr.msk.bf16.vlgmr.msra.gmra.mrb[124].mxu1 %vm89_vm3, %v3788_v25  ;;  %v4288_v5 = vpop.permute.xlu0 %4287  ;;  %v4293_v37 = vsel %vm1084_vm7, %v7149_v40, %v7150_v16 }
 0x426   :  { %3899 = vmatpush1.bf16.msra.mxu1 %v3811_v26  ;;  %3930 = vmatprep.mubr.bf16.mxu1 %v7307_v8  ;;  %v7153_v2 = vpop.permute.xlu1 %7152  ;;  %v4294_v58 = vsel %vm1084_vm7, %v4288_v5, %v7149_v40  ;;  %v4298_v26 = vsel %vm1084_vm7, %v7150_v16, %v7144_v11  ;;  %v4306_v48 = vpack.c.bf16 %v4293_v37, %v4293_v37  ;;  %v6829_v40 = vld [vmem:[%s8817_s1 + $0xc8] sm:$0xff] }
 0x427   :  { %6811 = vmatprep.subr.msk.bf16.mxu1 %vm93_vm1, %v3951_v27  ;;  %v4305_v23 = vpack.c.bf16 %v4294_v58, %v4294_v58  ;;  %v4295_v27 = vsel %vm1084_vm7, %v4286_v44, %v4288_v5  ;;  %v7154_v29 = vunpack.i.l.bf16 %v7153_v2  ;;  %v4307_v57 = vpack.c.bf16 %v4298_v26, %v4298_v26 }
 0x428   :  { %v4304_v30 = vpack.c.bf16 %v4295_v27, %v4295_v27  ;;  %v7155_v41 = vunpack.i.h.bf16 %v7153_v2 }
 0x429   :  { %6805 = vmatmul.mubr.msk.bf16.vlgmr.msra.gmra.mrb[128].mxu0 %vm89_vm3, %v3788_v25  ;;  %v7158_v22 = vpop.permute.xlu0 %7157 }
 0x42a   :  { %3976 = vmatpush1.bf16.msra.mxu0 %v3958_v31  ;;  %4007 = vmatprep.mubr.bf16.mxu0 %v7307_v8  ;;  %v4461_v28 = vpop.permute.xlu1 %4460  ;;  %v7160_v1 = vunpack.i.h.bf16 %v7158_v22  ;;  %v7159_v33 = vunpack.i.l.bf16 %v7158_v22  ;;  %v4472_v62 = vsel %vm1262_vm8, %v7154_v29, %v7155_v41 }
 0x42b   :  { %6813 = vmatprep.subr.msk.bf16.mxu0 %vm93_vm1, %v3953_v32  ;;  %v4312_v32 = vsel %vm93_vm1, %v4302_v7, 0  ;;  %v4473_v34 = vsel %vm1262_vm8, %v4461_v28, %v7154_v29  ;;  %v6836_v29 = vld [vmem:[%s8817_s1 + $0xd0] sm:$0xff] }
 0x42c   :  { %v4471_v50 = vsel %vm1262_vm8, %v7155_v41, %v7159_v33  ;;  %v4474_v51 = vsel %vm1262_vm8, %v7160_v1, %v4461_v28 }
 0x42d   :  { %6807 = vmatmul.mubr.msk.bf16.vlgmr.msra.gmra.mrb[128].mxu1 %vm89_vm3, %v3788_v25  ;;  %v4147_v25 = vsel %vm93_vm1, %v4129_v38, 0  ;;  %v8343_v31 = vpop.permute.xlu0 %7162  ;;  %v4479_v55 = vpack.c.bf16 %v4474_v51, %v4474_v51 }
 0x42e   :  { %4017 = vmatpush1.bf16.msra.mxu1 %v3964_v45  ;;  %4048 = vmatprep.mubr.bf16.mxu1 %v7307_v8  ;;  %v4640_v44 = vpop.permute.xlu1 %4639  ;;  %v4318_v45 = vsel %vm93_vm1, %v4304_v30, 0  ;;  %v7165_v60 = vunpack.i.h.bf16 %v8343_v31  ;;  %v7164_v10 = vunpack.i.l.bf16 %v8343_v31  ;;  %v4655_v31 = vpack.c.bf16 %v6836_v29, %v6836_v29 }
 0x42f   :  { %6816 = vmatprep.subr.msk.bf16.mxu1 %vm93_vm1, %v4126_v42  ;;  %v4480_v42 = vpack.c.bf16 %v4473_v34, %v4473_v34  ;;  %v4489_v5 = vsel %vm93_vm1, %v4479_v55, 0 }
 0x430   :  { %v4650_v11 = vsel %vm1440_vm9, %v7165_v60, %v4640_v44  ;;  %v4651_v58 = vsel %vm1440_vm9, %v7164_v10, %v7165_v60 }
 0x431   :  { %6810 = vmatmul.mubr.msk.bf16.vlgmr.msra.gmra.mrb[132].mxu0 %vm89_vm3, %v3947_v47  ;;  %v4469_v53 = vpop.permute.xlu0 %4468 }
 0x432   :  { %4058 = vmatpush1.bf16.msra.mxu0 %v3970_v59  ;;  %4089 = vmatprep.mubr.bf16.mxu0 %v7307_v8  ;;  %v4324_v59 = vsel %vm93_vm1, %v4306_v48, 0  ;;  %v4475_v61 = vsel %vm1262_vm8, %v4469_v53, %v7160_v1  ;;  %v7168_v63 = vpop.permute.xlu1 %7167  ;;  %v4470_v4 = vsel %vm1262_vm8, %v7159_v33, %v4469_v53 }
 0x433   :  { %6818 = vmatprep.subr.msk.bf16.mxu0 %vm93_vm1, %v4128_v54  ;;  %v4482_v54 = vpack.c.bf16 %v4471_v50, %v4471_v50  ;;  %v7169_v0 = vunpack.i.l.bf16 %v7168_v63  ;;  %v4483_v38 = vpack.c.bf16 %v4470_v4, %v4470_v4 }
 0x435   :  { %6812 = vmatmul.mubr.msk.bf16.vlgmr.msra.gmra.mrb[132].mxu1 %vm89_vm3, %v3947_v47  ;;  %v4642_v13 = vpop.permute.xlu0 %4641  ;;  %v4501_v22 = vsel %vm93_vm1, %v4483_v38, 0 }
 0x436   :  { %4153 = vmatpush1.bf16.msra.mxu1 %v4135_v9  ;;  %4184 = vmatprep.mubr.bf16.mxu1 %v7307_v8  ;;  %v4481_v9 = vpack.c.bf16 %v4472_v62, %v4472_v62  ;;  %v4648_v16 = vsel %vm1440_vm9, %v4642_v13, %v7169_v0  ;;  %v4649_v7 = vsel %vm1440_vm9, %v4640_v44, %v4642_v13 }
 0x437   :  { %6820 = vmatprep.subr.msk.bf16.mxu1 %vm93_vm1, %v4130_v3  ;;  %v4484_v3 = vpack.c.bf16 %v4475_v61, %v4475_v61  ;;  %v4659_v39 = vpack.c.bf16 %v4648_v16, %v4648_v16  ;;  %v4658_v27 = vpack.c.bf16 %v4649_v7, %v4649_v7 }
 0x438   :  { %v4495_v2 = vsel %vm93_vm1, %v4481_v9, 0 }
 0x439   :  { %6814 = vmatmul.mubr.msk.bf16.vlgmr.msra.gmra.mrb[136].mxu0 %vm89_vm3, %v3947_v47  ;;  %v4301_v47 = vpack.c.bf16 %v6822_v35, %v6822_v35  ;;  %v4672_v30 = vsel %vm93_vm1, %v4658_v27, 0 }
 0x43a   :  { %4194 = vmatpush1.bf16.msra.mxu0 %v4141_v19  ;;  %4225 = vmatprep.mubr.bf16.mxu0 %v7307_v8  ;;  %v4478_v19 = vpack.c.bf16 %v6829_v40, %v6829_v40 }
 0x43b   :  { %6823 = vmatprep.subr.msk.bf16.mxu0 %vm93_vm1, %v4303_v15  ;;  %v4657_v15 = vpack.c.bf16 %v4650_v11, %v4650_v11 }
 0x43d   :  { %6817 = vmatmul.mubr.msk.bf16.vlgmr.msra.gmra.mrb[136].mxu1 %vm89_vm3, %v4124_v6 }
 0x43e   :  { %4235 = vmatpush1.bf16.msra.mxu1 %v4147_v25  ;;  %4266 = vmatprep.mubr.bf16.mxu1 %v7307_v8 }
 0x43f   :  { %6825 = vmatprep.subr.msk.bf16.mxu1 %vm93_vm1, %v4305_v23  ;;  %v4656_v23 = vpack.c.bf16 %v4651_v58, %v4651_v58 }
 0x441   :  { %6819 = vmatmul.mubr.msk.bf16.vlgmr.msra.gmra.mrb[140].mxu0 %vm89_vm3, %v4124_v6  ;;  %v4666_v28 = vsel %vm93_vm1, %v4656_v23, 0 }
 0x442   :  { %4330 = vmatpush1.bf16.msra.mxu0 %v4312_v32  ;;  %4361 = vmatprep.mubr.bf16.mxu0 %v7307_v8 }
 0x443   :  { %6827 = vmatprep.subr.msk.bf16.mxu0 %vm93_vm1, %v4307_v57 }
 0x445   :  { %6821 = vmatmul.mubr.msk.bf16.vlgmr.msra.gmra.mrb[140].mxu1 %vm89_vm3, %v4124_v6  ;;  %v7170_v6 = vunpack.i.h.bf16 %v7168_v63 }
 0x446   :  { %4371 = vmatpush1.bf16.msra.mxu1 %v4318_v45  ;;  %4402 = vmatprep.mubr.bf16.mxu1 %v7307_v8 }
 0x447   :  { %6830 = vmatprep.subr.msk.bf16.mxu1 %vm93_vm1, %v4480_v42  ;;  %v4652_v25 = vsel %vm1440_vm9, %v7170_v6, %v7164_v10  ;;  %v4647_v57 = vsel %vm1440_vm9, %v7169_v0, %v7170_v6 }
 0x448   :  { %v4661_v26 = vpack.c.bf16 %v4652_v25, %v4652_v25  ;;  %v4660_v32 = vpack.c.bf16 %v4647_v57, %v4647_v57 }
 0x449   :  { %6824 = vmatmul.mubr.msk.bf16.vlgmr.msra.gmra.mrb[144].mxu0 %vm89_vm3, %v4301_v47 }
 0x44a   :  { %4412 = vmatpush1.bf16.msra.mxu0 %v4324_v59  ;;  %4443 = vmatprep.mubr.bf16.mxu0 %v7307_v8  ;;  %v4678_v1 = vsel %vm93_vm1, %v4660_v32, 0 }
 0x44b   :  { %6832 = vmatprep.subr.msk.bf16.mxu0 %vm93_vm1, %v4482_v54 }
 0x44d   :  { %6826 = vmatmul.mubr.msk.bf16.vlgmr.msra.gmra.mrb[144].mxu1 %vm89_vm3, %v4301_v47 }
 0x44e   :  { %4507 = vmatpush1.bf16.msra.mxu1 %v4489_v5  ;;  %4538 = vmatprep.mubr.bf16.mxu1 %v7307_v8 }
 0x44f   :  { %6834 = vmatprep.subr.msk.bf16.mxu1 %vm93_vm1, %v4484_v3 }
 0x451   :  { %6828 = vmatmul.mubr.msk.bf16.vlgmr.msra.gmra.mrb[148].mxu0 %vm89_vm3, %v4301_v47 }
 0x452   :  { %4548 = vmatpush1.bf16.msra.mxu0 %v4495_v2  ;;  %4579 = vmatprep.mubr.bf16.mxu0 %v7307_v8 }
 0x453   :  { %6837 = vmatprep.subr.msk.bf16.mxu0 %vm93_vm1, %v4657_v15 }
 0x455   :  { %6831 = vmatmul.mubr.msk.bf16.vlgmr.msra.gmra.mrb[148].mxu1 %vm89_vm3, %v4478_v19 }
 0x456   :  { %4589 = vmatpush1.bf16.msra.mxu1 %v4501_v22  ;;  %4620 = vmatprep.mubr.bf16.mxu1 %v7307_v8 }
 0x457   :  { %6839 = vmatprep.subr.msk.bf16.mxu1 %vm93_vm1, %v4659_v39 }
 0x459   :  { %6833 = vmatmul.mubr.msk.bf16.vlgmr.msra.gmra.mrb[152].mxu0 %vm89_vm3, %v4478_v19 }
 0x45a   :  { %4684 = vmatpush1.bf16.msra.mxu0 %v4666_v28  ;;  %4715 = vmatprep.mubr.bf16.mxu0 %v7307_v8 }
 0x45b   :  { %6841 = vmatprep.subr.msk.bf16.mxu0 %vm93_vm1, %v4661_v26 }
 0x45d   :  { %6835 = vmatmul.mubr.msk.bf16.vlgmr.msra.gmra.mrb[152].mxu1 %vm89_vm3, %v4478_v19 }
 0x45e   :  { %4725 = vmatpush1.bf16.msra.mxu1 %v4672_v30  ;;  %4756 = vmatprep.mubr.bf16.mxu1 %v7307_v8 }
 0x461   :  { %6838 = vmatmul.mubr.msk.bf16.vlgmr.msra.gmra.mrb[156].mxu0 %vm89_vm3, %v4655_v31 }
 0x462   :  { %4766 = vmatpush1.bf16.msra.mxu0 %v4678_v1  ;;  %4797 = vmatprep.mubr.bf16.mxu0 %v7307_v8 }
 0x465   :  { %6840 = vmatmul.mubr.msk.bf16.vlgmr.msra.gmra.mrb[156].mxu1 %vm89_vm3, %v4655_v31 }
 0x466   :  { %4944 = vmatprep.mubr.bf16.mxu1 %v7307_v8 }
 0x469   :  { %6842 = vmatmul.mubr.msk.bf16.vlgmr.msra.gmra.mrb[160].mxu0 %vm89_vm3, %v4655_v31 }
 0x46a   :  { %4985 = vmatprep.mubr.bf16.mxu0 %v7307_v8 }
 0x4d4   :  { %v3358_v33 = vpop.f32.mrb[108].mxu0 }
 0x4d5   :  { %v3360_v34 = vpop.f32.mrb[109].mxu0 }
 0x4d6   :  { %v3362_v35 = vpop.f32.mrb[110].mxu0 }
 0x4d7   :  { %v3363_v37 = vpop.f32.mrb[111].mxu0 }
 0x4d8   :  { %v3399_v41 = vpop.f32.mrb[108].mxu1 }
 0x4d9   :  { %v3401_v42 = vpop.f32.mrb[109].mxu1 }
 0x4da   :  { %v3403_v44 = vpop.f32.mrb[110].mxu1 }
 0x4db   :  { %v3404_v45 = vpop.f32.mrb[111].mxu1 }
 0x4dc   :  { %v3440_v47 = vpop.f32.mrb[112].mxu0 }
 0x4dd   :  { %v3442_v48 = vpop.f32.mrb[113].mxu0 }
 0x4de   :  { %v3444_v50 = vpop.f32.mrb[114].mxu0 }
 0x4df   :  { %v3445_v51 = vpop.f32.mrb[115].mxu0 }
 0x4e0   :  { %v3502_v53 = vpop.f32.mrb[112].mxu1 }
 0x4e1   :  { %v3503_v54 = vadd.f32 %v3502_v53, %v3358_v33  ;;  %v3504_v55 = vpop.f32.mrb[113].mxu1 }
 0x4e2   :  { %v3505_v59 = vadd.f32 %v3504_v55, %v3360_v34  ;;  %v3506_v60 = vpop.f32.mrb[114].mxu1 }
 0x4e3   :  { %v3507_v61 = vpop.f32.mrb[115].mxu1 }
 0x4e4   :  { %v3543_v62 = vpop.f32.mrb[116].mxu0 }
 0x4e5   :  { %v3544_v63 = vadd.f32 %v3543_v62, %v3399_v41  ;;  %v3545_v3 = vpop.f32.mrb[117].mxu0 }
 0x4e6   :  { %v3546_v5 = vadd.f32 %v3545_v3, %v3401_v42  ;;  %v3547_v9 = vpop.f32.mrb[118].mxu0 }
 0x4e7   :  { %v3548_v10 = vpop.f32.mrb[119].mxu0 }
 0x4e8   :  { %v3584_v11 = vpop.f32.mrb[116].mxu1 }
 0x4e9   :  { %v3585_v4 = vadd.f32 %v3584_v11, %v3440_v47  ;;  %v3586_v0 = vpop.f32.mrb[117].mxu1 }
 0x4ea   :  { %v3587_v40 = vadd.f32 %v3586_v0, %v3442_v48  ;;  %v3588_v13 = vpop.f32.mrb[118].mxu1 }
 0x4eb   :  { %v3589_v15 = vpop.f32.mrb[119].mxu1 }
 0x4ec   :  { %v3673_v38 = vpop.f32.mrb[120].mxu0 }
 0x4ed   :  { %v3762_v2 = vadd.f32 %v3673_v38, %v3503_v54  ;;  %v3675_v19 = vpop.f32.mrb[121].mxu0 }
 0x4ee   :  { %v3763_v6 = vadd.f32 %v3675_v19, %v3505_v59  ;;  %v3677_v16 = vpop.f32.mrb[122].mxu0 }
 0x4ef   :  { %v3678_v58 = vpop.f32.mrb[123].mxu0 }
 0x4f0   :  { %v3714_v39 = vpop.f32.mrb[120].mxu1 }
 0x4f1   :  { %v3764_v22 = vadd.f32 %v3714_v39, %v3544_v63  ;;  %v3716_v23 = vpop.f32.mrb[121].mxu1 }
 0x4f2   :  { %v3765_v25 = vadd.f32 %v3716_v23, %v3546_v5  ;;  %v3718_v7 = vpop.f32.mrb[122].mxu1 }
 0x4f3   :  { %v3719_v26 = vpop.f32.mrb[123].mxu1 }
 0x4f4   :  { %v3755_v27 = vpop.f32.mrb[124].mxu0 }
 0x4f5   :  { %v3766_v28 = vadd.f32 %v3755_v27, %v3585_v4  ;;  %v3757_v29 = vpop.f32.mrb[125].mxu0 }
 0x4f6   :  { %v3767_v57 = vadd.f32 %v3757_v29, %v3587_v40  ;;  %v3759_v30 = vpop.f32.mrb[126].mxu0 }
 0x4f7   :  { %v3760_v31 = vpop.f32.mrb[127].mxu0 }
 0x4f8   :  { %v3850_v32 = vpop.f32.mrb[124].mxu1 }
 0x4f9   :  { %v3939_v1 = vadd.f32 %v3850_v32, %v3762_v2  ;;  %v3852_v33 = vpop.f32.mrb[125].mxu1 }
 0x4fa   :  { %v3940_v34 = vadd.f32 %v3852_v33, %v3763_v6  ;;  %v3854_v35 = vpop.f32.mrb[126].mxu1 }
 0x4fb   :  { %v3855_v37 = vpop.f32.mrb[127].mxu1 }
 0x4fc   :  { %v3891_v41 = vpop.f32.mrb[128].mxu0 }
 0x4fd   :  { %v3941_v42 = vadd.f32 %v3891_v41, %v3764_v22  ;;  %v3893_v44 = vpop.f32.mrb[129].mxu0 }
 0x4fe   :  { %v3942_v45 = vadd.f32 %v3893_v44, %v3765_v25  ;;  %v3895_v47 = vpop.f32.mrb[130].mxu0 }
 0x4ff   :  { %v3896_v48 = vpop.f32.mrb[131].mxu0 }
 0x500   :  { %v3932_v50 = vpop.f32.mrb[128].mxu1 }
 0x501   :  { %v3943_v51 = vadd.f32 %v3932_v50, %v3766_v28  ;;  %v3934_v53 = vpop.f32.mrb[129].mxu1 }
 0x502   :  { %v3944_v54 = vadd.f32 %v3934_v53, %v3767_v57  ;;  %v3936_v55 = vpop.f32.mrb[130].mxu1 }
 0x503   :  { %v3937_v59 = vpop.f32.mrb[131].mxu1 }
 0x504   :  { %v4009_v60 = vpop.f32.mrb[132].mxu0 }
 0x505   :  { %v4098_v61 = vadd.f32 %v4009_v60, %v3939_v1  ;;  %v4011_v62 = vpop.f32.mrb[133].mxu0 }
 0x506   :  { %v4099_v63 = vadd.f32 %v4011_v62, %v3940_v34  ;;  %v4013_v3 = vpop.f32.mrb[134].mxu0 }
 0x507   :  { %v4014_v5 = vpop.f32.mrb[135].mxu0 }
 0x508   :  { %v4050_v9 = vpop.f32.mrb[132].mxu1 }
 0x509   :  { %v4100_v10 = vadd.f32 %v4050_v9, %v3941_v42  ;;  %v4052_v11 = vpop.f32.mrb[133].mxu1 }
 0x50a   :  { %v4101_v4 = vadd.f32 %v4052_v11, %v3942_v45  ;;  %v4054_v0 = vpop.f32.mrb[134].mxu1 }
 0x50b   :  { %v4055_v40 = vpop.f32.mrb[135].mxu1 }
 0x50c   :  { %v4091_v13 = vpop.f32.mrb[136].mxu0 }
 0x50d   :  { %v4102_v15 = vadd.f32 %v4091_v13, %v3943_v51  ;;  %v4093_v38 = vpop.f32.mrb[137].mxu0 }
 0x50e   :  { %v4103_v2 = vadd.f32 %v4093_v38, %v3944_v54  ;;  %v4095_v19 = vpop.f32.mrb[138].mxu0 }
 0x50f   :  { %v4096_v6 = vpop.f32.mrb[139].mxu0 }
 0x510   :  { %v4186_v16 = vpop.f32.mrb[136].mxu1 }
 0x511   :  { %v4275_v58 = vadd.f32 %v4186_v16, %v4098_v61  ;;  %v4188_v39 = vpop.f32.mrb[137].mxu1 }
 0x512   :  { %v4276_v22 = vadd.f32 %v4188_v39, %v4099_v63  ;;  %v4190_v23 = vpop.f32.mrb[138].mxu1 }
 0x513   :  { %v4191_v25 = vpop.f32.mrb[139].mxu1 }
 0x514   :  { %v4227_v7 = vpop.f32.mrb[140].mxu0  ;;  %v4817_v25 = vpop.permute.xlu1 %4816 }
 0x515   :  { %v4277_v26 = vadd.f32 %v4227_v7, %v4100_v10  ;;  %v4229_v27 = vpop.f32.mrb[141].mxu0 }
 0x516   :  { %v4278_v28 = vadd.f32 %v4229_v27, %v4101_v4  ;;  %v4231_v29 = vpop.f32.mrb[142].mxu0 }
 0x517   :  { %v4232_v57 = vpop.f32.mrb[143].mxu0 }
 0x518   :  { %v4268_v30 = vpop.f32.mrb[140].mxu1 }
 0x519   :  { %v4279_v31 = vadd.f32 %v4268_v30, %v4102_v15  ;;  %v4270_v32 = vpop.f32.mrb[141].mxu1 }
 0x51a   :  { %v4280_v1 = vadd.f32 %v4270_v32, %v4103_v2  ;;  %v4272_v33 = vpop.f32.mrb[142].mxu1 }
 0x51b   :  { %v4273_v34 = vpop.f32.mrb[143].mxu1 }
 0x51c   :  { %v4363_v35 = vpop.f32.mrb[144].mxu0 }
 0x51d   :  { %v4452_v37 = vadd.f32 %v4363_v35, %v4275_v58  ;;  %v4365_v41 = vpop.f32.mrb[145].mxu0 }
 0x51e   :  { %v4453_v42 = vadd.f32 %v4365_v41, %v4276_v22  ;;  %v4367_v44 = vpop.f32.mrb[146].mxu0 }
 0x51f   :  { %v4368_v45 = vpop.f32.mrb[147].mxu0 }
 0x520   :  { %v4404_v47 = vpop.f32.mrb[144].mxu1 }
 0x521   :  { %v4454_v48 = vadd.f32 %v4404_v47, %v4277_v26  ;;  %v4406_v50 = vpop.f32.mrb[145].mxu1 }
 0x522   :  { %v4455_v51 = vadd.f32 %v4406_v50, %v4278_v28  ;;  %v4408_v53 = vpop.f32.mrb[146].mxu1 }
 0x523   :  { %v4409_v54 = vpop.f32.mrb[147].mxu1 }
 0x524   :  { %v4445_v55 = vpop.f32.mrb[148].mxu0 }
 0x525   :  { %v4456_v59 = vadd.f32 %v4445_v55, %v4279_v31  ;;  %v4447_v60 = vpop.f32.mrb[149].mxu0 }
 0x526   :  { %v4457_v61 = vadd.f32 %v4447_v60, %v4280_v1  ;;  %v4449_v62 = vpop.f32.mrb[150].mxu0 }
 0x527   :  { %v4450_v63 = vpop.f32.mrb[151].mxu0 }
 0x528   :  { %v4540_v3 = vpop.f32.mrb[148].mxu1 }
 0x529   :  { %v4629_v5 = vadd.f32 %v4540_v3, %v4452_v37  ;;  %v4542_v9 = vpop.f32.mrb[149].mxu1 }
 0x52a   :  { %v4630_v10 = vadd.f32 %v4542_v9, %v4453_v42  ;;  %v4544_v11 = vpop.f32.mrb[150].mxu1 }
 0x52b   :  { %v4545_v4 = vpop.f32.mrb[151].mxu1 }
 0x52c   :  { %v4581_v0 = vpop.f32.mrb[152].mxu0 }
 0x52d   :  { %v4631_v40 = vadd.f32 %v4581_v0, %v4454_v48  ;;  %v4583_v13 = vpop.f32.mrb[153].mxu0 }
 0x52e   :  { %v4632_v15 = vadd.f32 %v4583_v13, %v4455_v51  ;;  %v4585_v38 = vpop.f32.mrb[154].mxu0  ;;  %v6907_v13 = vld [vmem:[%s8818_s2 + $0x18] sm:$0xff] }
 0x52f   :  { %v4586_v2 = vpop.f32.mrb[155].mxu0 }
 0x530   :  { %v4622_v19 = vpop.f32.mrb[152].mxu1 }
 0x531   :  { %v4633_v6 = vadd.f32 %v4622_v19, %v4456_v59  ;;  %v4624_v16 = vpop.f32.mrb[153].mxu1 }
 0x532   :  { %v4634_v58 = vadd.f32 %v4624_v16, %v4457_v61  ;;  %v4626_v39 = vpop.f32.mrb[154].mxu1 }
 0x533   :  { %v4627_v22 = vpop.f32.mrb[155].mxu1 }
 0x534   :  { %v4717_v23 = vpop.f32.mrb[156].mxu0 }
 0x535   :  { %v4806_v7 = vadd.f32 %v4717_v23, %v4629_v5  ;;  %v4719_v26 = vpop.f32.mrb[157].mxu0 }
 0x536   :  { %v4807_v27 = vadd.f32 %v4719_v26, %v4630_v10  ;;  %v4721_v28 = vpop.f32.mrb[158].mxu0 }
 0x537   :  { %v4819_v29 = vadd.f32 %v4817_v25, %v4806_v7  ;;  %v4722_v57 = vpop.f32.mrb[159].mxu0 }
 0x538   :  { %v4820_v30 = vadd.f32 %v4817_v25, %v4807_v27  ;;  %v4758_v31 = vpop.f32.mrb[156].mxu1  ;;  %v6845_v27 = vld [vmem:[%s8817_s1 + $0xe0] sm:$0xff] }
 0x539   :  { %v4825_v32 = vmul.f32 %v4819_v29, %v7718_v20  ;;  %v4808_v1 = vadd.f32 %v4758_v31, %v4631_v40  ;;  %v4760_v33 = vpop.f32.mrb[157].mxu1 }
 0x53a   :  { %v4826_v34 = vmul.f32 %v4820_v30, %v7722_v24  ;;  %v4809_v35 = vadd.f32 %v4760_v33, %v4632_v15  ;;  %v4762_v37 = vpop.f32.mrb[158].mxu1  ;;  %v6427_v15 = vld [vmem:[%s8820_s4] sm:$0xff] }
 0x53b   :  { %v8422_v41 = vmax.f32 %v4825_v32, 0.0  ;;  %v4821_v42 = vadd.f32 %v4817_v25, %v4808_v1  ;;  %v4763_v44 = vpop.f32.mrb[159].mxu1 }
 0x53c   :  { %v8424_v45 = vmax.f32 %v4826_v34, 0.0  ;;  %v4822_v47 = vadd.f32 %v4817_v25, %v4809_v35  ;;  %v4799_v48 = vpop.f32.mrb[160].mxu0  ;;  %v4884_v35 = vpack.c.bf16 %v6845_v27, %v6845_v27 }
 0x53d   :  { %v4827_v50 = vmul.f32 %v4821_v42, %v7720_v21  ;;  %v4810_v51 = vadd.f32 %v4799_v48, %v4633_v6  ;;  %v4801_v53 = vpop.f32.mrb[161].mxu0 }
 0x53e   :  { %v4828_v54 = vmul.f32 %v4822_v47, %v7727_v36  ;;  %v4811_v55 = vadd.f32 %v4801_v53, %v4634_v58  ;;  %v4803_v59 = vpop.f32.mrb[162].mxu0  ;;  %v7172_v60 = vpack.i.bf16 %v8424_v45, %v8422_v41 }
 0x53f   :  { %v8430_v61 = vmax.f32 %v4827_v50, 0.0  ;;  %v4823_v62 = vadd.f32 %v4817_v25, %v4810_v51  ;;  %v4804_v63 = vpop.f32.mrb[163].mxu0 }
 0x540   :  { %v8432_v3 = vmax.f32 %v4828_v54, 0.0  ;;  %v4824_v5 = vadd.f32 %v4817_v25, %v4811_v55  ;;  %7173 = vrot.lane.b32.xlu0 %v7172_v60, %s7306_s29  ;;  %v6844_v63 = vld [vmem:[%s8817_s1 + $0xd8] sm:$0xff] }
 0x541   :  { %v4829_v9 = vmul.f32 %v4823_v62, %v7735_v43 }
 0x542   :  { %v4830_v10 = vmul.f32 %v4824_v5, %v7737_v46  ;;  %v7177_v11 = vpack.i.bf16 %v8432_v3, %v8430_v61 }
 0x543   :  { %v8439_v4 = vmax.f32 %v4829_v9, 0.0 }
 0x544   :  { %v8441_v0 = vmax.f32 %v4830_v10, 0.0  ;;  %7178 = vrot.lane.b32.xlu0 %v7177_v11, %s7306_s29 }
 0x545   :  { %v7227_v40 = vpack.i.bf16 %v8439_v4, %v8432_v3 }
 0x546   :  { %4874 = vrot.lane.b32.xlu1 %v8441_v0, %s7306_s29 }
 0x548   :  { %7183 = vrot.lane.b32.xlu0 %v7172_v60, %s7308_s10 }
 0x54a   :  { %4872 = vrot.lane.b32.xlu1 %v8439_v4, %s7306_s29 }
 0x54c   :  { %4847 = vrot.lane.b32.xlu0 %v8441_v0, %s7308_s10 }
 0x54e   :  { %7188 = vrot.lane.b32.xlu1 %v7177_v11, %s7308_s10 }
 0x550   :  { %7193 = vrot.lane.b32.xlu0 %v7172_v60, %s7309_s11 }
 0x552   :  { %4845 = vrot.lane.b32.xlu1 %v8439_v4, %s7308_s10 }
 0x554   :  { %7198 = vrot.lane.b32.xlu0 %v7177_v11, %s7309_s11 }
 0x556   :  { %5189 = vrot.lane.b32.xlu1 %v8441_v0, %s7309_s11 }
 0x558   :  { %7203 = vrot.lane.b32.xlu0 %v7172_v60, %s7310_s12 }
 0x55a   :  { %5187 = vrot.lane.b32.xlu1 %v8439_v4, %s7309_s11 }
 0x55c   :  { %5366 = vrot.lane.b32.xlu0 %v8441_v0, %s7310_s12 }
 0x55e   :  { %7208 = vrot.lane.b32.xlu1 %v7177_v11, %s7310_s12 }
 0x560   :  { %7213 = vrot.lane.b32.xlu0 %v7172_v60, %s7311_s13 }
 0x562   :  { %5364 = vrot.lane.b32.xlu1 %v8439_v4, %s7310_s12 }
 0x564   :  { %5700 = vrot.lane.b32.xlu0 %v8439_v4, %s7311_s13 }
 0x566   :  { %7218 = vrot.lane.b32.xlu1 %v7177_v11, %s7311_s13 }
 0x568   :  { %7223 = vrot.lane.b32.xlu0 %v7172_v60, %s7312_s14 }
 0x56a   :  { %5702 = vrot.lane.b32.xlu1 %v8441_v0, %s7311_s13 }
 0x56c   :  { %7228 = vrot.lane.b32.xlu0 %v7227_v40, %s7312_s14 }
 0x56e   :  { %5873 = vrot.lane.b32.xlu1 %v8430_v61, %s7312_s14 }
 0x570   :  { %7233 = vrot.lane.b32.xlu0 %v7172_v60, %s7313_s15 }
 0x572   :  { %5879 = vrot.lane.b32.xlu1 %v8441_v0, %s7312_s14 }
 0x574   :  { %6054 = vrot.lane.b32.xlu0 %v8439_v4, %s7313_s15 }
 0x576   :  { %7238 = vrot.lane.b32.xlu1 %v7177_v11, %s7313_s15 }
 0x578   :  { %7243 = vrot.lane.b32.xlu0 %v7172_v60, %s7314_s16 }
 0x57a   :  { %6056 = vrot.lane.b32.xlu1 %v8441_v0, %s7313_s15 }
 0x57c   :  { %7248 = vrot.lane.b32.xlu0 %v7227_v40, %s7314_s16 }
 0x57e   :  { %6227 = vrot.lane.b32.xlu1 %v8430_v61, %s7314_s16 }
 0x580   :  { %6404 = vperm.xlu0 %7010, %v6907_v13  }
 0x582   :  { %6233 = vrot.lane.b32.xlu1 %v8441_v0, %s7314_s16 }
 0x586   :  { %6430 = vperm.xlu1 %7171, %v6427_v15  }
 0x5b2   :  { %v7174_v38 = vpop.permute.xlu0 %7173 }
 0x5b3   :  { %v7176_v2 = vunpack.i.h.bf16 %v7174_v38  ;;  %v7175_v19 = vunpack.i.l.bf16 %v7174_v38 }
 0x5b5   :  { %v4880_v6 = vsel %vm73_vm0, %v7175_v19, %v7176_v2 }
 0x5b6   :  { %v4886_v16 = vpack.c.bf16 %v4880_v6, %v4880_v6  ;;  %v7179_v58 = vpop.permute.xlu0 %7178 }
 0x5b7   :  { %v7181_v39 = vunpack.i.h.bf16 %v7179_v58  ;;  %v7180_v22 = vunpack.i.l.bf16 %v7179_v58 }
 0x5b8   :  { %6846 = vmatprep.subr.msk.bf16.mxu1 %vm93_vm1, %v4886_v16  ;;  %v4875_v23 = vpop.permute.xlu1 %4874 }
 0x5b9   :  { %v4878_v25 = vsel %vm73_vm0, %v7180_v22, %v7181_v39  ;;  %v4881_v7 = vsel %vm73_vm0, %v4875_v23, %v7175_v19  ;;  %v4879_v26 = vsel %vm73_vm0, %v7176_v2, %v7180_v22  ;;  %v4857_v2 = vpack.c.bf16 %v6844_v63, %v6844_v63 }
 0x5ba   :  { %v4888_v28 = vpack.c.bf16 %v4878_v25, %v4878_v25  ;;  %v4885_v29 = vpack.c.bf16 %v4881_v7, %v4881_v7  ;;  %v7184_v57 = vpop.permute.xlu0 %7183  ;;  %v4887_v30 = vpack.c.bf16 %v4879_v26, %v4879_v26 }
 0x5bb   :  { %v7186_v31 = vunpack.i.h.bf16 %v7184_v57  ;;  %v7185_v32 = vunpack.i.l.bf16 %v7184_v57 }
 0x5bc   :  { %6848 = vmatprep.subr.msk.bf16.mxu0 %vm93_vm1, %v4888_v28  ;;  %v4873_v1 = vpop.permute.xlu1 %4872  ;;  %v4895_v33 = vsel %vm93_vm1, %v4885_v29, 0  ;;  %v4901_v34 = vsel %vm93_vm1, %v4887_v30, 0 }
 0x5bd   :  { %v4853_v37 = vsel %vm46_vm2, %v7185_v32, %v7186_v31  ;;  %v4876_v42 = vsel %vm73_vm0, %v4873_v1, %v4875_v23  ;;  %v4877_v44 = vsel %vm73_vm0, %v7181_v39, %v4873_v1  ;;  %4913 = vmatpush1.bf16.msra.mxu1 %v4895_v33  ;;  %4954 = vmatpush1.bf16.msra.mxu0 %v4901_v34 }
 0x5be   :  { %v4859_v47 = vpack.c.bf16 %v4853_v37, %v4853_v37  ;;  %v4889_v48 = vpack.c.bf16 %v4877_v44, %v4877_v44  ;;  %v4890_v50 = vpack.c.bf16 %v4876_v42, %v4876_v42  ;;  %v4848_v51 = vpop.permute.xlu0 %4847 }
 0x5bf   :  { %v4854_v53 = vsel %vm46_vm2, %v4848_v51, %v7185_v32 }
 0x5c0   :  { %v4858_v54 = vpack.c.bf16 %v4854_v53, %v4854_v53  ;;  %6847 = vmatmul.mubr.msk.bf16.vlgmr.msra.gmra.mrb[160].mxu1 %vm89_vm3, %v4884_v35  ;;  %6849 = vmatmul.mubr.msk.bf16.vlgmr.msra.gmra.mrb[164].mxu0 %vm89_vm3, %v4884_v35  ;;  %v7189_v55 = vpop.permute.xlu1 %7188  ;;  %v4907_v59 = vsel %vm93_vm1, %v4889_v48, 0 }
 0x5c1   :  { %6850 = vmatprep.subr.msk.bf16.mxu1 %vm93_vm1, %v4890_v50  ;;  %6852 = vmatprep.subr.msk.bf16.mxu0 %vm93_vm1, %v4859_v47  ;;  %v7191_v60 = vunpack.i.h.bf16 %v7189_v55  ;;  %v7190_v62 = vunpack.i.l.bf16 %v7189_v55 }
 0x5c2   :  { %4995 = vmatpush1.bf16.msra.mxu1 %v4907_v59  ;;  %v7194_v5 = vpop.permute.xlu0 %7193  ;;  %v5039_v9 = vsel %vm93_vm1, %v4858_v54, 0  ;;  %5026 = vmatprep.mubr.bf16.mxu1 %v7307_v8 }
 0x5c3   :  { %v4851_v10 = vsel %vm46_vm2, %v7190_v62, %v7191_v60  ;;  %v7196_v11 = vunpack.i.h.bf16 %v7194_v5  ;;  %v7195_v40 = vunpack.i.l.bf16 %v7194_v5  ;;  %5057 = vmatpush1.bf16.msra.mxu0 %v5039_v9  ;;  %5088 = vmatprep.mubr.bf16.mxu0 %v7307_v8  ;;  %v4852_v13 = vsel %vm46_vm2, %v7186_v31, %v7190_v62  ;;  %v6858_v5 = vld [vmem:[%s8817_s1 + $0xe8] sm:$0xff] }
 0x5c4   :  { %v4861_v15 = vpack.c.bf16 %v4851_v10, %v4851_v10  ;;  %v4846_v38 = vpop.permute.xlu1 %4845  ;;  %v4860_v19 = vpack.c.bf16 %v4852_v13, %v4852_v13 }
 0x5c5   :  { %v5195_v6 = vsel %vm391_vm4, %v7195_v40, %v7196_v11  ;;  %v4849_v16 = vsel %vm46_vm2, %v4846_v38, %v4848_v51  ;;  %v4850_v58 = vsel %vm46_vm2, %v7191_v60, %v4846_v38 }
 0x5c6   :  { %v5201_v39 = vpack.c.bf16 %v5195_v6, %v5195_v6  ;;  %v4862_v22 = vpack.c.bf16 %v4850_v58, %v4850_v58  ;;  %v4863_v23 = vpack.c.bf16 %v4849_v16, %v4849_v16  ;;  %v7199_v25 = vpop.permute.xlu0 %7198  ;;  %6854 = vmatprep.subr.msk.bf16.mxu1 %vm93_vm1, %v4861_v15  ;;  %v5045_v7 = vsel %vm93_vm1, %v4860_v19, 0  ;;  %v6865_v58 = vld [vmem:[%s8817_s1 + $0xf0] sm:$0xff] }
 0x5c7   :  { %v7201_v26 = vunpack.i.h.bf16 %v7199_v25  ;;  %v7200_v27 = vunpack.i.l.bf16 %v7199_v25  ;;  %v5376_v25 = vpack.c.bf16 %v6865_v58, %v6865_v58 }
 0x5c8   :  { %6851 = vmatmul.mubr.msk.bf16.vlgmr.msra.gmra.mrb[164].mxu1 %vm89_vm3, %v4884_v35  ;;  %6853 = vmatmul.mubr.msk.bf16.vlgmr.msra.gmra.mrb[168].mxu0 %vm89_vm3, %v4857_v2  ;;  %v5190_v28 = vpop.permute.xlu1 %5189  ;;  %v5051_v29 = vsel %vm93_vm1, %v4862_v22, 0 }
 0x5c9   :  { %v5193_v57 = vsel %vm391_vm4, %v7200_v27, %v7201_v26  ;;  %6856 = vmatprep.subr.msk.bf16.mxu0 %vm93_vm1, %v4863_v23  ;;  %v5196_v30 = vsel %vm391_vm4, %v5190_v28, %v7195_v40  ;;  %5098 = vmatpush1.bf16.msra.mxu1 %v5045_v7  ;;  %v5194_v31 = vsel %vm391_vm4, %v7196_v11, %v7200_v27 }
 0x5ca   :  { %v5203_v32 = vpack.c.bf16 %v5193_v57, %v5193_v57  ;;  %5139 = vmatpush1.bf16.msra.mxu0 %v5051_v29  ;;  %6859 = vmatprep.subr.msk.bf16.mxu1 %vm93_vm1, %v5201_v39  ;;  %v7204_v1 = vpop.permute.xlu0 %7203  ;;  %v5200_v35 = vpack.c.bf16 %v5196_v30, %v5196_v30  ;;  %v5202_v42 = vpack.c.bf16 %v5194_v31, %v5194_v31 }
 0x5cb   :  { %v7206_v33 = vunpack.i.h.bf16 %v7204_v1  ;;  %v7205_v34 = vunpack.i.l.bf16 %v7204_v1  ;;  %5129 = vmatprep.mubr.bf16.mxu1 %v7307_v8  ;;  %5170 = vmatprep.mubr.bf16.mxu0 %v7307_v8  ;;  %v5199_v40 = vpack.c.bf16 %v6858_v5, %v6858_v5  ;;  %v5537_v29 = vpack.c.bf16 %v8424_v45, %v8424_v45 }
 0x5cc   :  { %v5188_v37 = vpop.permute.xlu1 %5187  ;;  %6861 = vmatprep.subr.msk.bf16.mxu0 %vm93_vm1, %v5203_v32  ;;  %v5210_v54 = vsel %vm93_vm1, %v5200_v35, 0  ;;  %v5216_v55 = vsel %vm93_vm1, %v5202_v42, 0  ;;  %v5539_v57 = vpack.c.bf16 %v8432_v3, %v8432_v3  ;;  %v5536_v45 = vpack.c.bf16 %v8422_v41, %v8422_v41 }
 0x5cd   :  { %v5372_v44 = vsel %vm569_vm5, %v7205_v34, %v7206_v33  ;;  %v5191_v47 = vsel %vm391_vm4, %v5188_v37, %v5190_v28  ;;  %v5192_v59 = vsel %vm391_vm4, %v7201_v26, %v5188_v37  ;;  %v5538_v3 = vpack.c.bf16 %v8430_v61, %v8430_v61  ;;  %v6872_v61 = vld [vmem:[%s8817_s1 + $0xf8] sm:$0xff] }
 0x5ce   :  { %v5378_v48 = vpack.c.bf16 %v5372_v44, %v5372_v44  ;;  %v5205_v50 = vpack.c.bf16 %v5191_v47, %v5191_v47  ;;  %v5367_v51 = vpop.permute.xlu0 %5366  ;;  %v5204_v9 = vpack.c.bf16 %v5192_v59, %v5192_v59  ;;  %v5546_v42 = vsel %vm93_vm1, %v5536_v45, 0 }
 0x5cf   :  { %v5373_v60 = vsel %vm569_vm5, %v5367_v51, %v7205_v34  ;;  %v5552_v44 = vsel %vm93_vm1, %v5538_v3, 0  ;;  %v5541_v41 = vpack.c.bf16 %v8441_v0, %v8441_v0  ;;  %v5535_v0 = vpack.c.bf16 %v6872_v61, %v6872_v61 }
 0x5d0   :  { %v7209_v53 = vpop.permute.xlu1 %7208  ;;  %6855 = vmatmul.mubr.msk.bf16.vlgmr.msra.gmra.mrb[168].mxu1 %vm89_vm3, %v4857_v2  ;;  %6857 = vmatmul.mubr.msk.bf16.vlgmr.msra.gmra.mrb[172].mxu0 %vm89_vm3, %v4857_v2  ;;  %v5377_v10 = vpack.c.bf16 %v5373_v60, %v5373_v60  ;;  %v5222_v19 = vsel %vm93_vm1, %v5204_v9, 0 }
 0x5d1   :  { %v7211_v62 = vunpack.i.h.bf16 %v7209_v53  ;;  %v7210_v63 = vunpack.i.l.bf16 %v7209_v53  ;;  %5228 = vmatpush1.bf16.msra.mxu1 %v5210_v54  ;;  %5269 = vmatpush1.bf16.msra.mxu0 %v5216_v55 }
 0x5d2   :  { %6863 = vmatprep.subr.msk.bf16.mxu1 %vm93_vm1, %v5205_v50  ;;  %6866 = vmatprep.subr.msk.bf16.mxu0 %vm93_vm1, %v5378_v48  ;;  %v5387_v6 = vsel %vm93_vm1, %v5377_v10, 0  ;;  %v7214_v22 = vpop.permute.xlu0 %7213 }
 0x5d3   :  { %5259 = vmatprep.mubr.bf16.mxu1 %v7307_v8  ;;  %5300 = vmatprep.mubr.bf16.mxu0 %v7307_v8  ;;  %v5370_v13 = vsel %vm569_vm5, %v7210_v63, %v7211_v62  ;;  %v5371_v39 = vsel %vm569_vm5, %v7206_v33, %v7210_v63  ;;  %v7216_v32 = vunpack.i.h.bf16 %v7214_v22  ;;  %v7215_v33 = vunpack.i.l.bf16 %v7214_v22 }
 0x5d4   :  { %v5365_v11 = vpop.permute.xlu1 %5364  ;;  %v5380_v2 = vpack.c.bf16 %v5370_v13, %v5370_v13  ;;  %v5379_v7 = vpack.c.bf16 %v5371_v39, %v5371_v39 }
 0x5d5   :  { %v5368_v15 = vsel %vm569_vm5, %v5365_v11, %v5367_v51  ;;  %v5369_v16 = vsel %vm569_vm5, %v7211_v62, %v5365_v11  ;;  %v5708_v48 = vsel %vm906_vm6, %v7215_v33, %v7216_v32  ;;  %v5540_v51 = vpack.c.bf16 %v8439_v4, %v8439_v4 }
 0x5d6   :  { %v5382_v38 = vpack.c.bf16 %v5368_v15, %v5368_v15  ;;  %v5381_v23 = vpack.c.bf16 %v5369_v16, %v5369_v16  ;;  %v5393_v27 = vsel %vm93_vm1, %v5379_v7, 0  ;;  %v5701_v31 = vpop.permute.xlu0 %5700  ;;  %v5713_v53 = vpack.c.bf16 %v5708_v48, %v5708_v48 }
 0x5d7   :  { %v5558_v5 = vsel %vm93_vm1, %v5540_v51, 0 }
 0x5d8   :  { %6860 = vmatmul.mubr.msk.bf16.vlgmr.msra.gmra.mrb[172].mxu1 %vm89_vm3, %v5199_v40  ;;  %6862 = vmatmul.mubr.msk.bf16.vlgmr.msra.gmra.mrb[176].mxu0 %vm89_vm3, %v5199_v40  ;;  %v7219_v26 = vpop.permute.xlu1 %7218  ;;  %v5399_v28 = vsel %vm93_vm1, %v5381_v23, 0  ;;  %v5723_v9 = vsel %vm93_vm1, %v5713_v53, 0 }
 0x5d9   :  { %5310 = vmatpush1.bf16.msra.mxu1 %v5222_v19  ;;  %5405 = vmatpush1.bf16.msra.mxu0 %v5387_v6  ;;  %v7220_v30 = vunpack.i.l.bf16 %v7219_v26  ;;  %v7221_v47 = vunpack.i.h.bf16 %v7219_v26 }
 0x5da   :  { %6868 = vmatprep.subr.msk.bf16.mxu1 %vm93_vm1, %v5380_v2  ;;  %6870 = vmatprep.subr.msk.bf16.mxu0 %vm93_vm1, %v5382_v38  ;;  %v8614_v37 = vpop.permute.xlu0 %7223 }
 0x5db   :  { %5341 = vmatprep.mubr.bf16.mxu1 %v7307_v8  ;;  %5436 = vmatprep.mubr.bf16.mxu0 %v7307_v8  ;;  %v5707_v34 = vsel %vm906_vm6, %v7216_v32, %v7220_v30  ;;  %v5705_v54 = vsel %vm906_vm6, %v7221_v47, %v5701_v31  ;;  %v5706_v13 = vsel %vm906_vm6, %v7220_v30, %v7221_v47  ;;  %v7226_v15 = vunpack.i.h.bf16 %v8614_v37  ;;  %v6886_v47 = vld [vmem:[%s8817_s1 + $0x108] sm:$0xff] }
 0x5dc   :  { %v5703_v1 = vpop.permute.xlu1 %5702  ;;  %v5714_v35 = vpack.c.bf16 %v5707_v34, %v5707_v34  ;;  %v5716_v60 = vpack.c.bf16 %v5705_v54, %v5705_v54  ;;  %v5715_v6 = vpack.c.bf16 %v5706_v13, %v5706_v13  ;;  %v7225_v16 = vunpack.i.l.bf16 %v8614_v37 }
 0x5dd   :  { %v5709_v55 = vsel %vm906_vm6, %v5703_v1, %v7215_v33  ;;  %v5704_v4 = vsel %vm906_vm6, %v5701_v31, %v5703_v1 }
 0x5de   :  { %v7229_v59 = vpop.permute.xlu0 %7228  ;;  %v5718_v62 = vpack.c.bf16 %v5709_v55, %v5709_v55  ;;  %v5717_v38 = vpack.c.bf16 %v5704_v4, %v5704_v4  ;;  %v5729_v7 = vsel %vm93_vm1, %v5715_v6, 0 }
 0x5df   :  { %v7231_v10 = vunpack.i.h.bf16 %v7229_v59  ;;  %v7230_v11 = vunpack.i.l.bf16 %v7229_v59 }
 0x5e0   :  { %6864 = vmatmul.mubr.msk.bf16.vlgmr.msra.gmra.mrb[176].mxu1 %vm89_vm3, %v5199_v40  ;;  %6867 = vmatmul.mubr.msk.bf16.vlgmr.msra.gmra.mrb[180].mxu0 %vm89_vm3, %v5376_v25  ;;  %v5874_v50 = vpop.permute.xlu1 %5873  ;;  %v6879_v40 = vld [vmem:[%s8817_s1 + $0x100] sm:$0xff]  ;;  %v5735_v26 = vsel %vm93_vm1, %v5717_v38, 0 }
 0x5e1   :  { %5446 = vmatpush1.bf16.msra.mxu1 %v5393_v27  ;;  %5487 = vmatpush1.bf16.msra.mxu0 %v5399_v28  ;;  %v5712_v19 = vpack.c.bf16 %v6879_v40, %v6879_v40  ;;  %v5882_v58 = vsel %vm1084_vm7, %v7230_v11, %v7231_v10  ;;  %v5884_v39 = vsel %vm1084_vm7, %v7226_v15, %v5874_v50 }
 0x5e2   :  { %6873 = vmatprep.subr.msk.bf16.mxu1 %vm93_vm1, %v5537_v29  ;;  %6875 = vmatprep.subr.msk.bf16.mxu0 %vm93_vm1, %v5539_v57  ;;  %v7234_v2 = vpop.permute.xlu0 %7233  ;;  %v5893_v23 = vpack.c.bf16 %v5882_v58, %v5882_v58  ;;  %v5883_v27 = vsel %vm1084_vm7, %v5874_v50, %v7230_v11  ;;  %v5885_v29 = vsel %vm1084_vm7, %v7225_v16, %v7226_v15 }
 0x5e3   :  { %5477 = vmatprep.mubr.bf16.mxu1 %v7307_v8  ;;  %5518 = vmatprep.mubr.bf16.mxu0 %v7307_v8  ;;  %v7236_v30 = vunpack.i.h.bf16 %v7234_v2  ;;  %v5892_v31 = vpack.c.bf16 %v5883_v27, %v5883_v27  ;;  %v5890_v32 = vpack.c.bf16 %v5885_v29, %v5885_v29  ;;  %v7235_v1 = vunpack.i.l.bf16 %v7234_v2 }
 0x5e4   :  { %v5880_v63 = vpop.permute.xlu1 %5879 }
 0x5e5   :  { %v5886_v45 = vsel %vm1084_vm7, %v5880_v63, %v7225_v16  ;;  %v5900_v37 = vsel %vm93_vm1, %v5890_v32, 0  ;;  %v6062_v61 = vsel %vm1262_vm8, %v7235_v1, %v7236_v30 }
 0x5e6   :  { %v6055_v57 = vpop.permute.xlu0 %6054  ;;  %v5895_v33 = vpack.c.bf16 %v5886_v45, %v5886_v45  ;;  %v6067_v51 = vpack.c.bf16 %v6062_v61, %v6062_v61 }
 0x5e8   :  { %6869 = vmatmul.mubr.msk.bf16.vlgmr.msra.gmra.mrb[180].mxu1 %vm89_vm3, %v5376_v25  ;;  %6871 = vmatmul.mubr.msk.bf16.vlgmr.msra.gmra.mrb[184].mxu0 %vm89_vm3, %v5376_v25  ;;  %v7239_v22 = vpop.permute.xlu1 %7238  ;;  %v5891_v25 = vpack.c.bf16 %v5884_v39, %v5884_v39 }
 0x5e9   :  { %5564 = vmatpush1.bf16.msra.mxu1 %v5546_v42  ;;  %5605 = vmatpush1.bf16.msra.mxu0 %v5552_v44  ;;  %v7240_v28 = vunpack.i.l.bf16 %v7239_v22  ;;  %v5906_v42 = vsel %vm93_vm1, %v5892_v31, 0  ;;  %v5881_v44 = vsel %vm1084_vm7, %v7231_v10, %v5880_v63  ;;  %v6077_v63 = vsel %vm93_vm1, %v6067_v51, 0  ;;  %v6893_v10 = vld [vmem:[%s8817_s1 + $0x110] sm:$0xff] }
 0x5ea   :  { %6877 = vmatprep.subr.msk.bf16.mxu1 %vm93_vm1, %v5541_v41  ;;  %6880 = vmatprep.subr.msk.bf16.mxu0 %vm93_vm1, %v5714_v35  ;;  %v8674_v35 = vpop.permute.xlu0 %7243  ;;  %v7241_v41 = vunpack.i.h.bf16 %v7239_v22  ;;  %v5894_v50 = vpack.c.bf16 %v5881_v44, %v5881_v44  ;;  %v6066_v38 = vpack.c.bf16 %v6893_v10, %v6893_v10 }
 0x5eb   :  { %5595 = vmatprep.mubr.bf16.mxu1 %v7307_v8  ;;  %5636 = vmatprep.mubr.bf16.mxu0 %v7307_v8  ;;  %v6061_v3 = vsel %vm1262_vm8, %v7236_v30, %v7240_v28  ;;  %v7246_v13 = vunpack.i.h.bf16 %v8674_v35 }
 0x5ec   :  { %v6068_v34 = vpack.c.bf16 %v6061_v3, %v6061_v3  ;;  %v6057_v48 = vpop.permute.xlu1 %6056  ;;  %v6059_v53 = vsel %vm1262_vm8, %v7241_v41, %v6055_v57  ;;  %v6060_v11 = vsel %vm1262_vm8, %v7240_v28, %v7241_v41 }
 0x5ed   :  { %v6063_v54 = vsel %vm1262_vm8, %v6057_v48, %v7235_v1  ;;  %v6070_v59 = vpack.c.bf16 %v6059_v53, %v6059_v53  ;;  %v6069_v2 = vpack.c.bf16 %v6060_v11, %v6060_v11  ;;  %v6900_v1 = vld [vmem:[%s8817_s1 + $0x118] sm:$0xff] }
 0x5ee   :  { %v7249_v55 = vpop.permute.xlu0 %7248  ;;  %v6243_v3 = vpack.c.bf16 %v6900_v1, %v6900_v1 }
 0x5ef   :  { %v7250_v4 = vunpack.i.l.bf16 %v7249_v55  ;;  %v6083_v22 = vsel %vm93_vm1, %v6069_v2, 0 }
 0x5f0   :  { %6874 = vmatmul.mubr.msk.bf16.vlgmr.msra.gmra.mrb[184].mxu1 %vm89_vm3, %v5535_v0  ;;  %6876 = vmatmul.mubr.msk.bf16.vlgmr.msra.gmra.mrb[188].mxu0 %vm89_vm3, %v5535_v0  ;;  %v6228_v40 = vpop.permute.xlu1 %6227 }
 0x5f1   :  { %5646 = vmatpush1.bf16.msra.mxu1 %v5558_v5  ;;  %5741 = vmatpush1.bf16.msra.mxu0 %v5723_v9  ;;  %v6058_v5 = vsel %vm1262_vm8, %v6055_v57, %v6057_v48  ;;  %v7251_v9 = vunpack.i.h.bf16 %v7249_v55  ;;  %v6238_v16 = vsel %vm1440_vm9, %v7246_v13, %v6228_v40 }
 0x5f2   :  { %6882 = vmatprep.subr.msk.bf16.mxu1 %vm93_vm1, %v5716_v60  ;;  %6884 = vmatprep.subr.msk.bf16.mxu0 %vm93_vm1, %v5718_v62  ;;  %v6072_v60 = vpack.c.bf16 %v6063_v54, %v6063_v54  ;;  %v5912_v62 = vsel %vm93_vm1, %v5894_v50, 0  ;;  %v6071_v15 = vpack.c.bf16 %v6058_v5, %v6058_v5  ;;  %v6245_v39 = vpack.c.bf16 %v6238_v16, %v6238_v16 }
 0x5f3   :  { %5677 = vmatprep.mubr.bf16.mxu1 %v7307_v8  ;;  %5772 = vmatprep.mubr.bf16.mxu0 %v7307_v8  ;;  %v6236_v6 = vsel %vm1440_vm9, %v7250_v4, %v7251_v9 }
 0x5f4   :  { %v6247_v58 = vpack.c.bf16 %v6236_v6, %v6236_v6 }
 0x5f8   :  { %6878 = vmatmul.mubr.msk.bf16.vlgmr.msra.gmra.mrb[188].mxu1 %vm89_vm3, %v5535_v0  ;;  %6881 = vmatmul.mubr.msk.bf16.vlgmr.msra.gmra.mrb[192].mxu0 %vm89_vm3, %v5712_v19  ;;  %v5889_v0 = vpack.c.bf16 %v6886_v47, %v6886_v47 }
 0x5f9   :  { %5782 = vmatpush1.bf16.msra.mxu1 %v5729_v7  ;;  %5823 = vmatpush1.bf16.msra.mxu0 %v5735_v26  ;;  %v6234_v26 = vpop.permute.xlu1 %6233 }
 0x5fa   :  { %6887 = vmatprep.subr.msk.bf16.mxu1 %vm93_vm1, %v5891_v25  ;;  %6889 = vmatprep.subr.msk.bf16.mxu0 %vm93_vm1, %v5893_v23  ;;  %v6089_v23 = vsel %vm93_vm1, %v6071_v15, 0  ;;  %v6237_v25 = vsel %vm1440_vm9, %v6228_v40, %v7250_v4  ;;  %v6235_v32 = vsel %vm1440_vm9, %v7251_v9, %v6234_v26 }
 0x5fb   :  { %5813 = vmatprep.mubr.bf16.mxu1 %v7307_v8  ;;  %5854 = vmatprep.mubr.bf16.mxu0 %v7307_v8  ;;  %v6246_v27 = vpack.c.bf16 %v6237_v25, %v6237_v25  ;;  %v6248_v45 = vpack.c.bf16 %v6235_v32, %v6235_v32 }
 0x5fd   :  { %v6260_v31 = vsel %vm93_vm1, %v6246_v27, 0  ;;  %v6266_v17 = vsel %vm93_vm1, %v6248_v45, 0 }
 0x600   :  { %6883 = vmatmul.mubr.msk.bf16.vlgmr.msra.gmra.mrb[192].mxu1 %vm89_vm3, %v5712_v19  ;;  %6885 = vmatmul.mubr.msk.bf16.vlgmr.msra.gmra.mrb[196].mxu0 %vm89_vm3, %v5712_v19  ;;  %v7245_v19 = vunpack.i.l.bf16 %v8674_v35 }
 0x601   :  { %5918 = vmatpush1.bf16.msra.mxu1 %v5900_v37  ;;  %5959 = vmatpush1.bf16.msra.mxu0 %v5906_v42 }
 0x602   :  { %6891 = vmatprep.subr.msk.bf16.mxu1 %vm93_vm1, %v5895_v33  ;;  %6894 = vmatprep.subr.msk.bf16.mxu0 %vm93_vm1, %v6068_v34  ;;  %v6239_v7 = vsel %vm1440_vm9, %v7245_v19, %v7246_v13  ;;  %v6240_v29 = vsel %vm1440_vm9, %v6234_v26, %v7245_v19 }
 0x603   :  { %5949 = vmatprep.mubr.bf16.mxu1 %v7307_v8  ;;  %5990 = vmatprep.mubr.bf16.mxu0 %v7307_v8  ;;  %v6244_v28 = vpack.c.bf16 %v6239_v7, %v6239_v7  ;;  %v6249_v57 = vpack.c.bf16 %v6240_v29, %v6240_v29 }
 0x605   :  { %v6254_v30 = vsel %vm93_vm1, %v6244_v28, 0 }
 0x608   :  { %6888 = vmatmul.mubr.msk.bf16.vlgmr.msra.gmra.mrb[196].mxu1 %vm89_vm3, %v5889_v0  ;;  %6890 = vmatmul.mubr.msk.bf16.vlgmr.msra.gmra.mrb[200].mxu0 %vm89_vm3, %v5889_v0 }
 0x609   :  { %6000 = vmatpush1.bf16.msra.mxu1 %v5912_v62  ;;  %6095 = vmatpush1.bf16.msra.mxu0 %v6077_v63 }
 0x60a   :  { %6896 = vmatprep.subr.msk.bf16.mxu1 %vm93_vm1, %v6070_v59  ;;  %6898 = vmatprep.subr.msk.bf16.mxu0 %vm93_vm1, %v6072_v60 }
 0x60b   :  { %6031 = vmatprep.mubr.bf16.mxu1 %v7307_v8  ;;  %6126 = vmatprep.mubr.bf16.mxu0 %v7307_v8 }
 0x610   :  { %6892 = vmatmul.mubr.msk.bf16.vlgmr.msra.gmra.mrb[200].mxu1 %vm89_vm3, %v5889_v0  ;;  %6895 = vmatmul.mubr.msk.bf16.vlgmr.msra.gmra.mrb[204].mxu0 %vm89_vm3, %v6066_v38 }
 0x611   :  { %6136 = vmatpush1.bf16.msra.mxu1 %v6083_v22  ;;  %6177 = vmatpush1.bf16.msra.mxu0 %v6089_v23 }
 0x612   :  { %6901 = vmatprep.subr.msk.bf16.mxu1 %vm93_vm1, %v6245_v39  ;;  %6903 = vmatprep.subr.msk.bf16.mxu0 %vm93_vm1, %v6247_v58 }
 0x613   :  { %6167 = vmatprep.mubr.bf16.mxu1 %v7307_v8  ;;  %6208 = vmatprep.mubr.bf16.mxu0 %v7307_v8 }
 0x618   :  { %6897 = vmatmul.mubr.msk.bf16.vlgmr.msra.gmra.mrb[204].mxu1 %vm89_vm3, %v6066_v38  ;;  %6899 = vmatmul.mubr.msk.bf16.vlgmr.msra.gmra.mrb[208].mxu0 %vm89_vm3, %v6066_v38 }
 0x619   :  { %6272 = vmatpush1.bf16.msra.mxu1 %v6254_v30  ;;  %6313 = vmatpush1.bf16.msra.mxu0 %v6260_v31 }
 0x61a   :  { %6905 = vmatprep.subr.msk.bf16.mxu1 %vm93_vm1, %v6249_v57  ;;  %6303 = vmatprep.mubr.bf16.mxu1 %v7307_v8 }
 0x61b   :  { %6344 = vmatprep.mubr.bf16.mxu0 %v7307_v8 }
 0x620   :  { %6902 = vmatmul.mubr.msk.bf16.vlgmr.msra.gmra.mrb[208].mxu1 %vm89_vm3, %v6243_v3  ;;  %6904 = vmatmul.mubr.msk.bf16.vlgmr.msra.gmra.mrb[212].mxu0 %vm89_vm3, %v6243_v3 }
 0x621   :  { %6354 = vmatpush1.bf16.msra.mxu1 %v6266_v17  ;;  %6385 = vmatprep.mubr.bf16.mxu1 %v7307_v8 }
 0x622   :  { %6486 = vmatprep.mubr.bf16.mxu0 %v7307_v8 }
 0x628   :  { %6906 = vmatmul.mubr.msk.bf16.vlgmr.msra.gmra.mrb[212].mxu1 %vm89_vm3, %v6243_v3 }
 0x629   :  { %6527 = vmatprep.mubr.bf16.mxu1 %v7307_v8 }
 0x693   :  { %v4946_v33 = vpop.f32.mrb[160].mxu1  ;;  %v4987_v34 = vpop.f32.mrb[164].mxu0 }
 0x694   :  { %v4948_v35 = vpop.f32.mrb[161].mxu1  ;;  %v4989_v37 = vpop.f32.mrb[165].mxu0 }
 0x695   :  { %v4950_v42 = vpop.f32.mrb[162].mxu1  ;;  %v4991_v44 = vpop.f32.mrb[166].mxu0 }
 0x696   :  { %v4951_v41 = vpop.f32.mrb[163].mxu1  ;;  %v4992_v47 = vpop.f32.mrb[167].mxu0 }
 0x69b   :  { %v5028_v61 = vpop.f32.mrb[164].mxu1  ;;  %v5090_v48 = vpop.f32.mrb[168].mxu0 }
 0x69c   :  { %v5091_v50 = vadd.f32 %v5090_v48, %v4946_v33  ;;  %v5030_v0 = vpop.f32.mrb[165].mxu1  ;;  %v5092_v51 = vpop.f32.mrb[169].mxu0 }
 0x69d   :  { %v5093_v53 = vadd.f32 %v5092_v51, %v4948_v35  ;;  %v5032_v54 = vpop.f32.mrb[166].mxu1  ;;  %v5094_v55 = vpop.f32.mrb[170].mxu0 }
 0x69e   :  { %v5033_v59 = vpop.f32.mrb[167].mxu1  ;;  %v5095_v60 = vpop.f32.mrb[171].mxu0 }
 0x6a3   :  { %v5131_v62 = vpop.f32.mrb[168].mxu1  ;;  %v5172_v63 = vpop.f32.mrb[172].mxu0 }
 0x6a4   :  { %v5132_v5 = vadd.f32 %v5131_v62, %v4987_v34  ;;  %v5173_v9 = vadd.f32 %v5172_v63, %v5028_v61  ;;  %v5133_v4 = vpop.f32.mrb[169].mxu1  ;;  %v5174_v10 = vpop.f32.mrb[173].mxu0 }
 0x6a5   :  { %v5134_v11 = vadd.f32 %v5133_v4, %v4989_v37  ;;  %v5175_v40 = vadd.f32 %v5174_v10, %v5030_v0  ;;  %v5135_v13 = vpop.f32.mrb[170].mxu1  ;;  %v5176_v15 = vpop.f32.mrb[174].mxu0 }
 0x6a6   :  { %v5136_v38 = vpop.f32.mrb[171].mxu1  ;;  %v5177_v2 = vpop.f32.mrb[175].mxu0 }
 0x6ab   :  { %v5261_v19 = vpop.f32.mrb[172].mxu1  ;;  %v5302_v6 = vpop.f32.mrb[176].mxu0 }
 0x6ac   :  { %v5350_v16 = vadd.f32 %v5261_v19, %v5091_v50  ;;  %v5352_v58 = vadd.f32 %v5302_v6, %v5132_v5  ;;  %v5263_v39 = vpop.f32.mrb[173].mxu1  ;;  %v5304_v22 = vpop.f32.mrb[177].mxu0 }
 0x6ad   :  { %v5351_v23 = vadd.f32 %v5263_v39, %v5093_v53  ;;  %v5353_v25 = vadd.f32 %v5304_v22, %v5134_v11  ;;  %v5265_v7 = vpop.f32.mrb[174].mxu1  ;;  %v5306_v26 = vpop.f32.mrb[178].mxu0 }
 0x6ae   :  { %v5266_v27 = vpop.f32.mrb[175].mxu1  ;;  %v5307_v28 = vpop.f32.mrb[179].mxu0 }
 0x6b3   :  { %v5343_v29 = vpop.f32.mrb[176].mxu1  ;;  %v5438_v57 = vpop.f32.mrb[180].mxu0 }
 0x6b4   :  { %v5354_v30 = vadd.f32 %v5343_v29, %v5173_v9  ;;  %v5527_v31 = vadd.f32 %v5438_v57, %v5350_v16  ;;  %v5345_v32 = vpop.f32.mrb[177].mxu1  ;;  %v5440_v1 = vpop.f32.mrb[181].mxu0 }
 0x6b5   :  { %v5355_v45 = vadd.f32 %v5345_v32, %v5175_v40  ;;  %v5528_v3 = vadd.f32 %v5440_v1, %v5351_v23  ;;  %v5347_v17 = vpop.f32.mrb[178].mxu1  ;;  %v5442_v33 = vpop.f32.mrb[182].mxu0 }
 0x6b6   :  { %v5348_v34 = vpop.f32.mrb[179].mxu1  ;;  %v5443_v35 = vpop.f32.mrb[183].mxu0 }
 0x6bb   :  { %v5479_v37 = vpop.f32.mrb[180].mxu1  ;;  %v5520_v42 = vpop.f32.mrb[184].mxu0 }
 0x6bc   :  { %v5529_v44 = vadd.f32 %v5479_v37, %v5352_v58  ;;  %v5531_v41 = vadd.f32 %v5520_v42, %v5354_v30  ;;  %v5481_v47 = vpop.f32.mrb[181].mxu1  ;;  %v5522_v61 = vpop.f32.mrb[185].mxu0 }
 0x6bd   :  { %v5530_v48 = vadd.f32 %v5481_v47, %v5353_v25  ;;  %v5532_v50 = vadd.f32 %v5522_v61, %v5355_v45  ;;  %v5483_v0 = vpop.f32.mrb[182].mxu1  ;;  %v5524_v51 = vpop.f32.mrb[186].mxu0 }
 0x6be   :  { %v5484_v53 = vpop.f32.mrb[183].mxu1  ;;  %v5525_v54 = vpop.f32.mrb[187].mxu0 }
 0x6c3   :  { %v5597_v55 = vpop.f32.mrb[184].mxu1  ;;  %v5638_v59 = vpop.f32.mrb[188].mxu0 }
 0x6c4   :  { %v5686_v60 = vadd.f32 %v5597_v55, %v5527_v31  ;;  %v5688_v62 = vadd.f32 %v5638_v59, %v5529_v44  ;;  %v5599_v63 = vpop.f32.mrb[185].mxu1  ;;  %v5640_v5 = vpop.f32.mrb[189].mxu0 }
 0x6c5   :  { %v5687_v9 = vadd.f32 %v5599_v63, %v5528_v3  ;;  %v5689_v4 = vadd.f32 %v5640_v5, %v5530_v48  ;;  %v5601_v10 = vpop.f32.mrb[186].mxu1  ;;  %v5642_v11 = vpop.f32.mrb[190].mxu0 }
 0x6c6   :  { %v5602_v40 = vpop.f32.mrb[187].mxu1  ;;  %v5643_v13 = vpop.f32.mrb[191].mxu0 }
 0x6cb   :  { %v5679_v15 = vpop.f32.mrb[188].mxu1  ;;  %v5774_v38 = vpop.f32.mrb[192].mxu0 }
 0x6cc   :  { %v5690_v2 = vadd.f32 %v5679_v15, %v5531_v41  ;;  %v5863_v19 = vadd.f32 %v5774_v38, %v5686_v60  ;;  %v5681_v6 = vpop.f32.mrb[189].mxu1  ;;  %v5776_v16 = vpop.f32.mrb[193].mxu0 }
 0x6cd   :  { %v5691_v58 = vadd.f32 %v5681_v6, %v5532_v50  ;;  %v5864_v39 = vadd.f32 %v5776_v16, %v5687_v9  ;;  %v5683_v22 = vpop.f32.mrb[190].mxu1  ;;  %v5778_v23 = vpop.f32.mrb[194].mxu0 }
 0x6ce   :  { %v5684_v25 = vpop.f32.mrb[191].mxu1  ;;  %v5779_v7 = vpop.f32.mrb[195].mxu0 }
 0x6cf   :  { %v6405_v23 = vpop.permute.xlu0 %6404 }
 0x6d3   :  { %v5815_v26 = vpop.f32.mrb[192].mxu1  ;;  %v5856_v27 = vpop.f32.mrb[196].mxu0 }
 0x6d4   :  { %v5865_v28 = vadd.f32 %v5815_v26, %v5688_v62  ;;  %v5867_v29 = vadd.f32 %v5856_v27, %v5690_v2  ;;  %v5817_v57 = vpop.f32.mrb[193].mxu1  ;;  %v5858_v30 = vpop.f32.mrb[197].mxu0 }
 0x6d5   :  { %v5866_v31 = vadd.f32 %v5817_v57, %v5689_v4  ;;  %v5868_v32 = vadd.f32 %v5858_v30, %v5691_v58  ;;  %v5819_v1 = vpop.f32.mrb[194].mxu1  ;;  %v5860_v45 = vpop.f32.mrb[198].mxu0 }
 0x6d6   :  { %v5820_v3 = vpop.f32.mrb[195].mxu1  ;;  %v5861_v17 = vpop.f32.mrb[199].mxu0 }
 0x6db   :  { %v5951_v33 = vpop.f32.mrb[196].mxu1  ;;  %v5992_v34 = vpop.f32.mrb[200].mxu0 }
 0x6dc   :  { %v6040_v35 = vadd.f32 %v5951_v33, %v5863_v19  ;;  %v6042_v37 = vadd.f32 %v5992_v34, %v5865_v28  ;;  %v5953_v42 = vpop.f32.mrb[197].mxu1  ;;  %v5994_v44 = vpop.f32.mrb[201].mxu0 }
 0x6dd   :  { %v6041_v41 = vadd.f32 %v5953_v42, %v5864_v39  ;;  %v6043_v47 = vadd.f32 %v5994_v44, %v5866_v31  ;;  %v5955_v61 = vpop.f32.mrb[198].mxu1  ;;  %v5996_v48 = vpop.f32.mrb[202].mxu0 }
 0x6de   :  { %v5956_v50 = vpop.f32.mrb[199].mxu1  ;;  %v5997_v0 = vpop.f32.mrb[203].mxu0 }
 0x6e3   :  { %v6033_v51 = vpop.f32.mrb[200].mxu1  ;;  %v6128_v53 = vpop.f32.mrb[204].mxu0 }
 0x6e4   :  { %v6044_v54 = vadd.f32 %v6033_v51, %v5867_v29  ;;  %v6217_v55 = vadd.f32 %v6128_v53, %v6040_v35  ;;  %v6035_v59 = vpop.f32.mrb[201].mxu1  ;;  %v6130_v60 = vpop.f32.mrb[205].mxu0 }
 0x6e5   :  { %v6045_v62 = vadd.f32 %v6035_v59, %v5868_v32  ;;  %v6218_v63 = vadd.f32 %v6130_v60, %v6041_v41  ;;  %v6037_v5 = vpop.f32.mrb[202].mxu1  ;;  %v6132_v9 = vpop.f32.mrb[206].mxu0 }
 0x6e6   :  { %v6038_v4 = vpop.f32.mrb[203].mxu1  ;;  %v6133_v10 = vpop.f32.mrb[207].mxu0 }
 0x6eb   :  { %v6169_v11 = vpop.f32.mrb[204].mxu1  ;;  %v6210_v40 = vpop.f32.mrb[208].mxu0 }
 0x6ec   :  { %v6219_v13 = vadd.f32 %v6169_v11, %v6042_v37  ;;  %v6221_v15 = vadd.f32 %v6210_v40, %v6044_v54  ;;  %v6171_v38 = vpop.f32.mrb[205].mxu1  ;;  %v6212_v2 = vpop.f32.mrb[209].mxu0 }
 0x6ed   :  { %v6220_v19 = vadd.f32 %v6171_v38, %v6043_v47  ;;  %v6222_v6 = vadd.f32 %v6212_v2, %v6045_v62  ;;  %v6173_v16 = vpop.f32.mrb[206].mxu1  ;;  %v6214_v58 = vpop.f32.mrb[210].mxu0 }
 0x6ee   :  { %v6174_v39 = vpop.f32.mrb[207].mxu1  ;;  %v6215_v22 = vpop.f32.mrb[211].mxu0 }
 0x6f3   :  { %v6305_v25 = vpop.f32.mrb[208].mxu1  ;;  %v6346_v7 = vpop.f32.mrb[212].mxu0 }
 0x6f4   :  { %v6394_v26 = vadd.f32 %v6305_v25, %v6217_v55  ;;  %v6396_v27 = vadd.f32 %v6346_v7, %v6219_v13  ;;  %v6307_v28 = vpop.f32.mrb[209].mxu1  ;;  %v6348_v29 = vpop.f32.mrb[213].mxu0 }
 0x6f5   :  { %v6395_v57 = vadd.f32 %v6307_v28, %v6218_v63  ;;  %v6397_v30 = vadd.f32 %v6348_v29, %v6220_v19  ;;  %v6309_v31 = vpop.f32.mrb[210].mxu1  ;;  %v6350_v32 = vpop.f32.mrb[214].mxu0 }
 0x6f6   :  { %v6407_v1 = vadd.f32 %v6405_v23, %v6394_v26  ;;  %v6409_v45 = vadd.f32 %v6405_v23, %v6396_v27  ;;  %v6310_v3 = vpop.f32.mrb[211].mxu1  ;;  %v6351_v17 = vpop.f32.mrb[215].mxu0 }
 0x6f7   :  { %v6408_v33 = vadd.f32 %v6405_v23, %v6395_v57  ;;  %v6410_v34 = vadd.f32 %v6405_v23, %v6397_v30 }
 0x6f8   :  { %v8750_v35 = vmul.f32 %v6407_v1, %v7718_v20  ;;  %v8753_v37 = vmul.f32 %v6409_v45, %v7720_v21  ;;  %v6419_v20 = vld [vmem:[%s8819_s3] sm:$0xff]  ;;  %s7315_s3 = smov [#allocation2]  }
 0x6f9   :  { %v8756_v42 = vmul.f32 %v6408_v33, %v7722_v24  ;;  %v8759_v44 = vmul.f32 %v6410_v34, %v7727_v36  ;;  %v6420_v54 = vpack.c.bf16 %v6419_v20, %v6419_v20  ;;  %s6646_s18 = sshll.u32 %s7315_s3, 4  ;;  %s6647_s18 = int_to_ptr.vmem [resolvable:$true] %s6646_s18 }
 0x6fa   :  { %v6421_v41 = vpack.c.bf16 %v8750_v35, %v8750_v35  ;;  %v6423_v47 = vpack.c.bf16 %v8753_v37, %v8753_v37  ;;  %s7282_s19 = scalar_lea.vmem %s6647_s18, 384  ;;  %p7287_p1 = scmp.lt.s32.totalorder %s6647_s18, %s6647_s18 }
 0x6fb   :  { %v6422_v21 = vpack.c.bf16 %v8756_v42, %v8756_v42  ;;  %v6424_v24 = vpack.c.bf16 %v8759_v44, %v8759_v44  ;;  %v6387_v61 = vpop.f32.mrb[212].mxu1  ;;  %p7283_p0 = scmp.ne.s32.totalorder %s6647_s18, %s7282_s19  ;;  %p7288_p2 = scmp.lt.s32.totalorder %s7282_s19, %s7282_s19 }
 0x6fc   :  { %v6398_v48 = vadd.f32 %v6387_v61, %v6221_v15  ;;  %v6389_v36 = vpop.f32.mrb[213].mxu1  ;;  %v6437_v50 = vsel %vm93_vm1, %v6421_v41, 0  ;;  %v6443_v0 = vsel %vm93_vm1, %v6423_v47, 0 }
 0x6fd   :  { %v6399_v51 = vadd.f32 %v6389_v36, %v6222_v6  ;;  %v6391_v53 = vpop.f32.mrb[214].mxu1  ;;  %6908 = vmatprep.subr.msk.bf16.mxu0 %vm93_vm1, %v6422_v21  ;;  %6910 = vmatprep.subr.msk.bf16.mxu1 %vm93_vm1, %v6424_v24  ;;  %p7289_p3 = por %p7288_p2, %p7287_p1 }
 0x6fe   :  { %v6411_v55 = vadd.f32 %v6405_v23, %v6398_v48  ;;  %v6392_v59 = vpop.f32.mrb[215].mxu1  ;;  %6455 = vmatpush1.bf16.msra.mxu0 %v6437_v50  ;;  %6496 = vmatpush1.bf16.msra.mxu1 %v6443_v0 }
 0x6ff   :  { %v6412_v60 = vadd.f32 %v6405_v23, %v6399_v51  ;;  %p7290_p4 = pnand %p7289_p3, %p7283_p0 }
 0x700   :  { %v8777_v62 = vmul.f32 %v6411_v55, %v7735_v43  ;;  %v6431_v43 = vpop.permute.xlu1 %6430 }
 0x701   :  { %v8780_v63 = vmul.f32 %v6412_v60, %v7737_v46  ;;  %6909 = vmatmul.mubr.msk.bf16.vlgmr.msra.gmra.mrb[216].mxu0 %vm89_vm3, %v6420_v54  ;;  %6911 = vmatmul.mubr.msk.bf16.vlgmr.msra.gmra.mrb[216].mxu1 %vm89_vm3, %v6420_v54 }
 0x702   :  { %v6425_v5 = vpack.c.bf16 %v8777_v62, %v8777_v62  ;;  %6568 = vmatprep.mubr.bf16.mxu0 %v7307_v8 }
 0x703   :  { %v6426_v9 = vpack.c.bf16 %v8780_v63, %v8780_v63 }
 0x704   :  { %v6449_v4 = vsel %vm93_vm1, %v6425_v5, 0 }
 0x705   :  { %6912 = vmatprep.subr.msk.bf16.mxu0 %vm93_vm1, %v6426_v9 }
 0x706   :  { %6537 = vmatpush1.bf16.msra.mxu0 %v6449_v4 }
 0x709   :  { %6913 = vmatmul.mubr.msk.bf16.vlgmr.msra.gmra.mrb[220].mxu0 %vm89_vm3, %v6420_v54 }
 0x7d4   :  { %v6488_v46 = vpop.f32.mrb[216].mxu0  ;;  %v6529_v10 = vpop.f32.mrb[216].mxu1 }
 0x7d5   :  { %v6489_v11 = vadd.f32 %v6488_v46, %v6431_v43  ;;  %v6530_v40 = vadd.f32 %v6529_v10, %v6431_v43  ;;  %v6490_v13 = vpop.f32.mrb[217].mxu0  ;;  %v6531_v15 = vpop.f32.mrb[217].mxu1 }
 0x7d6   :  { %v6491_v38 = vadd.f32 %v6490_v13, %v6431_v43  ;;  %v6532_v2 = vadd.f32 %v6531_v15, %v6431_v43  ;;  %v6492_v8 = vpop.f32.mrb[218].mxu0  ;;  %v6533_v19 = vpop.f32.mrb[218].mxu1 }
 0x7d7   :  { %v6914_v6 = vmul.f32 -1.442695, %v6489_v11  ;;  %v6916_v16 = vmul.f32 -1.442695, %v6530_v40  ;;  %v6493_v58 = vpop.f32.mrb[219].mxu0  ;;  %v6534_v39 = vpop.f32.mrb[219].mxu1 }
 0x7d8   :  { %v6915_v22 = vmul.f32 -1.442695, %v6491_v38  ;;  %v6917_v23 = vmul.f32 -1.442695, %v6532_v2 }
 0x7d9   :  { %7252 = vpow2.f32 %v6914_v6 }
 0x7da   :  { %7254 = vpow2.f32 %v6916_v16 }
 0x7db   :  { %7256 = vpow2.f32 %v6915_v22 }
 0x7dc   :  { %7258 = vpow2.f32 %v6917_v23  ;;  %v6570_v25 = vpop.f32.mrb[220].mxu0 }
 0x7dd   :  { %v6571_v7 = vadd.f32 %v6570_v25, %v6431_v43  ;;  %v6572_v26 = vpop.f32.mrb[221].mxu0 }
 0x7de   :  { %v6573_v27 = vadd.f32 %v6572_v26, %v6431_v43  ;;  %v6574_v28 = vpop.f32.mrb[222].mxu0 }
 0x7df   :  { %v6918_v29 = vmul.f32 -1.442695, %v6571_v7  ;;  %v6575_v57 = vpop.f32.mrb[223].mxu0 }
 0x7e0   :  { %v6919_v30 = vmul.f32 -1.442695, %v6573_v27 }
 0x7e1   :  { %7260 = vpow2.f32 %v6918_v29 }
 0x7e2   :  { %7262 = vpow2.f32 %v6919_v30 }
 0x7e3   :  { %v7253_v31 = vpop.eup %7252 }
 0x7e4   :  { %v7255_v32 = vpop.eup %7254  ;;  %v6595_v1 = vadd.f32 1.0, %v7253_v31 }
 0x7e5   :  { %v7257_v45 = vpop.eup %7256  ;;  %v6597_v3 = vadd.f32 1.0, %v7255_v32 }
 0x7e6   :  { %v7259_v17 = vpop.eup %7258  ;;  %7264 = vrcp.f32 %v6595_v1  ;;  %v6596_v33 = vadd.f32 1.0, %v7257_v45 }
 0x7e7   :  { %7266 = vrcp.f32 %v6597_v3  ;;  %v6598_v34 = vadd.f32 1.0, %v7259_v17 }
 0x7e8   :  { %7268 = vrcp.f32 %v6596_v33 }
 0x7e9   :  { %7270 = vrcp.f32 %v6598_v34 }
 0x7eb   :  { %v7261_v41 = vpop.eup %7260 }
 0x7ec   :  { %v7263_v47 = vpop.eup %7262  ;;  %v6599_v20 = vadd.f32 1.0, %v7261_v41 }
 0x7ed   :  { %v6600_v21 = vadd.f32 1.0, %v7263_v47 }
 0x7ee   :  { %7272 = vrcp.f32 %v6599_v20 }
 0x7ef   :  { %7274 = vrcp.f32 %v6600_v21 }
 0x7f0   :  { %v7265_v24 = vpop.eup %7264 }
 0x7f1   :  { %v7267_v61 = vpop.eup %7266  ;;  %v6613_v48 = vmul.f32 %v7265_v24, %v8750_v35 }
 0x7f2   :  { %v7269_v36 = vpop.eup %7268  ;;  %v6615_v50 = vmul.f32 %v7267_v61, %v8753_v37 }
 0x7f3   :  { %v7271_v0 = vpop.eup %7270  ;;  %v6614_v51 = vmul.f32 %v7269_v36, %v8756_v42  ;;  %v6619_v53 = vadd.f32 %v6613_v48, %v8071_v49 }
 0x7f4   :  { %v6616_v54 = vmul.f32 %v7271_v0, %v8759_v44  ;;  %v6621_v55 = vadd.f32 %v6615_v50, %v8103_v18 }
 0x7f5   :  { %v6620_v59 = vadd.f32 %v6614_v51, %v8076_v52 }
 0x7f6   :  { %v6622_v60 = vadd.f32 %v6616_v54, %v8088_v12 }
 0x7f7   :  { %v6631_v5 = vcombine.low %v6619_v53, %v6620_v59 }
 0x7f8   :  { %v7273_v9 = vpop.eup %7272  ;;  %v6632_v4 = vcombine.low %v6621_v55, %v6622_v60 }
 0x7f9   :  { %v7275_v35 = vpop.eup %7274  ;;  %v6617_v43 = vmul.f32 %v7273_v9, %v8777_v62  ;;  %6637 = vst [vmem:[#allocation2] sm:$0xff] %v6631_v5 }
 0x7fa   :  { %v6618_v37 = vmul.f32 %v7275_v35, %v8780_v63  ;;  %6638 = vst [vmem:[#allocation2 + $0x8] sm:$0xff] %v6632_v4 }
 0x7fb   :  { %v6623_v49 = vadd.f32 %v6617_v43, %v8093_v14 }
 0x7fc   :  { %v6624_v18 = vadd.f32 %v6618_v37, %v8098_v56 }
 0x7fe   :  { %v6633_v42 = vcombine.low %v6623_v49, %v6624_v18 }
 0x800   :  { %6639 = vst [vmem:[#allocation2 + $0x10] sm:$0xff] %v6633_v42 }
 0x801   :  { %7293 = shalt.err (!%p7290_p4)
}
 0x802   :  { %s7294_s21 = scalar_lea.hbm %s8822_s6, 384 }
 0x803   :  { %p7295_p5 = scmp.ne.s32.totalorder %s8822_s6, %s7294_s21  ;;  %p7298_p6 = scmp.lt.u32.totalorder %s7294_s21, %s8822_s6 }
 0x805   :  { %p7300_p7 = pnand %p7298_p6, %p7295_p5 }
 0x807   :  { %7303 = shalt.err (!%p7300_p7)
}
 0x808   :  { %6649 = dma.vmem_to_hbm [thread:$0]  %s6647_s18, 384, %s8822_s6, [#allocation3]  }
 0x809   :  { %7304 = dma.done.wait [#allocation3], 384  }
 0x80a   :  { %7305 = vsyncadd [#allocation3], 4294966912 }
 0x80b   :  { %6653 = vsyncpa [#allocation3], 1 }

</bundles_post_ra>
